<compile_context>
chip_gen: v7x
topology: tpu7x:2x2x1
jax: 0.10.0
libtpu: 0.0.40
codegen_flags: <defaults>
</compile_context>

<pallas_src>
import functools

import jax
import jax.numpy as jnp
from jax import lax
from jax.experimental import pallas as pl
from jax.experimental.pallas import tpu as pltpu


_GATE_PERM = [0, 1, 3, 2]   # PyTorch order [i|f|g|o] -> kernel order [i|f|o|g]


def _round_up(x: int, m: int) -> int:
    return ((x + m - 1) // m) * m


def _make_lstm_kernel(seq_len: int, batch_p: int, emb_p: int, hid_p: int,
                      unroll):
    """Kernel body for one layer (layer index = grid position 0)."""

    def kernel(x_ref, w_ih_ref, w_hh_ref, b_ref, h_out_ref, c_out_ref,
               seq_scr, gx_scr):
        l = pl.program_id(0)
        bias = b_ref[0]                       # (1, 4*hid_p) f32

        # ---- Hoisted non-recurrent projection over the WHOLE sequence ----
        # M = seq_len * batch_p, bf16 operands, f32 accumulation, bias fused.
        @pl.when(l == 0)
        def _():
            gx_scr[...] = jnp.dot(
                x_ref[...], w_ih_ref[0, 0:emb_p, :],
                preferred_element_type=jnp.float32) + bias

        @pl.when(l > 0)
        def _():
            # Previous layer's outputs are already bf16 in seq_scr (no cast).
            gx_scr[...] = jnp.dot(
                seq_scr[...], w_ih_ref[0, 0:hid_p, :],
                preferred_element_type=jnp.float32) + bias

        # Recurrent weights: loaded once per layer, weight-stationary.
        # TODO(synk): keep W_hh/h in f32 here if tighter parity with PyTorch's
        #             f32 LSTM is required (recurrent matmul is tiny).
        w_hh = w_hh_ref[0]                    # (hid_p, 4*hid_p) bf16

        h0 = jnp.zeros((batch_p, hid_p), jnp.float32)
        c0 = jnp.zeros((batch_p, hid_p), jnp.float32)

        def step(t, carry):
            h, c = carry
            off = pl.multiple_of(t * batch_p, batch_p)
            # Only the recurrent matmul stays inside the serial loop.
            gates = gx_scr[pl.ds(off, batch_p), :] + jnp.dot(
                h.astype(jnp.bfloat16), w_hh,
                preferred_element_type=jnp.float32)
            # Gate order [i|f|o|g]: one sigmoid over a contiguous 3*hid_p
            # slice + one tanh (halves EUP dispatches on the critical path).
            ifo = jax.nn.sigmoid(gates[:, 0:3 * hid_p])
            g_g = jnp.tanh(gates[:, 3 * hid_p:4 * hid_p])
            i_g = ifo[:, 0:hid_p]
            f_g = ifo[:, hid_p:2 * hid_p]
            o_g = ifo[:, 2 * hid_p:3 * hid_p]
            c_new = f_g * c + i_g * g_g
            h_new = o_g * jnp.tanh(c_new)
            # Feed next layer (eval-mode dropout is identity). Written on the
            # last layer too: cheap dead stores beat a runtime branch.
            seq_scr[pl.ds(off, batch_p), :] = h_new.astype(jnp.bfloat16)
            return h_new, c_new

        h_fin, c_fin = lax.fori_loop(0, seq_len, step, (h0, c0),
                                     unroll=unroll)
        # Final state written straight to the per-layer output block.
        h_out_ref[0] = h_fin
        c_out_ref[0] = c_fin

    return kernel


def _pad_gates(w, hid: int, hid_p: int):
    """Reorder gates [i|f|g|o]->[i|f|o|g] and zero-pad each gate to hid_p."""
    lead = w.shape[0]
    w4 = w.reshape(lead, 4, hid)[:, _GATE_PERM, :]
    w4 = jnp.pad(w4, ((0, 0), (0, 0), (0, hid_p - hid)))
    return w4.reshape(lead, 4 * hid_p)


def prepare_encoder_params(w_ih_list, w_hh_list, b_list, emb_dim, hid_dim):
    """Per-gate zero pad, reorder gates, cast to bf16, stack per layer."""
    hid_p = _round_up(hid_dim, 128)
    emb_p = _round_up(emb_dim, 128)
    in_p_max = max(emb_p, hid_p)
    w_ih_s, w_hh_s, b_s = [], [], []
    for wi, wh, bb in zip(w_ih_list, w_hh_list, b_list):
        in_dim = wi.shape[0]
        wi = _pad_gates(wi, hid_dim, hid_p)
        wi = jnp.pad(wi, ((0, in_p_max - in_dim), (0, 0)))
        wh = _pad_gates(wh, hid_dim, hid_p)
        wh = jnp.pad(wh, ((0, hid_p - hid_dim), (0, 0)))
        bb = _pad_gates(bb, hid_dim, hid_p)
        w_ih_s.append(wi.astype(jnp.bfloat16))
        w_hh_s.append(wh.astype(jnp.bfloat16))
        b_s.append(bb.astype(jnp.float32))
    return jnp.stack(w_ih_s), jnp.stack(w_hh_s), jnp.stack(b_s)


def _vmem_limit_bytes(SB, emb_p, in_p_max, hid_p, G, batch_p):
    footprint = (
        2 * SB * emb_p * 2              # x block (bf16, double-buffered)
        + 2 * in_p_max * G * 2          # per-layer W_ih block (bf16, 2 bufs)
        + 2 * hid_p * G * 2             # per-layer W_hh block
        + 2 * 8 * G * 4                 # per-layer bias block (sublane-padded)
        + 2 * 2 * batch_p * hid_p * 4   # h/c output blocks
        + SB * hid_p * 2                # seq_scr (bf16)
        + SB * G * 4                    # gx_scr (f32)
    )
    # 25% + 2 MiB headroom for compiler-internal scratch; never request more
    # than 128 MiB (physical VMEM on v5e/v6e; v7x only gets what it needs).
    return min(int(footprint * 1.25) + (2 << 20), 128 * 1024 * 1024)


def lstm_encoder_pallas(embedded, w_ih_stack, w_hh_stack, b_stack):
    """Stacked LSTM over `embedded` (seq, batch, emb). Returns padded (h, c)."""
    seq_len, batch, emb_dim = embedded.shape
    n_layers, in_p_max, G = w_ih_stack.shape
    hid_p = w_hh_stack.shape[1]
    emb_p = _round_up(emb_dim, 128)
    # batch padded to 16 so bf16 (sublane-packed) seq_scr stores are unmasked.
    batch_p = _round_up(max(batch, 16), 16)
    SB = seq_len * batch_p

    # Pad batch (sublanes) + emb (lanes), flatten time into M, cast to bf16
    # so the hoisted X @ W_ih matmul runs with M = seq*batch_p on the MXU.
    x = jnp.pad(embedded,
                ((0, 0), (0, batch_p - batch), (0, emb_p - emb_dim)))
    x = x.reshape(SB, emb_p).astype(jnp.bfloat16)

    unroll = True if seq_len <= 16 else 8
    kernel = _make_lstm_kernel(seq_len, batch_p, emb_p, hid_p, unroll)

    in_specs = [
        pl.BlockSpec((SB, emb_p), lambda l: (0, 0)),            # x (constant)
        pl.BlockSpec((1, in_p_max, G), lambda l: (l, 0, 0)),    # W_ih[l]
        pl.BlockSpec((1, hid_p, G), lambda l: (l, 0, 0)),       # W_hh[l]
        pl.BlockSpec((1, 1, G), lambda l: (l, 0, 0)),           # bias[l]
    ]
    out_spec = pl.BlockSpec((1, batch_p, hid_p), lambda l: (l, 0, 0))

    grid_spec = pltpu.PrefetchScalarGridSpec(
        num_scalar_prefetch=0,
        grid=(n_layers,),                 # layer axis: weights stream per layer,
        in_specs=in_specs,                # next layer prefetched behind recurrence
        out_specs=[out_spec, out_spec],
        scratch_shapes=[
            pltpu.VMEM((SB, hid_p), jnp.bfloat16),   # inter-layer sequence
            pltpu.VMEM((SB, G), jnp.float32),        # precomputed X@W_ih + b
        ],
    )

    h_p, c_p = pl.pallas_call(
        kernel,
        grid_spec=grid_spec,
        out_shape=[
            jax.ShapeDtypeStruct((n_layers, batch_p, hid_p), jnp.float32),
            jax.ShapeDtypeStruct((n_layers, batch_p, hid_p), jnp.float32),
        ],
        compiler_params=pltpu.CompilerParams(
            dimension_semantics=("arbitrary",),      # sequential layer dependence
            vmem_limit_bytes=_vmem_limit_bytes(
                SB, emb_p, in_p_max, hid_p, G, batch_p),
        ),
    )(x, w_ih_stack, w_hh_stack, b_stack)
    return h_p, c_p


def init_encoder_params(key, vocab_size, emb_dim, hid_dim, n_layers):
    """Deterministic synthetic parameters (shapes match nn.Embedding + nn.LSTM)."""
    keys = jax.random.split(key, 1 + 4 * n_layers)
    emb_table = jax.random.normal(keys[0], (vocab_size, emb_dim), jnp.float32)

    bound = 1.0 / jnp.sqrt(hid_dim)
    w_ih, w_hh, b = [], [], []
    for l in range(n_layers):
        in_dim = emb_dim if l == 0 else hid_dim
        k_wi, k_wh, k_bi, k_bh = keys[1 + 4 * l: 5 + 4 * l]
        # stored transposed relative to PyTorch: (in_dim, 4*hid)
        w_ih.append(jax.random.uniform(k_wi, (in_dim, 4 * hid_dim),
                                       jnp.float32, -bound, bound))
        w_hh.append(jax.random.uniform(k_wh, (hid_dim, 4 * hid_dim),
                                       jnp.float32, -bound, bound))
        b_ih = jax.random.uniform(k_bi, (1, 4 * hid_dim),
                                  jnp.float32, -bound, bound)
        b_hh = jax.random.uniform(k_bh, (1, 4 * hid_dim),
                                  jnp.float32, -bound, bound)
        b.append(b_ih + b_hh)   # biases always added together; pre-fuse them
    return emb_table, w_ih, w_hh, b


def encoder_forward(src, emb_table, w_ih_stack, w_hh_stack, b_stack, hid_dim):
    # Embedding lookup (glue, plain JAX): (seq, batch) -> (seq, batch, emb)
    embedded = emb_table[src]
    # TODO(synk): dropout is identity here (eval-mode semantics); training-mode
    # stochastic dropout is not implemented.
    h_p, c_p = lstm_encoder_pallas(embedded, w_ih_stack, w_hh_stack, b_stack)
    batch = src.shape[1]
    hidden = h_p[:, :batch, :hid_dim]
    cell = c_p[:, :batch, :hid_dim]
    return hidden, cell


if __name__ == "__main__":
    # Small config consistent with the module's __init__:
    vocab_size = 100     # config.src_vocab_size
    emb_dim = 16         # config.enc_emb_dim
    hid_dim = 32         # config.hid_dim
    n_layers = 2         # config.n_layers
    seq_len, batch = 8, 2

    key = jax.random.PRNGKey(0)
    k_param, k_src = jax.random.split(key)
    emb_table, w_ih, w_hh, b = init_encoder_params(
        k_param, vocab_size, emb_dim, hid_dim, n_layers)

    # One-time weight preparation: gate reorder [i|f|o|g], per-gate zero
    # padding to lane-aligned widths, bf16 cast, per-layer stacking.
    w_ih_s, w_hh_s, b_s = prepare_encoder_params(w_ih, w_hh, b,
                                                 emb_dim, hid_dim)

    src = jax.random.randint(k_src, (seq_len, batch), 0, vocab_size,
                             dtype=jnp.int32)

    fwd = jax.jit(functools.partial(encoder_forward, hid_dim=hid_dim))
    hidden, cell = fwd(src, emb_table, w_ih_s, w_hh_s, b_s)
    jax.block_until_ready((hidden, cell))

    assert hidden.shape == (n_layers, batch, hid_dim)
    assert cell.shape == (n_layers, batch, hid_dim)
    assert bool(jnp.all(jnp.isfinite(hidden))) and bool(jnp.all(jnp.isfinite(cell)))
    print("KERNEL_OK")
</pallas_src>

<mosaic_0001>
module attributes {stable_mosaic.version = 11 : i64} {
  func.func @kernel(%arg0: i32, %arg1: memref<128x128xbf16, #tpu.memory_space<vmem>>, %arg2: memref<1x128x512xbf16, #tpu.memory_space<vmem>>, %arg3: memref<1x128x512xbf16, #tpu.memory_space<vmem>>, %arg4: memref<1x1x512xf32, #tpu.memory_space<vmem>>, %arg5: memref<1x16x128xf32, #tpu.memory_space<vmem>>, %arg6: memref<1x16x128xf32, #tpu.memory_space<vmem>>, %arg7: memref<128x128xbf16, #tpu.memory_space<vmem>>, %arg8: memref<128x512xf32, #tpu.memory_space<vmem>>) attributes {dimension_semantics = [#tpu.dimension_semantics<arbitrary>], iteration_bounds = array<i64: 2>, scalar_prefetch = 0 : i64, scratch_operands = 2 : i64, tpu.core_type = #tpu.core_type<tc>, window_params = [{pipeline_mode = #tpu.pipeline_mode<synchronous>, transform_indices = @transform_0, window_bounds = array<i64: 128, 128>}, {transform_indices = @transform_1, window_bounds = array<i64: 1, 128, 512>}, {transform_indices = @transform_2, window_bounds = array<i64: 1, 128, 512>}, {transform_indices = @transform_3, window_bounds = array<i64: 1, 1, 512>}, {transform_indices = @transform_4, window_bounds = array<i64: 1, 16, 128>}, {transform_indices = @transform_5, window_bounds = array<i64: 1, 16, 128>}]} {
    %c0 = arith.constant 0 : index
    %c0_0 = arith.constant 0 : index
    %c0_1 = arith.constant 0 : index
    %0 = vector.load %arg4[%c0, %c0_0, %c0_1] : memref<1x1x512xf32, #tpu.memory_space<vmem>>, vector<1x1x512xf32>
    %1 = vector.shape_cast %0 : vector<1x1x512xf32> to vector<1x512xf32>
    %c0_i32 = arith.constant 0 : i32
    %2 = arith.cmpi eq, %arg0, %c0_i32 : i32
    %3 = arith.extui %2 : i1 to i32
    %c0_i32_2 = arith.constant 0 : i32
    %4 = arith.cmpi ne, %3, %c0_i32_2 : i32
    scf.if %4 {
      %c0_55 = arith.constant 0 : index
      %c0_56 = arith.constant 0 : index
      %226 = vector.load %arg1[%c0_55, %c0_56] : memref<128x128xbf16, #tpu.memory_space<vmem>>, vector<128x128xbf16>
      %c0_57 = arith.constant 0 : index
      %c0_58 = arith.constant 0 : index
      %c0_59 = arith.constant 0 : index
      %227 = vector.load %arg2[%c0_57, %c0_58, %c0_59] : memref<1x128x512xbf16, #tpu.memory_space<vmem>>, vector<1x128x512xbf16>
      %228 = vector.shape_cast %227 : vector<1x128x512xbf16> to vector<128x512xbf16>
      %cst_60 = arith.constant dense<0.000000e+00> : vector<128x512xf32>
      %229 = tpu.matmul %226, %228, %cst_60 {dimension_numbers = #tpu.dot_dimension_numbers<[1], [0], [0], [1], [0, 0, 1, 1], [], []>} : vector<128x128xbf16>, vector<128x512xbf16>, vector<128x512xf32> -> vector<128x512xf32>
      %230 = vector.broadcast %1 : vector<1x512xf32> to vector<128x512xf32>
      %231 = arith.addf %229, %230 : vector<128x512xf32>
      %c0_61 = arith.constant 0 : index
      %c0_62 = arith.constant 0 : index
      %232 = vector.load %arg8[%c0_61, %c0_62] : memref<128x512xf32, #tpu.memory_space<vmem>>, vector<128x512xf32>
      tpu.vector_store %arg8[%c0_61, %c0_62], %231 {strides = array<i32>} : memref<128x512xf32, #tpu.memory_space<vmem>>, vector<128x512xf32>,
    } else {
    }
    %c0_i32_3 = arith.constant 0 : i32
    %5 = arith.cmpi sgt, %arg0, %c0_i32_3 : i32
    %6 = arith.extui %5 : i1 to i32
    %c0_i32_4 = arith.constant 0 : i32
    %7 = arith.cmpi ne, %6, %c0_i32_4 : i32
    scf.if %7 {
      %c0_55 = arith.constant 0 : index
      %c0_56 = arith.constant 0 : index
      %226 = vector.load %arg7[%c0_55, %c0_56] : memref<128x128xbf16, #tpu.memory_space<vmem>>, vector<128x128xbf16>
      %c0_57 = arith.constant 0 : index
      %c0_58 = arith.constant 0 : index
      %c0_59 = arith.constant 0 : index
      %227 = vector.load %arg2[%c0_57, %c0_58, %c0_59] : memref<1x128x512xbf16, #tpu.memory_space<vmem>>, vector<1x128x512xbf16>
      %228 = vector.shape_cast %227 : vector<1x128x512xbf16> to vector<128x512xbf16>
      %cst_60 = arith.constant dense<0.000000e+00> : vector<128x512xf32>
      %229 = tpu.matmul %226, %228, %cst_60 {dimension_numbers = #tpu.dot_dimension_numbers<[1], [0], [0], [1], [0, 0, 1, 1], [], []>} : vector<128x128xbf16>, vector<128x512xbf16>, vector<128x512xf32> -> vector<128x512xf32>
      %230 = vector.broadcast %1 : vector<1x512xf32> to vector<128x512xf32>
      %231 = arith.addf %229, %230 : vector<128x512xf32>
      %c0_61 = arith.constant 0 : index
      %c0_62 = arith.constant 0 : index
      %232 = vector.load %arg8[%c0_61, %c0_62] : memref<128x512xf32, #tpu.memory_space<vmem>>, vector<128x512xf32>
      tpu.vector_store %arg8[%c0_61, %c0_62], %231 {strides = array<i32>} : memref<128x512xf32, #tpu.memory_space<vmem>>, vector<128x512xf32>,
    } else {
    }
    %c0_5 = arith.constant 0 : index
    %c0_6 = arith.constant 0 : index
    %c0_7 = arith.constant 0 : index
    %8 = vector.load %arg3[%c0_5, %c0_6, %c0_7] : memref<1x128x512xbf16, #tpu.memory_space<vmem>>, vector<1x128x512xbf16>
    %9 = vector.shape_cast %8 : vector<1x128x512xbf16> to vector<128x512xbf16>
    %cst = arith.constant 0.000000e+00 : f32
    %10 = vector.broadcast %cst : f32 to vector<16x128xf32>
    %cst_8 = arith.constant 0.000000e+00 : f32
    %11 = vector.broadcast %cst_8 : f32 to vector<16x128xf32>
    %c0_i32_9 = arith.constant 0 : i32
    %c16_i32 = arith.constant 16 : i32
    %12 = arith.muli %c0_i32_9, %c16_i32 : i32
    %13 = tpu.assume_multiple %12, 16 : i32
    %14 = arith.index_cast %13 : i32 to index
    %c0_10 = arith.constant 0 : index
    %15 = vector.load %arg8[%14, %c0_10] : memref<128x512xf32, #tpu.memory_space<vmem>>, vector<16x512xf32>
    %16 = arith.truncf %10 : vector<16x128xf32> to vector<16x128xbf16>
    %cst_11 = arith.constant dense<0.000000e+00> : vector<16x512xf32>
    %17 = tpu.matmul %16, %9, %cst_11 {dimension_numbers = #tpu.dot_dimension_numbers<[1], [0], [0], [1], [0, 0, 1, 1], [], []>} : vector<16x128xbf16>, vector<128x512xbf16>, vector<16x512xf32> -> vector<16x512xf32>
    %18 = arith.addf %15, %17 : vector<16x512xf32>
    %19 = vector.extract_strided_slice %18 {offsets = [0, 0], sizes = [16, 384], strides = [1, 1]} : vector<16x512xf32> to vector<16x384xf32>
    %20 = arith.negf %19 : vector<16x384xf32>
    %21 = math.exp %20 : vector<16x384xf32>
    %cst_12 = arith.constant 1.000000e+00 : f32
    %22 = vector.broadcast %cst_12 : f32 to vector<16x384xf32>
    %23 = arith.addf %22, %21 : vector<16x384xf32>
    %24 = arith.divf %22, %23 : vector<16x384xf32>
    %25 = vector.extract_strided_slice %18 {offsets = [0, 384], sizes = [16, 128], strides = [1, 1]} : vector<16x512xf32> to vector<16x128xf32>
    %26 = math.tanh %25 : vector<16x128xf32>
    %27 = vector.extract_strided_slice %24 {offsets = [0, 0], sizes = [16, 128], strides = [1, 1]} : vector<16x384xf32> to vector<16x128xf32>
    %28 = vector.extract_strided_slice %24 {offsets = [0, 128], sizes = [16, 128], strides = [1, 1]} : vector<16x384xf32> to vector<16x128xf32>
    %29 = vector.extract_strided_slice %24 {offsets = [0, 256], sizes = [16, 128], strides = [1, 1]} : vector<16x384xf32> to vector<16x128xf32>
    %30 = arith.mulf %28, %11 : vector<16x128xf32>
    %31 = arith.mulf %27, %26 : vector<16x128xf32>
    %32 = arith.addf %30, %31 : vector<16x128xf32>
    %33 = math.tanh %32 : vector<16x128xf32>
    %34 = arith.mulf %29, %33 : vector<16x128xf32>
    %35 = arith.truncf %34 : vector<16x128xf32> to vector<16x128xbf16>
    %36 = arith.index_cast %13 : i32 to index
    %c0_13 = arith.constant 0 : index
    %37 = vector.load %arg7[%36, %c0_13] : memref<128x128xbf16, #tpu.memory_space<vmem>>, vector<16x128xbf16>
    tpu.vector_store %arg7[%36, %c0_13], %35 {strides = array<i32>} : memref<128x128xbf16, #tpu.memory_space<vmem>>, vector<16x128xbf16>,
    %c1_i32 = arith.constant 1 : i32
    %c16_i32_14 = arith.constant 16 : i32
    %38 = arith.muli %c1_i32, %c16_i32_14 : i32
    %39 = tpu.assume_multiple %38, 16 : i32
    %40 = arith.index_cast %39 : i32 to index
    %c0_15 = arith.constant 0 : index
    %41 = vector.load %arg8[%40, %c0_15] : memref<128x512xf32, #tpu.memory_space<vmem>>, vector<16x512xf32>
    %42 = arith.truncf %34 : vector<16x128xf32> to vector<16x128xbf16>
    %cst_16 = arith.constant dense<0.000000e+00> : vector<16x512xf32>
    %43 = tpu.matmul %42, %9, %cst_16 {dimension_numbers = #tpu.dot_dimension_numbers<[1], [0], [0], [1], [0, 0, 1, 1], [], []>} : vector<16x128xbf16>, vector<128x512xbf16>, vector<16x512xf32> -> vector<16x512xf32>
    %44 = arith.addf %41, %43 : vector<16x512xf32>
    %45 = vector.extract_strided_slice %44 {offsets = [0, 0], sizes = [16, 384], strides = [1, 1]} : vector<16x512xf32> to vector<16x384xf32>
    %46 = arith.negf %45 : vector<16x384xf32>
    %47 = math.exp %46 : vector<16x384xf32>
    %cst_17 = arith.constant 1.000000e+00 : f32
    %48 = vector.broadcast %cst_17 : f32 to vector<16x384xf32>
    %49 = arith.addf %48, %47 : vector<16x384xf32>
    %50 = arith.divf %48, %49 : vector<16x384xf32>
    %51 = vector.extract_strided_slice %44 {offsets = [0, 384], sizes = [16, 128], strides = [1, 1]} : vector<16x512xf32> to vector<16x128xf32>
    %52 = math.tanh %51 : vector<16x128xf32>
    %53 = vector.extract_strided_slice %50 {offsets = [0, 0], sizes = [16, 128], strides = [1, 1]} : vector<16x384xf32> to vector<16x128xf32>
    %54 = vector.extract_strided_slice %50 {offsets = [0, 128], sizes = [16, 128], strides = [1, 1]} : vector<16x384xf32> to vector<16x128xf32>
    %55 = vector.extract_strided_slice %50 {offsets = [0, 256], sizes = [16, 128], strides = [1, 1]} : vector<16x384xf32> to vector<16x128xf32>
    %56 = arith.mulf %54, %32 : vector<16x128xf32>
    %57 = arith.mulf %53, %52 : vector<16x128xf32>
    %58 = arith.addf %56, %57 : vector<16x128xf32>
    %59 = math.tanh %58 : vector<16x128xf32>
    %60 = arith.mulf %55, %59 : vector<16x128xf32>
    %61 = arith.truncf %60 : vector<16x128xf32> to vector<16x128xbf16>
    %62 = arith.index_cast %39 : i32 to index
    %c0_18 = arith.constant 0 : index
    %63 = vector.load %arg7[%62, %c0_18] : memref<128x128xbf16, #tpu.memory_space<vmem>>, vector<16x128xbf16>
    tpu.vector_store %arg7[%62, %c0_18], %61 {strides = array<i32>} : memref<128x128xbf16, #tpu.memory_space<vmem>>, vector<16x128xbf16>,
    %c2_i32 = arith.constant 2 : i32
    %c16_i32_19 = arith.constant 16 : i32
    %64 = arith.muli %c2_i32, %c16_i32_19 : i32
    %65 = tpu.assume_multiple %64, 16 : i32
    %66 = arith.index_cast %65 : i32 to index
    %c0_20 = arith.constant 0 : index
    %67 = vector.load %arg8[%66, %c0_20] : memref<128x512xf32, #tpu.memory_space<vmem>>, vector<16x512xf32>
    %68 = arith.truncf %60 : vector<16x128xf32> to vector<16x128xbf16>
    %cst_21 = arith.constant dense<0.000000e+00> : vector<16x512xf32>
    %69 = tpu.matmul %68, %9, %cst_21 {dimension_numbers = #tpu.dot_dimension_numbers<[1], [0], [0], [1], [0, 0, 1, 1], [], []>} : vector<16x128xbf16>, vector<128x512xbf16>, vector<16x512xf32> -> vector<16x512xf32>
    %70 = arith.addf %67, %69 : vector<16x512xf32>
    %71 = vector.extract_strided_slice %70 {offsets = [0, 0], sizes = [16, 384], strides = [1, 1]} : vector<16x512xf32> to vector<16x384xf32>
    %72 = arith.negf %71 : vector<16x384xf32>
    %73 = math.exp %72 : vector<16x384xf32>
    %cst_22 = arith.constant 1.000000e+00 : f32
    %74 = vector.broadcast %cst_22 : f32 to vector<16x384xf32>
    %75 = arith.addf %74, %73 : vector<16x384xf32>
    %76 = arith.divf %74, %75 : vector<16x384xf32>
    %77 = vector.extract_strided_slice %70 {offsets = [0, 384], sizes = [16, 128], strides = [1, 1]} : vector<16x512xf32> to vector<16x128xf32>
    %78 = math.tanh %77 : vector<16x128xf32>
    %79 = vector.extract_strided_slice %76 {offsets = [0, 0], sizes = [16, 128], strides = [1, 1]} : vector<16x384xf32> to vector<16x128xf32>
    %80 = vector.extract_strided_slice %76 {offsets = [0, 128], sizes = [16, 128], strides = [1, 1]} : vector<16x384xf32> to vector<16x128xf32>
    %81 = vector.extract_strided_slice %76 {offsets = [0, 256], sizes = [16, 128], strides = [1, 1]} : vector<16x384xf32> to vector<16x128xf32>
    %82 = arith.mulf %80, %58 : vector<16x128xf32>
    %83 = arith.mulf %79, %78 : vector<16x128xf32>
    %84 = arith.addf %82, %83 : vector<16x128xf32>
    %85 = math.tanh %84 : vector<16x128xf32>
    %86 = arith.mulf %81, %85 : vector<16x128xf32>
    %87 = arith.truncf %86 : vector<16x128xf32> to vector<16x128xbf16>
    %88 = arith.index_cast %65 : i32 to index
    %c0_23 = arith.constant 0 : index
    %89 = vector.load %arg7[%88, %c0_23] : memref<128x128xbf16, #tpu.memory_space<vmem>>, vector<16x128xbf16>
    tpu.vector_store %arg7[%88, %c0_23], %87 {strides = array<i32>} : memref<128x128xbf16, #tpu.memory_space<vmem>>, vector<16x128xbf16>,
    %c3_i32 = arith.constant 3 : i32
    %c16_i32_24 = arith.constant 16 : i32
    %90 = arith.muli %c3_i32, %c16_i32_24 : i32
    %91 = tpu.assume_multiple %90, 16 : i32
    %92 = arith.index_cast %91 : i32 to index
    %c0_25 = arith.constant 0 : index
    %93 = vector.load %arg8[%92, %c0_25] : memref<128x512xf32, #tpu.memory_space<vmem>>, vector<16x512xf32>
    %94 = arith.truncf %86 : vector<16x128xf32> to vector<16x128xbf16>
    %cst_26 = arith.constant dense<0.000000e+00> : vector<16x512xf32>
    %95 = tpu.matmul %94, %9, %cst_26 {dimension_numbers = #tpu.dot_dimension_numbers<[1], [0], [0], [1], [0, 0, 1, 1], [], []>} : vector<16x128xbf16>, vector<128x512xbf16>, vector<16x512xf32> -> vector<16x512xf32>
    %96 = arith.addf %93, %95 : vector<16x512xf32>
    %97 = vector.extract_strided_slice %96 {offsets = [0, 0], sizes = [16, 384], strides = [1, 1]} : vector<16x512xf32> to vector<16x384xf32>
    %98 = arith.negf %97 : vector<16x384xf32>
    %99 = math.exp %98 : vector<16x384xf32>
    %cst_27 = arith.constant 1.000000e+00 : f32
    %100 = vector.broadcast %cst_27 : f32 to vector<16x384xf32>
    %101 = arith.addf %100, %99 : vector<16x384xf32>
    %102 = arith.divf %100, %101 : vector<16x384xf32>
    %103 = vector.extract_strided_slice %96 {offsets = [0, 384], sizes = [16, 128], strides = [1, 1]} : vector<16x512xf32> to vector<16x128xf32>
    %104 = math.tanh %103 : vector<16x128xf32>
    %105 = vector.extract_strided_slice %102 {offsets = [0, 0], sizes = [16, 128], strides = [1, 1]} : vector<16x384xf32> to vector<16x128xf32>
    %106 = vector.extract_strided_slice %102 {offsets = [0, 128], sizes = [16, 128], strides = [1, 1]} : vector<16x384xf32> to vector<16x128xf32>
    %107 = vector.extract_strided_slice %102 {offsets = [0, 256], sizes = [16, 128], strides = [1, 1]} : vector<16x384xf32> to vector<16x128xf32>
    %108 = arith.mulf %106, %84 : vector<16x128xf32>
    %109 = arith.mulf %105, %104 : vector<16x128xf32>
    %110 = arith.addf %108, %109 : vector<16x128xf32>
    %111 = math.tanh %110 : vector<16x128xf32>
    %112 = arith.mulf %107, %111 : vector<16x128xf32>
    %113 = arith.truncf %112 : vector<16x128xf32> to vector<16x128xbf16>
    %114 = arith.index_cast %91 : i32 to index
    %c0_28 = arith.constant 0 : index
    %115 = vector.load %arg7[%114, %c0_28] : memref<128x128xbf16, #tpu.memory_space<vmem>>, vector<16x128xbf16>
    tpu.vector_store %arg7[%114, %c0_28], %113 {strides = array<i32>} : memref<128x128xbf16, #tpu.memory_space<vmem>>, vector<16x128xbf16>,
    %c4_i32 = arith.constant 4 : i32
    %c16_i32_29 = arith.constant 16 : i32
    %116 = arith.muli %c4_i32, %c16_i32_29 : i32
    %117 = tpu.assume_multiple %116, 16 : i32
    %118 = arith.index_cast %117 : i32 to index
    %c0_30 = arith.constant 0 : index
    %119 = vector.load %arg8[%118, %c0_30] : memref<128x512xf32, #tpu.memory_space<vmem>>, vector<16x512xf32>
    %120 = arith.truncf %112 : vector<16x128xf32> to vector<16x128xbf16>
    %cst_31 = arith.constant dense<0.000000e+00> : vector<16x512xf32>
    %121 = tpu.matmul %120, %9, %cst_31 {dimension_numbers = #tpu.dot_dimension_numbers<[1], [0], [0], [1], [0, 0, 1, 1], [], []>} : vector<16x128xbf16>, vector<128x512xbf16>, vector<16x512xf32> -> vector<16x512xf32>
    %122 = arith.addf %119, %121 : vector<16x512xf32>
    %123 = vector.extract_strided_slice %122 {offsets = [0, 0], sizes = [16, 384], strides = [1, 1]} : vector<16x512xf32> to vector<16x384xf32>
    %124 = arith.negf %123 : vector<16x384xf32>
    %125 = math.exp %124 : vector<16x384xf32>
    %cst_32 = arith.constant 1.000000e+00 : f32
    %126 = vector.broadcast %cst_32 : f32 to vector<16x384xf32>
    %127 = arith.addf %126, %125 : vector<16x384xf32>
    %128 = arith.divf %126, %127 : vector<16x384xf32>
    %129 = vector.extract_strided_slice %122 {offsets = [0, 384], sizes = [16, 128], strides = [1, 1]} : vector<16x512xf32> to vector<16x128xf32>
    %130 = math.tanh %129 : vector<16x128xf32>
    %131 = vector.extract_strided_slice %128 {offsets = [0, 0], sizes = [16, 128], strides = [1, 1]} : vector<16x384xf32> to vector<16x128xf32>
    %132 = vector.extract_strided_slice %128 {offsets = [0, 128], sizes = [16, 128], strides = [1, 1]} : vector<16x384xf32> to vector<16x128xf32>
    %133 = vector.extract_strided_slice %128 {offsets = [0, 256], sizes = [16, 128], strides = [1, 1]} : vector<16x384xf32> to vector<16x128xf32>
    %134 = arith.mulf %132, %110 : vector<16x128xf32>
    %135 = arith.mulf %131, %130 : vector<16x128xf32>
    %136 = arith.addf %134, %135 : vector<16x128xf32>
    %137 = math.tanh %136 : vector<16x128xf32>
    %138 = arith.mulf %133, %137 : vector<16x128xf32>
    %139 = arith.truncf %138 : vector<16x128xf32> to vector<16x128xbf16>
    %140 = arith.index_cast %117 : i32 to index
    %c0_33 = arith.constant 0 : index
    %141 = vector.load %arg7[%140, %c0_33] : memref<128x128xbf16, #tpu.memory_space<vmem>>, vector<16x128xbf16>
    tpu.vector_store %arg7[%140, %c0_33], %139 {strides = array<i32>} : memref<128x128xbf16, #tpu.memory_space<vmem>>, vector<16x128xbf16>,
    %c5_i32 = arith.constant 5 : i32
    %c16_i32_34 = arith.constant 16 : i32
    %142 = arith.muli %c5_i32, %c16_i32_34 : i32
    %143 = tpu.assume_multiple %142, 16 : i32
    %144 = arith.index_cast %143 : i32 to index
    %c0_35 = arith.constant 0 : index
    %145 = vector.load %arg8[%144, %c0_35] : memref<128x512xf32, #tpu.memory_space<vmem>>, vector<16x512xf32>
    %146 = arith.truncf %138 : vector<16x128xf32> to vector<16x128xbf16>
    %cst_36 = arith.constant dense<0.000000e+00> : vector<16x512xf32>
    %147 = tpu.matmul %146, %9, %cst_36 {dimension_numbers = #tpu.dot_dimension_numbers<[1], [0], [0], [1], [0, 0, 1, 1], [], []>} : vector<16x128xbf16>, vector<128x512xbf16>, vector<16x512xf32> -> vector<16x512xf32>
    %148 = arith.addf %145, %147 : vector<16x512xf32>
    %149 = vector.extract_strided_slice %148 {offsets = [0, 0], sizes = [16, 384], strides = [1, 1]} : vector<16x512xf32> to vector<16x384xf32>
    %150 = arith.negf %149 : vector<16x384xf32>
    %151 = math.exp %150 : vector<16x384xf32>
    %cst_37 = arith.constant 1.000000e+00 : f32
    %152 = vector.broadcast %cst_37 : f32 to vector<16x384xf32>
    %153 = arith.addf %152, %151 : vector<16x384xf32>
    %154 = arith.divf %152, %153 : vector<16x384xf32>
    %155 = vector.extract_strided_slice %148 {offsets = [0, 384], sizes = [16, 128], strides = [1, 1]} : vector<16x512xf32> to vector<16x128xf32>
    %156 = math.tanh %155 : vector<16x128xf32>
    %157 = vector.extract_strided_slice %154 {offsets = [0, 0], sizes = [16, 128], strides = [1, 1]} : vector<16x384xf32> to vector<16x128xf32>
    %158 = vector.extract_strided_slice %154 {offsets = [0, 128], sizes = [16, 128], strides = [1, 1]} : vector<16x384xf32> to vector<16x128xf32>
    %159 = vector.extract_strided_slice %154 {offsets = [0, 256], sizes = [16, 128], strides = [1, 1]} : vector<16x384xf32> to vector<16x128xf32>
    %160 = arith.mulf %158, %136 : vector<16x128xf32>
    %161 = arith.mulf %157, %156 : vector<16x128xf32>
    %162 = arith.addf %160, %161 : vector<16x128xf32>
    %163 = math.tanh %162 : vector<16x128xf32>
    %164 = arith.mulf %159, %163 : vector<16x128xf32>
    %165 = arith.truncf %164 : vector<16x128xf32> to vector<16x128xbf16>
    %166 = arith.index_cast %143 : i32 to index
    %c0_38 = arith.constant 0 : index
    %167 = vector.load %arg7[%166, %c0_38] : memref<128x128xbf16, #tpu.memory_space<vmem>>, vector<16x128xbf16>
    tpu.vector_store %arg7[%166, %c0_38], %165 {strides = array<i32>} : memref<128x128xbf16, #tpu.memory_space<vmem>>, vector<16x128xbf16>,
    %c6_i32 = arith.constant 6 : i32
    %c16_i32_39 = arith.constant 16 : i32
    %168 = arith.muli %c6_i32, %c16_i32_39 : i32
    %169 = tpu.assume_multiple %168, 16 : i32
    %170 = arith.index_cast %169 : i32 to index
    %c0_40 = arith.constant 0 : index
    %171 = vector.load %arg8[%170, %c0_40] : memref<128x512xf32, #tpu.memory_space<vmem>>, vector<16x512xf32>
    %172 = arith.truncf %164 : vector<16x128xf32> to vector<16x128xbf16>
    %cst_41 = arith.constant dense<0.000000e+00> : vector<16x512xf32>
    %173 = tpu.matmul %172, %9, %cst_41 {dimension_numbers = #tpu.dot_dimension_numbers<[1], [0], [0], [1], [0, 0, 1, 1], [], []>} : vector<16x128xbf16>, vector<128x512xbf16>, vector<16x512xf32> -> vector<16x512xf32>
    %174 = arith.addf %171, %173 : vector<16x512xf32>
    %175 = vector.extract_strided_slice %174 {offsets = [0, 0], sizes = [16, 384], strides = [1, 1]} : vector<16x512xf32> to vector<16x384xf32>
    %176 = arith.negf %175 : vector<16x384xf32>
    %177 = math.exp %176 : vector<16x384xf32>
    %cst_42 = arith.constant 1.000000e+00 : f32
    %178 = vector.broadcast %cst_42 : f32 to vector<16x384xf32>
    %179 = arith.addf %178, %177 : vector<16x384xf32>
    %180 = arith.divf %178, %179 : vector<16x384xf32>
    %181 = vector.extract_strided_slice %174 {offsets = [0, 384], sizes = [16, 128], strides = [1, 1]} : vector<16x512xf32> to vector<16x128xf32>
    %182 = math.tanh %181 : vector<16x128xf32>
    %183 = vector.extract_strided_slice %180 {offsets = [0, 0], sizes = [16, 128], strides = [1, 1]} : vector<16x384xf32> to vector<16x128xf32>
    %184 = vector.extract_strided_slice %180 {offsets = [0, 128], sizes = [16, 128], strides = [1, 1]} : vector<16x384xf32> to vector<16x128xf32>
    %185 = vector.extract_strided_slice %180 {offsets = [0, 256], sizes = [16, 128], strides = [1, 1]} : vector<16x384xf32> to vector<16x128xf32>
    %186 = arith.mulf %184, %162 : vector<16x128xf32>
    %187 = arith.mulf %183, %182 : vector<16x128xf32>
    %188 = arith.addf %186, %187 : vector<16x128xf32>
    %189 = math.tanh %188 : vector<16x128xf32>
    %190 = arith.mulf %185, %189 : vector<16x128xf32>
    %191 = arith.truncf %190 : vector<16x128xf32> to vector<16x128xbf16>
    %192 = arith.index_cast %169 : i32 to index
    %c0_43 = arith.constant 0 : index
    %193 = vector.load %arg7[%192, %c0_43] : memref<128x128xbf16, #tpu.memory_space<vmem>>, vector<16x128xbf16>
    tpu.vector_store %arg7[%192, %c0_43], %191 {strides = array<i32>} : memref<128x128xbf16, #tpu.memory_space<vmem>>, vector<16x128xbf16>,
    %c7_i32 = arith.constant 7 : i32
    %c16_i32_44 = arith.constant 16 : i32
    %194 = arith.muli %c7_i32, %c16_i32_44 : i32
    %195 = tpu.assume_multiple %194, 16 : i32
    %196 = arith.index_cast %195 : i32 to index
    %c0_45 = arith.constant 0 : index
    %197 = vector.load %arg8[%196, %c0_45] : memref<128x512xf32, #tpu.memory_space<vmem>>, vector<16x512xf32>
    %198 = arith.truncf %190 : vector<16x128xf32> to vector<16x128xbf16>
    %cst_46 = arith.constant dense<0.000000e+00> : vector<16x512xf32>
    %199 = tpu.matmul %198, %9, %cst_46 {dimension_numbers = #tpu.dot_dimension_numbers<[1], [0], [0], [1], [0, 0, 1, 1], [], []>} : vector<16x128xbf16>, vector<128x512xbf16>, vector<16x512xf32> -> vector<16x512xf32>
    %200 = arith.addf %197, %199 : vector<16x512xf32>
    %201 = vector.extract_strided_slice %200 {offsets = [0, 0], sizes = [16, 384], strides = [1, 1]} : vector<16x512xf32> to vector<16x384xf32>
    %202 = arith.negf %201 : vector<16x384xf32>
    %203 = math.exp %202 : vector<16x384xf32>
    %cst_47 = arith.constant 1.000000e+00 : f32
    %204 = vector.broadcast %cst_47 : f32 to vector<16x384xf32>
    %205 = arith.addf %204, %203 : vector<16x384xf32>
    %206 = arith.divf %204, %205 : vector<16x384xf32>
    %207 = vector.extract_strided_slice %200 {offsets = [0, 384], sizes = [16, 128], strides = [1, 1]} : vector<16x512xf32> to vector<16x128xf32>
    %208 = math.tanh %207 : vector<16x128xf32>
    %209 = vector.extract_strided_slice %206 {offsets = [0, 0], sizes = [16, 128], strides = [1, 1]} : vector<16x384xf32> to vector<16x128xf32>
    %210 = vector.extract_strided_slice %206 {offsets = [0, 128], sizes = [16, 128], strides = [1, 1]} : vector<16x384xf32> to vector<16x128xf32>
    %211 = vector.extract_strided_slice %206 {offsets = [0, 256], sizes = [16, 128], strides = [1, 1]} : vector<16x384xf32> to vector<16x128xf32>
    %212 = arith.mulf %210, %188 : vector<16x128xf32>
    %213 = arith.mulf %209, %208 : vector<16x128xf32>
    %214 = arith.addf %212, %213 : vector<16x128xf32>
    %215 = math.tanh %214 : vector<16x128xf32>
    %216 = arith.mulf %211, %215 : vector<16x128xf32>
    %217 = arith.truncf %216 : vector<16x128xf32> to vector<16x128xbf16>
    %218 = arith.index_cast %195 : i32 to index
    %c0_48 = arith.constant 0 : index
    %219 = vector.load %arg7[%218, %c0_48] : memref<128x128xbf16, #tpu.memory_space<vmem>>, vector<16x128xbf16>
    tpu.vector_store %arg7[%218, %c0_48], %217 {strides = array<i32>} : memref<128x128xbf16, #tpu.memory_space<vmem>>, vector<16x128xbf16>,
    %c8_i32 = arith.constant 8 : i32
    %c0_49 = arith.constant 0 : index
    %c0_50 = arith.constant 0 : index
    %c0_51 = arith.constant 0 : index
    %220 = vector.load %arg5[%c0_49, %c0_50, %c0_51] : memref<1x16x128xf32, #tpu.memory_space<vmem>>, vector<1x16x128xf32>
    %221 = vector.shape_cast %220 : vector<1x16x128xf32> to vector<16x128xf32>
    %222 = vector.shape_cast %216 : vector<16x128xf32> to vector<1x16x128xf32>
    tpu.vector_store %arg5[%c0_49, %c0_50, %c0_51], %222 {strides = array<i32>} : memref<1x16x128xf32, #tpu.memory_space<vmem>>, vector<1x16x128xf32>,
    %c0_52 = arith.constant 0 : index
    %c0_53 = arith.constant 0 : index
    %c0_54 = arith.constant 0 : index
    %223 = vector.load %arg6[%c0_52, %c0_53, %c0_54] : memref<1x16x128xf32, #tpu.memory_space<vmem>>, vector<1x16x128xf32>
    %224 = vector.shape_cast %223 : vector<1x16x128xf32> to vector<16x128xf32>
    %225 = vector.shape_cast %214 : vector<16x128xf32> to vector<1x16x128xf32>
    tpu.vector_store %arg6[%c0_52, %c0_53, %c0_54], %225 {strides = array<i32>} : memref<1x16x128xf32, #tpu.memory_space<vmem>>, vector<1x16x128xf32>,
    return
  }
  func.func @transform_0(%arg0: i32) -> (i32, i32) {
    %c0_i32 = arith.constant 0 : i32
    %c0_i32_0 = arith.constant 0 : i32
    %c0_i32_1 = arith.constant 0 : i32
    return %c0_i32, %c0_i32_0 : i32, i32
  }
  func.func @transform_1(%arg0: i32) -> (i32, i32, i32) {
    %c0_i32 = arith.constant 0 : i32
    %c0_i32_0 = arith.constant 0 : i32
    %c0_i32_1 = arith.constant 0 : i32
    return %arg0, %c0_i32, %c0_i32_0 : i32, i32, i32
  }
  func.func @transform_2(%arg0: i32) -> (i32, i32, i32) {
    %c0_i32 = arith.constant 0 : i32
    %c0_i32_0 = arith.constant 0 : i32
    %c0_i32_1 = arith.constant 0 : i32
    return %arg0, %c0_i32, %c0_i32_0 : i32, i32, i32
  }
  func.func @transform_3(%arg0: i32) -> (i32, i32, i32) {
    %c0_i32 = arith.constant 0 : i32
    %c0_i32_0 = arith.constant 0 : i32
    %c0_i32_1 = arith.constant 0 : i32
    return %arg0, %c0_i32, %c0_i32_0 : i32, i32, i32
  }
  func.func @transform_4(%arg0: i32) -> (i32, i32, i32) {
    %c0_i32 = arith.constant 0 : i32
    %c0_i32_0 = arith.constant 0 : i32
    %c0_i32_1 = arith.constant 0 : i32
    return %arg0, %c0_i32, %c0_i32_0 : i32, i32, i32
  }
  func.func @transform_5(%arg0: i32) -> (i32, i32, i32) {
    %c0_i32 = arith.constant 0 : i32
    %c0_i32_0 = arith.constant 0 : i32
    %c0_i32_1 = arith.constant 0 : i32
    return %arg0, %c0_i32, %c0_i32_0 : i32, i32, i32
  }
}

</mosaic_0001>

<bundles_post_ra>
// kernel: encoder_forward.1
= control target key start
LH: loop header
LB: loop body
LE: loop exit
PB: predicated region body
PF: predicated region fallthrough
CT: control target
= control target key end

     0   :  { %11 = vsyncpa [#allocation5], 0  ;;  %s4775_s0 = inlined_call_operand.vmem [shape: bf16[128,128], index: 0, kind: input, shape index: {}]   ;;  %s4776_s1 = inlined_call_operand.hbm [shape: bf16[2,128,512], index: 1, kind: input, shape index: {}]   ;;  %s4777_s2 = inlined_call_operand.hbm [shape: bf16[2,128,512], index: 2, kind: input, shape index: {}]   ;;  %s4778_s3 = inlined_call_operand.vmem [shape: f32[2,1,512], index: 3, kind: input, shape index: {}]   ;;  %s4779_s4 = inlined_call_operand.vmem [shape: f32[2,16,128], index: 4, kind: output, shape index: {0}]   ;;  %s4780_s5 = inlined_call_operand.vmem [shape: f32[2,16,128], index: 5, kind: output, shape index: {1}]  }
   0x1   :  { %13 = vsyncpa [#allocation5 + $0x1], 0 }
   0x2   :  { %14 = vsyncpa [#allocation7], 0 }
   0x3   :  { %16 = vsyncpa [#allocation7 + $0x1], 0  ;;  %s3791_s18 = smov 0   ;;  %s3793_s19 = smov 0  }
   0x4   :  { %s3795_s20 = smov 0   ;;  %s3797_s21 = smov 0  }
   0x5 LB: > { %s3810_s22 = sadd.s32 4294967295, %s3752_s21   ;;  %s3813_s23 = sadd.s32 1, %s3752_s21   ;;  %s3752_s21 = sphi %s3797_s21, %s4790_s21   ;;  %s3748_s20 = sphi %s3795_s20, %s4789_s20   ;;  %s3744_s19 = sphi %s3793_s19, %s4788_s19   ;;  %s3740_s18 = sphi %s3791_s18, %s4787_s18  }
   0x6   : > { %s47_s24 = ssub.s32 %s3752_s21, %s3813_s23  ;;  %s50_s25 = sadd.s32 1, %s3748_s20 }
   0x7   : > { %p48_p0 = scmp.eq.s32.totalorder %s47_s24, 0  ;;  %p57_p1 = scmp.ne.s32.totalorder %s3748_s20, %s3744_s19 }
   0x8   : > { %p58_p2 = scmp.eq.s32.totalorder %s3752_s21, 0  ;;  %p63_p3 = scmp.ne.s32.totalorder %s3744_s19, %s3740_s18 }
   0x9   : > { %s3823_s26 = scalar_select %p48_p0, %s3748_s20, %s50_s25  }
   0xa   : > { %p59_p4 = por %p58_p2, %p57_p1  ;;  %p64_p5 = scmp.eq.s32.totalorder %s3810_s22, 0 }
   0xb   : > { %p3176_p6 = scmp.lt.s32.totalorder %s3752_s21, 2  ;;  %s3832_s28 = sand.u32 1, %s3748_s20  }
   0xc   : > { %p3827_p7 = por %p64_p5, %p63_p3  ;;  %s2991_s29 = sshll.u32 %s3832_s28, 8 }
   0xd   : > { %s3161_s30 = sshll.u32 %s3752_s21, 12  ;;  %s198_s9 = scalar_lea.vmem [#allocation4], %s2991_s29 }
   0xe   : > { %s4782_s27 = scalar_select %p3827_p7, 1, 0 }
   0xf   : > { %s3841_s8 = scalar_lea.hbm %s4776_s1, %s3161_s30  ;;  %s205_s10 = sshll.u32 %s198_s9, 4  ;;  %s3845_s10 = int_to_ptr.vmem [resolvable:$true] %s205_s10 }
  0x10   : > { %p3847_p8 = pnand %p3176_p6, %p59_p4  ;;  %s195_s12 = scalar_lea.sflag [#allocation5], %s3832_s28 }
  0x11   : > { %s3654_s13 = scalar_lea.hbm %s3841_s8, 4096  ;;  %s3659_s16 = scalar_lea.hbm %s4776_s1, 8192 }
  0x12   : > { %p3655_p10 = scmp.ne.s32.totalorder %s3841_s8, %s3654_s13  ;;  %p3656_p11 = pneg %p3847_p8 }
  0x13   : > { %p3660_p0 = scmp.lt.u32.totalorder %s3841_s8, %s4776_s1  ;;  %p3661_p1 = scmp.lt.u32.totalorder %s3659_s16, %s3654_s13 }
  0x14   : > { %p3657_p12 = pnand %p3656_p11, %p3655_p10  ;;  %p3663_p3 = scmp.lt.u32.totalorder %s3654_s13, %s3841_s8 }
  0x15   : > { %p3662_p2 = por %p3661_p1, %p3660_p0 }
  0x16   : > { %p3658_p13 = pneg %p3657_p12 }
  0x17   : > { %p3664_p4 = por %p3663_p3, %p3662_p2 }
  0x19   : > { %p3665_p5 = pnand %p3664_p4, %p3658_p13 }
  0x1b   : > { %3668 = shalt.err (!%p3665_p5)
}
  0x1c   : > { %s3669_s24 = scalar_lea.vmem %s3845_s10, 4096  ;;  %s3754_s25 = smov [#allocation4]  }
  0x1d   : > { %p3670_p6 = scmp.ne.s32.totalorder %s3845_s10, %s3669_s24  ;;  %s3674_s6 = sshll.u32 %s3754_s25, 4  ;;  %s3675_s6 = int_to_ptr.vmem [resolvable:$false] %s3674_s6 }
  0x1e   : > { %s3676_s7 = scalar_lea.vmem %s3675_s6, 8192  ;;  %p3677_p9 = scmp.lt.s32.totalorder %s3845_s10, %s3675_s6 }
  0x1f   : > { %p3672_p10 = pnand %p3670_p6, %p3656_p11  ;;  %p3678_p0 = scmp.lt.s32.totalorder %s3676_s7, %s3669_s24 }
  0x21   : > { %p3673_p12 = pneg %p3672_p10  ;;  %p3679_p1 = por %p3678_p0, %p3677_p9 }
  0x23   : > { %p3680_p2 = pnand %p3679_p1, %p3673_p12 }
  0x25   : > { %3683 = shalt.err (!%p3680_p2)
}
  0x26   : > { %s3755_s9 = smov 256   ;;  %s3756_s13 = smov 16  }
  0x27   : > { %3172 = dma.hbm_to_vmem [thread:$0]  (!%p3847_p8), %s3841_s8, 4096, %s3845_s10, %s195_s12, %s3755_s9, %s3755_s9, %s3756_s13  }
  0x28   : > { %p241_p9 = scmp.lt.s32.totalorder %s3752_s21, 3  ;;  %s3889_s16 = scalar_lea.hbm %s4777_s2, %s3161_s30 }
  0x29   : > { %p4784_p13 = scmp.ge.s32.totalorder %s3752_s21, 1  ;;  %s219_s18 = scalar_lea.vmem [#allocation6], %s2991_s29 }
  0x2a   : > { %s226_s24 = sshll.u32 %s219_s18, 4  ;;  %s216_s8 = scalar_lea.sflag [#allocation7], %s3832_s28  ;;  %s3899_s24 = int_to_ptr.vmem [resolvable:$true] %s226_s24 }
  0x2b   : > { %p3893_p3 = pnand %p4784_p13, %p241_p9  ;;  %s3684_s10 = scalar_lea.hbm %s3889_s16, 4096 }
  0x2c   : > { %p3685_p4 = scmp.ne.s32.totalorder %s3889_s16, %s3684_s10  ;;  %s3689_s12 = scalar_lea.hbm %s4777_s2, 8192 }
  0x2d   : > { %p3690_p10 = scmp.lt.u32.totalorder %s3889_s16, %s4777_s2  ;;  %p3691_p12 = scmp.lt.u32.totalorder %s3689_s12, %s3684_s10 }
  0x2e   : > { %p3687_p5 = pnand %p3685_p4, %p3656_p11  ;;  %p3693_p1 = scmp.lt.u32.totalorder %s3684_s10, %s3889_s16 }
  0x2f   : > { %p3692_p0 = por %p3691_p12, %p3690_p10 }
  0x30   : > { %p3688_p6 = pneg %p3687_p5 }
  0x31   : > { %p3694_p2 = por %p3693_p1, %p3692_p0 }
  0x33   : > { %p3695_p9 = pnand %p3694_p2, %p3688_p6 }
  0x35   : > { %3698 = shalt.err (!%p3695_p9)
}
  0x36   : > { %s3699_s29 = scalar_lea.vmem %s3899_s24, 4096  ;;  %s3757_s7 = smov [#allocation6]  }
  0x37   : > { %p3700_p13 = scmp.ne.s32.totalorder %s3899_s24, %s3699_s29  ;;  %s3704_s14 = sshll.u32 %s3757_s7, 4  ;;  %s3705_s14 = int_to_ptr.vmem [resolvable:$false] %s3704_s14 }
  0x38   : > { %s3706_s15 = scalar_lea.vmem %s3705_s14, 8192  ;;  %p3707_p7 = scmp.lt.s32.totalorder %s3899_s24, %s3705_s14 }
  0x39   : > { %p3702_p4 = pnand %p3700_p13, %p3656_p11  ;;  %p3708_p10 = scmp.lt.s32.totalorder %s3706_s15, %s3699_s29 }
  0x3b   : > { %p3703_p5 = pneg %p3702_p4  ;;  %p3709_p12 = por %p3708_p10, %p3707_p7 }
  0x3d   : > { %p3710_p0 = pnand %p3709_p12, %p3703_p5 }
  0x3f   : > { %3713 = shalt.err (!%p3710_p0)
}
  0x40   : > { %3175 = dma.hbm_to_vmem [thread:$0]  (!%p3847_p8), %s3889_s16, 4096, %s3899_s24, %s216_s8, %s3755_s9, %s3755_s9, %s3756_s13  }
  0x41   : > { %245 = sbr.rel (%p3893_p3) target bundleno = 2832 (0xb10), region = 36  ;;  %s247_s18 = sand.u32 (!%p3893_p3), 1, %s3744_s19  }
  0x42   : > { %s2998_s10 = sshll.u32 (!%p3893_p3), %s247_s18, 8  ;;  %s248_s21 = scalar_lea.sflag (!%p3893_p3), [#allocation5], %s247_s18 }
  0x43   : > { %s3933_s30 = scalar_lea.vmem (!%p3893_p3), [#allocation4], %s2998_s10  ;;  %p4786_p7 = scmp.ne.s32.totalorder (!%p3893_p3), %s4782_s27, 0 }
  0x48   : > { %3731 = dma.done.wait (%p4786_p7), %s248_s21, 4096  }
  0x49   : > { %3733 = vsyncadd (%p4786_p7), %s248_s21, 4294963200  ;;  %s257_s28 = scalar_lea.sflag [#allocation7], %s247_s18  ;;  %s3939_s11 = scalar_lea.vmem [#allocation6], %s2998_s10 }
  0x4a   : > { %3735 = dma.done.wait (%p4786_p7), %s257_s28, 4096  }
  0x4b   : > { %3737 = vsyncadd (%p4786_p7), %s257_s28, 4294963200  ;;  %p301_p8 = scmp.lt.s32.totalorder %s3810_s22, 1  ;;  %p3005_p11 = scmp.ne.s32.totalorder %s3810_s22, 0 }
  0x4c   : > { %v3214_v1 = vld [vmem:[%s3933_s30 + $0x4] ss:$16 sps:$4 sm:$0xff] (!%p3005_p11)   ;;  %v3216_v2 = vld [vmem:[%s3933_s30 + $0xc] ss:$16 sps:$4 sm:$0xff] (!%p3005_p11)   ;;  %v3758_v3 = vmov (!%p3005_p11), 0   ;;  %v370_v42 = vlaneseq (!%p3005_p11) }
  0x4d   : > { %s302_s9 = scalar_select %p301_p8, %s3810_s22, 1 }
  0x4e   : > { %320 = sbr.rel (%p3005_p11) target bundleno = 385 (0x181), region = 48  ;;  %630 = vmatprep.mubr.bf16.mxu0 (!%p3005_p11), %v3758_v3  ;;  %743 = vmatprep.mubr.bf16.mxu1 (!%p3005_p11), %v3758_v3  ;;  %v3218_v4 = vld [vmem:[%s3933_s30] ss:$16 sps:$4 sm:$0xff] (!%p3005_p11)   ;;  %v3219_v5 = vld [vmem:[%s3933_s30 + $0x8] ss:$16 sps:$4 sm:$0xff] (!%p3005_p11)   ;;  %v371_v43 = vshrl.u32 (!%p3005_p11), %v370_v42, 7 }
  0x4f   : > { %s3000_s13 = sshll.u32 %s302_s9, 2  ;;  %s3163_s16 = sshll.u32 %s302_s9, 4  ;;  %598 = vmatprep.subr.bf16.mxu0 (!%p3005_p11), %v3214_v1  ;;  %711 = vmatprep.subr.bf16.mxu1 (!%p3005_p11), %v3216_v2  ;;  %v3220_v6 = vld [vmem:[%s3933_s30 + $0x24] ss:$16 sps:$4 sm:$0xff] (!%p3005_p11)   ;;  %v3222_v7 = vld [vmem:[%s3933_s30 + $0x2c] ss:$16 sps:$4 sm:$0xff] (!%p3005_p11)  }
  0x50   : > { %s304_s8 = scalar_lea.vmem %s4778_s3, %s3000_s13  ;;  %s3953_s6 = scalar_lea.vmem %s4779_s4, %s3163_s16  ;;  %599 = vmatpush1.bf16.msra.mxu0 (!%p3005_p11), %v3218_v4  ;;  %712 = vmatpush1.bf16.msra.mxu1 (!%p3005_p11), %v3219_v5  ;;  %v3224_v8 = vld [vmem:[%s3933_s30 + $0x20] ss:$16 sps:$4 sm:$0xff] (!%p3005_p11)   ;;  %v3225_v9 = vld [vmem:[%s3933_s30 + $0x28] ss:$16 sps:$4 sm:$0xff] (!%p3005_p11)   ;;  %v3226_v10 = vld [vmem:[%s3933_s30 + $0x44] ss:$16 sps:$4 sm:$0xff] (!%p3005_p11)  }
  0x51   : > { %s3958_s27 = scalar_lea.vmem %s4780_s5, %s3163_s16  ;;  %v3960_v0 = vld [vmem:[%s304_s8] sm:$0xf]  ;;  %600 = vmatprep.subr.bf16.mxu0 (!%p3005_p11), %v3220_v6  ;;  %713 = vmatprep.subr.bf16.mxu1 (!%p3005_p11), %v3222_v7  ;;  %v3228_v11 = vld [vmem:[%s3933_s30 + $0x4c] ss:$16 sps:$4 sm:$0xff] (!%p3005_p11)   ;;  %v3231_v13 = vld [vmem:[%s3933_s30 + $0x48] ss:$16 sps:$4 sm:$0xff] (!%p3005_p11)  }
  0x52   : > { %v3230_v12 = vld [vmem:[%s3933_s30 + $0x40] ss:$16 sps:$4 sm:$0xff] (!%p3005_p11)   ;;  %v3232_v14 = vld [vmem:[%s3933_s30 + $0x64] ss:$16 sps:$4 sm:$0xff] (!%p3005_p11)   ;;  %v3234_v15 = vld [vmem:[%s3933_s30 + $0x6c] ss:$16 sps:$4 sm:$0xff] (!%p3005_p11)  }
  0x53   : > { %v3236_v16 = vld [vmem:[%s3933_s30 + $0x60] ss:$16 sps:$4 sm:$0xff] (!%p3005_p11)   ;;  %v3237_v17 = vld [vmem:[%s3933_s30 + $0x68] ss:$16 sps:$4 sm:$0xff] (!%p3005_p11)   ;;  %v3238_v18 = vld [vmem:[%s3933_s30 + $0x84] ss:$16 sps:$4 sm:$0xff] (!%p3005_p11)  }
  0x54   : > { %601 = vmatpush1.bf16.msra.mxu0 (!%p3005_p11), %v3224_v8  ;;  %714 = vmatpush1.bf16.msra.mxu1 (!%p3005_p11), %v3225_v9  ;;  %v3240_v19 = vld [vmem:[%s3933_s30 + $0x8c] ss:$16 sps:$4 sm:$0xff] (!%p3005_p11)   ;;  %v3242_v20 = vld [vmem:[%s3933_s30 + $0x80] ss:$16 sps:$4 sm:$0xff] (!%p3005_p11)   ;;  %v3243_v21 = vld [vmem:[%s3933_s30 + $0x88] ss:$16 sps:$4 sm:$0xff] (!%p3005_p11)  }
  0x55   : > { %602 = vmatprep.subr.bf16.mxu0 %v3226_v10  ;;  %715 = vmatprep.subr.bf16.mxu1 %v3228_v11  ;;  %v3244_v22 = vld [vmem:[%s3933_s30 + $0xa4] ss:$16 sps:$4 sm:$0xff]   ;;  %v3246_v23 = vld [vmem:[%s3933_s30 + $0xac] ss:$16 sps:$4 sm:$0xff]   ;;  %v3248_v24 = vld [vmem:[%s3933_s30 + $0xa0] ss:$16 sps:$4 sm:$0xff]  }
  0x56   : > { %v3249_v25 = vld [vmem:[%s3933_s30 + $0xa8] ss:$16 sps:$4 sm:$0xff]   ;;  %v3250_v26 = vld [vmem:[%s3933_s30 + $0xc4] ss:$16 sps:$4 sm:$0xff]   ;;  %v3252_v27 = vld [vmem:[%s3933_s30 + $0xcc] ss:$16 sps:$4 sm:$0xff]  }
  0x57   : > { %v3254_v28 = vld [vmem:[%s3933_s30 + $0xc0] ss:$16 sps:$4 sm:$0xff]   ;;  %v3255_v29 = vld [vmem:[%s3933_s30 + $0xc8] ss:$16 sps:$4 sm:$0xff]   ;;  %v3256_v30 = vld [vmem:[%s3933_s30 + $0xe4] ss:$16 sps:$4 sm:$0xff]  }
  0x58   : > { %603 = vmatpush1.bf16.msra.mxu0 %v3230_v12  ;;  %716 = vmatpush1.bf16.msra.mxu1 %v3231_v13  ;;  %v3258_v31 = vld [vmem:[%s3933_s30 + $0xec] ss:$16 sps:$4 sm:$0xff]   ;;  %v3260_v32 = vld [vmem:[%s3933_s30 + $0xe0] ss:$16 sps:$4 sm:$0xff]   ;;  %v3261_v33 = vld [vmem:[%s3933_s30 + $0xe8] ss:$16 sps:$4 sm:$0xff]  }
  0x59   : > { %604 = vmatprep.subr.bf16.mxu0 %v3232_v14  ;;  %717 = vmatprep.subr.bf16.mxu1 %v3234_v15  ;;  %v3262_v34 = vld [vmem:[%s4775_s0] sm:$0xff]   ;;  %v3263_v35 = vld [vmem:[%s4775_s0 + $0x8] sm:$0xff]   ;;  %v3264_v36 = vld [vmem:[%s4775_s0 + $0x10] sm:$0xff]   ;;  %v372_v44 = vsub.s32 0, %v371_v43  ;;  %v380_v45 = vsub.s32 2, %v371_v43  ;;  %v376_v46 = vsub.s32 1, %v371_v43 }
  0x5a   : > { %v3265_v37 = vld [vmem:[%s4775_s0 + $0x18] sm:$0xff]   ;;  %v3266_v38 = vld [vmem:[%s4775_s0 + $0x20] sm:$0xff]   ;;  %v3267_v39 = vld [vmem:[%s4775_s0 + $0x28] sm:$0xff]   ;;  %v384_v47 = vsub.s32 3, %v371_v43 }
  0x5b   : > { %v3268_v40 = vld [vmem:[%s4775_s0 + $0x30] sm:$0xff]   ;;  %v3269_v41 = vld [vmem:[%s4775_s0 + $0x38] sm:$0xff]   ;;  %v4036_v48 = vrot.slane %v3960_v0, %v372_v44  ;;  %v4039_v49 = vrot.slane %v3960_v0, %v380_v45  ;;  %v4042_v50 = vrot.slane %v3960_v0, %v376_v46 }
  0x5c   : > { %605 = vmatpush1.bf16.msra.mxu0 %v3236_v16  ;;  %718 = vmatpush1.bf16.msra.mxu1 %v3237_v17  ;;  %v4045_v51 = vrot.slane %v3960_v0, %v384_v47 }
  0x5d   : > { %606 = vmatprep.subr.bf16.mxu0 %v3238_v18  ;;  %719 = vmatprep.subr.bf16.mxu1 %v3240_v19 }
  0x60   : > { %607 = vmatpush1.bf16.msra.mxu0 %v3242_v20  ;;  %720 = vmatpush1.bf16.msra.mxu1 %v3243_v21 }
  0x61   : > { %608 = vmatprep.subr.bf16.mxu0 %v3244_v22  ;;  %721 = vmatprep.subr.bf16.mxu1 %v3246_v23 }
  0x64   : > { %609 = vmatpush1.bf16.msra.mxu0 %v3248_v24  ;;  %722 = vmatpush1.bf16.msra.mxu1 %v3249_v25 }
  0x65   : > { %610 = vmatprep.subr.bf16.mxu0 %v3250_v26  ;;  %723 = vmatprep.subr.bf16.mxu1 %v3252_v27 }
  0x68   : > { %611 = vmatpush1.bf16.msra.mxu0 %v3254_v28  ;;  %724 = vmatpush1.bf16.msra.mxu1 %v3255_v29 }
  0x69   : > { %612 = vmatprep.subr.bf16.mxu0 %v3256_v30  ;;  %725 = vmatprep.subr.bf16.mxu1 %v3258_v31 }
  0x6c   : > { %613 = vmatpush1.bf16.msra.mxu0 %v3260_v32  ;;  %726 = vmatpush1.bf16.msra.mxu1 %v3261_v33 }
  0x6f   : > { %631 = vmatmul.mubr.bf16.vlgmr.msra.gmra.mrb[0].mxu0 %v3262_v34  ;;  %744 = vmatmul.mubr.bf16.vlgmr.msra.gmra.mrb[0].mxu1 %v3262_v34 }
  0x70   : > { %640 = vmatprep.mubr.bf16.mxu0 %v3758_v3  ;;  %753 = vmatprep.mubr.bf16.mxu1 %v3758_v3 }
  0x77   : > { %641 = vmatmul.mubr.bf16.gmra.mrb[4].mxu0 %v3263_v35  ;;  %754 = vmatmul.mubr.bf16.gmra.mrb[4].mxu1 %v3263_v35 }
  0x78   : > { %650 = vmatprep.mubr.bf16.mxu0 %v3758_v3  ;;  %763 = vmatprep.mubr.bf16.mxu1 %v3758_v3 }
  0x7f   : > { %651 = vmatmul.mubr.bf16.gmra.mrb[8].mxu0 %v3264_v36  ;;  %764 = vmatmul.mubr.bf16.gmra.mrb[8].mxu1 %v3264_v36 }
  0x80   : > { %660 = vmatprep.mubr.bf16.mxu0 %v3758_v3  ;;  %773 = vmatprep.mubr.bf16.mxu1 %v3758_v3 }
  0x87   : > { %661 = vmatmul.mubr.bf16.gmra.mrb[12].mxu0 %v3265_v37  ;;  %774 = vmatmul.mubr.bf16.gmra.mrb[12].mxu1 %v3265_v37 }
  0x88   : > { %670 = vmatprep.mubr.bf16.mxu0 %v3758_v3  ;;  %783 = vmatprep.mubr.bf16.mxu1 %v3758_v3 }
  0x8f   : > { %671 = vmatmul.mubr.bf16.gmra.mrb[16].mxu0 %v3266_v38  ;;  %784 = vmatmul.mubr.bf16.gmra.mrb[16].mxu1 %v3266_v38 }
  0x90   : > { %680 = vmatprep.mubr.bf16.mxu0 %v3758_v3  ;;  %793 = vmatprep.mubr.bf16.mxu1 %v3758_v3 }
  0x97   : > { %681 = vmatmul.mubr.bf16.gmra.mrb[20].mxu0 %v3267_v39  ;;  %794 = vmatmul.mubr.bf16.gmra.mrb[20].mxu1 %v3267_v39 }
  0x98   : > { %690 = vmatprep.mubr.bf16.mxu0 %v3758_v3  ;;  %803 = vmatprep.mubr.bf16.mxu1 %v3758_v3 }
  0x9f   : > { %691 = vmatmul.mubr.bf16.gmra.mrb[24].mxu0 %v3268_v40  ;;  %804 = vmatmul.mubr.bf16.gmra.mrb[24].mxu1 %v3268_v40 }
  0xa0   : > { %700 = vmatprep.mubr.bf16.mxu0 %v3758_v3  ;;  %813 = vmatprep.mubr.bf16.mxu1 %v3758_v3 }
  0xa7   : > { %701 = vmatmul.mubr.bf16.gmra.mrb[28].mxu0 %v3269_v41  ;;  %814 = vmatmul.mubr.bf16.gmra.mrb[28].mxu1 %v3269_v41 }
 0x142   : > { %v632_v52 = vpop.f32.mrb[0].mxu0  ;;  %v745_v53 = vpop.f32.mrb[0].mxu1 }
 0x143   : > { %v633_v54 = vadd.f32 %v632_v52, %v4036_v48  ;;  %v746_v55 = vadd.f32 %v745_v53, %v4039_v49  ;;  %v634_v56 = vpop.f32.mrb[1].mxu0  ;;  %v747_v57 = vpop.f32.mrb[1].mxu1 }
 0x144   : > { %v635_v58 = vadd.f32 %v634_v56, %v4042_v50  ;;  %v748_v59 = vadd.f32 %v747_v57, %v4045_v51  ;;  %v636_v60 = vpop.f32.mrb[2].mxu0  ;;  %v749_v61 = vpop.f32.mrb[2].mxu1 }
 0x145   : > { %824 = vst [vmem:[#allocation3] sm:$0xff] %v633_v54  ;;  %826 = vst [vmem:[#allocation3 + $0x10] sm:$0xff] %v746_v55  ;;  %v637_v62 = vadd.f32 %v636_v60, %v4036_v48  ;;  %v750_v63 = vadd.f32 %v749_v61, %v4039_v49  ;;  %v638_v1 = vpop.f32.mrb[3].mxu0  ;;  %v751_v2 = vpop.f32.mrb[3].mxu1 }
 0x146   : > { %825 = vst [vmem:[#allocation3 + $0x8] sm:$0xff] %v635_v58  ;;  %827 = vst [vmem:[#allocation3 + $0x18] sm:$0xff] %v748_v59  ;;  %v639_v3 = vadd.f32 %v638_v1, %v4042_v50  ;;  %v752_v4 = vadd.f32 %v751_v2, %v4045_v51 }
 0x147   : > { %828 = vst [vmem:[#allocation3 + $0x20] sm:$0xff] %v637_v62  ;;  %830 = vst [vmem:[#allocation3 + $0x30] sm:$0xff] %v750_v63 }
 0x148   : > { %829 = vst [vmem:[#allocation3 + $0x28] sm:$0xff] %v639_v3  ;;  %831 = vst [vmem:[#allocation3 + $0x38] sm:$0xff] %v752_v4 }
 0x14a   : > { %v642_v5 = vpop.f32.mrb[4].mxu0  ;;  %v755_v6 = vpop.f32.mrb[4].mxu1 }
 0x14b   : > { %v643_v7 = vadd.f32 %v642_v5, %v4036_v48  ;;  %v756_v8 = vadd.f32 %v755_v6, %v4039_v49  ;;  %v644_v9 = vpop.f32.mrb[5].mxu0  ;;  %v757_v10 = vpop.f32.mrb[5].mxu1 }
 0x14c   : > { %v645_v11 = vadd.f32 %v644_v9, %v4042_v50  ;;  %v758_v12 = vadd.f32 %v757_v10, %v4045_v51  ;;  %v646_v13 = vpop.f32.mrb[6].mxu0  ;;  %v759_v14 = vpop.f32.mrb[6].mxu1 }
 0x14d   : > { %832 = vst [vmem:[#allocation3 + $0x40] sm:$0xff] %v643_v7  ;;  %834 = vst [vmem:[#allocation3 + $0x50] sm:$0xff] %v756_v8  ;;  %v647_v15 = vadd.f32 %v646_v13, %v4036_v48  ;;  %v760_v16 = vadd.f32 %v759_v14, %v4039_v49  ;;  %v648_v17 = vpop.f32.mrb[7].mxu0  ;;  %v761_v18 = vpop.f32.mrb[7].mxu1 }
 0x14e   : > { %833 = vst [vmem:[#allocation3 + $0x48] sm:$0xff] %v645_v11  ;;  %835 = vst [vmem:[#allocation3 + $0x58] sm:$0xff] %v758_v12  ;;  %v649_v19 = vadd.f32 %v648_v17, %v4042_v50  ;;  %v762_v20 = vadd.f32 %v761_v18, %v4045_v51 }
 0x14f   : > { %836 = vst [vmem:[#allocation3 + $0x60] sm:$0xff] %v647_v15  ;;  %838 = vst [vmem:[#allocation3 + $0x70] sm:$0xff] %v760_v16 }
 0x150   : > { %837 = vst [vmem:[#allocation3 + $0x68] sm:$0xff] %v649_v19  ;;  %839 = vst [vmem:[#allocation3 + $0x78] sm:$0xff] %v762_v20 }
 0x152   : > { %v652_v21 = vpop.f32.mrb[8].mxu0  ;;  %v765_v22 = vpop.f32.mrb[8].mxu1 }
 0x153   : > { %v653_v23 = vadd.f32 %v652_v21, %v4036_v48  ;;  %v766_v24 = vadd.f32 %v765_v22, %v4039_v49  ;;  %v654_v25 = vpop.f32.mrb[9].mxu0  ;;  %v767_v26 = vpop.f32.mrb[9].mxu1 }
 0x154   : > { %v655_v27 = vadd.f32 %v654_v25, %v4042_v50  ;;  %v768_v28 = vadd.f32 %v767_v26, %v4045_v51  ;;  %v656_v29 = vpop.f32.mrb[10].mxu0  ;;  %v769_v30 = vpop.f32.mrb[10].mxu1 }
 0x155   : > { %840 = vst [vmem:[#allocation3 + $0x80] sm:$0xff] %v653_v23  ;;  %842 = vst [vmem:[#allocation3 + $0x90] sm:$0xff] %v766_v24  ;;  %v657_v31 = vadd.f32 %v656_v29, %v4036_v48  ;;  %v770_v32 = vadd.f32 %v769_v30, %v4039_v49  ;;  %v658_v33 = vpop.f32.mrb[11].mxu0  ;;  %v771_v34 = vpop.f32.mrb[11].mxu1 }
 0x156   : > { %841 = vst [vmem:[#allocation3 + $0x88] sm:$0xff] %v655_v27  ;;  %843 = vst [vmem:[#allocation3 + $0x98] sm:$0xff] %v768_v28  ;;  %v659_v35 = vadd.f32 %v658_v33, %v4042_v50  ;;  %v772_v36 = vadd.f32 %v771_v34, %v4045_v51 }
 0x157   : > { %844 = vst [vmem:[#allocation3 + $0xa0] sm:$0xff] %v657_v31  ;;  %846 = vst [vmem:[#allocation3 + $0xb0] sm:$0xff] %v770_v32 }
 0x158   : > { %845 = vst [vmem:[#allocation3 + $0xa8] sm:$0xff] %v659_v35  ;;  %847 = vst [vmem:[#allocation3 + $0xb8] sm:$0xff] %v772_v36 }
 0x15a   : > { %v662_v37 = vpop.f32.mrb[12].mxu0  ;;  %v775_v38 = vpop.f32.mrb[12].mxu1 }
 0x15b   : > { %v663_v39 = vadd.f32 %v662_v37, %v4036_v48  ;;  %v776_v40 = vadd.f32 %v775_v38, %v4039_v49  ;;  %v664_v41 = vpop.f32.mrb[13].mxu0  ;;  %v777_v42 = vpop.f32.mrb[13].mxu1 }
 0x15c   : > { %v665_v43 = vadd.f32 %v664_v41, %v4042_v50  ;;  %v778_v44 = vadd.f32 %v777_v42, %v4045_v51  ;;  %v666_v45 = vpop.f32.mrb[14].mxu0  ;;  %v779_v46 = vpop.f32.mrb[14].mxu1 }
 0x15d   : > { %848 = vst [vmem:[#allocation3 + $0xc0] sm:$0xff] %v663_v39  ;;  %850 = vst [vmem:[#allocation3 + $0xd0] sm:$0xff] %v776_v40  ;;  %v667_v47 = vadd.f32 %v666_v45, %v4036_v48  ;;  %v780_v52 = vadd.f32 %v779_v46, %v4039_v49  ;;  %v668_v53 = vpop.f32.mrb[15].mxu0  ;;  %v781_v54 = vpop.f32.mrb[15].mxu1 }
 0x15e   : > { %849 = vst [vmem:[#allocation3 + $0xc8] sm:$0xff] %v665_v43  ;;  %851 = vst [vmem:[#allocation3 + $0xd8] sm:$0xff] %v778_v44  ;;  %v669_v55 = vadd.f32 %v668_v53, %v4042_v50  ;;  %v782_v56 = vadd.f32 %v781_v54, %v4045_v51 }
 0x15f   : > { %852 = vst [vmem:[#allocation3 + $0xe0] sm:$0xff] %v667_v47  ;;  %854 = vst [vmem:[#allocation3 + $0xf0] sm:$0xff] %v780_v52 }
 0x160   : > { %853 = vst [vmem:[#allocation3 + $0xe8] sm:$0xff] %v669_v55  ;;  %855 = vst [vmem:[#allocation3 + $0xf8] sm:$0xff] %v782_v56 }
 0x162   : > { %v672_v57 = vpop.f32.mrb[16].mxu0  ;;  %v785_v58 = vpop.f32.mrb[16].mxu1 }
 0x163   : > { %v673_v59 = vadd.f32 %v672_v57, %v4036_v48  ;;  %v786_v60 = vadd.f32 %v785_v58, %v4039_v49  ;;  %v674_v61 = vpop.f32.mrb[17].mxu0  ;;  %v787_v62 = vpop.f32.mrb[17].mxu1 }
 0x164   : > { %v675_v63 = vadd.f32 %v674_v61, %v4042_v50  ;;  %v788_v1 = vadd.f32 %v787_v62, %v4045_v51  ;;  %v676_v2 = vpop.f32.mrb[18].mxu0  ;;  %v789_v3 = vpop.f32.mrb[18].mxu1 }
 0x165   : > { %856 = vst [vmem:[#allocation3 + $0x100] sm:$0xff] %v673_v59  ;;  %858 = vst [vmem:[#allocation3 + $0x110] sm:$0xff] %v786_v60  ;;  %v677_v4 = vadd.f32 %v676_v2, %v4036_v48  ;;  %v790_v5 = vadd.f32 %v789_v3, %v4039_v49  ;;  %v678_v6 = vpop.f32.mrb[19].mxu0  ;;  %v791_v7 = vpop.f32.mrb[19].mxu1 }
 0x166   : > { %857 = vst [vmem:[#allocation3 + $0x108] sm:$0xff] %v675_v63  ;;  %859 = vst [vmem:[#allocation3 + $0x118] sm:$0xff] %v788_v1  ;;  %v679_v8 = vadd.f32 %v678_v6, %v4042_v50  ;;  %v792_v9 = vadd.f32 %v791_v7, %v4045_v51 }
 0x167   : > { %860 = vst [vmem:[#allocation3 + $0x120] sm:$0xff] %v677_v4  ;;  %862 = vst [vmem:[#allocation3 + $0x130] sm:$0xff] %v790_v5 }
 0x168   : > { %861 = vst [vmem:[#allocation3 + $0x128] sm:$0xff] %v679_v8  ;;  %863 = vst [vmem:[#allocation3 + $0x138] sm:$0xff] %v792_v9 }
 0x16a   : > { %v682_v10 = vpop.f32.mrb[20].mxu0  ;;  %v795_v11 = vpop.f32.mrb[20].mxu1 }
 0x16b   : > { %v683_v12 = vadd.f32 %v682_v10, %v4036_v48  ;;  %v796_v13 = vadd.f32 %v795_v11, %v4039_v49  ;;  %v684_v14 = vpop.f32.mrb[21].mxu0  ;;  %v797_v15 = vpop.f32.mrb[21].mxu1 }
 0x16c   : > { %v685_v16 = vadd.f32 %v684_v14, %v4042_v50  ;;  %v798_v17 = vadd.f32 %v797_v15, %v4045_v51  ;;  %v686_v18 = vpop.f32.mrb[22].mxu0  ;;  %v799_v19 = vpop.f32.mrb[22].mxu1 }
 0x16d   : > { %864 = vst [vmem:[#allocation3 + $0x140] sm:$0xff] %v683_v12  ;;  %866 = vst [vmem:[#allocation3 + $0x150] sm:$0xff] %v796_v13  ;;  %v687_v20 = vadd.f32 %v686_v18, %v4036_v48  ;;  %v800_v21 = vadd.f32 %v799_v19, %v4039_v49  ;;  %v688_v22 = vpop.f32.mrb[23].mxu0  ;;  %v801_v23 = vpop.f32.mrb[23].mxu1 }
 0x16e   : > { %865 = vst [vmem:[#allocation3 + $0x148] sm:$0xff] %v685_v16  ;;  %867 = vst [vmem:[#allocation3 + $0x158] sm:$0xff] %v798_v17  ;;  %v689_v24 = vadd.f32 %v688_v22, %v4042_v50  ;;  %v802_v25 = vadd.f32 %v801_v23, %v4045_v51 }
 0x16f   : > { %868 = vst [vmem:[#allocation3 + $0x160] sm:$0xff] %v687_v20  ;;  %870 = vst [vmem:[#allocation3 + $0x170] sm:$0xff] %v800_v21 }
 0x170   : > { %869 = vst [vmem:[#allocation3 + $0x168] sm:$0xff] %v689_v24  ;;  %871 = vst [vmem:[#allocation3 + $0x178] sm:$0xff] %v802_v25 }
 0x172   : > { %v692_v26 = vpop.f32.mrb[24].mxu0  ;;  %v805_v27 = vpop.f32.mrb[24].mxu1 }
 0x173   : > { %v693_v28 = vadd.f32 %v692_v26, %v4036_v48  ;;  %v806_v29 = vadd.f32 %v805_v27, %v4039_v49  ;;  %v694_v30 = vpop.f32.mrb[25].mxu0  ;;  %v807_v31 = vpop.f32.mrb[25].mxu1 }
 0x174   : > { %v695_v32 = vadd.f32 %v694_v30, %v4042_v50  ;;  %v808_v33 = vadd.f32 %v807_v31, %v4045_v51  ;;  %v696_v34 = vpop.f32.mrb[26].mxu0  ;;  %v809_v35 = vpop.f32.mrb[26].mxu1 }
 0x175   : > { %872 = vst [vmem:[#allocation3 + $0x180] sm:$0xff] %v693_v28  ;;  %874 = vst [vmem:[#allocation3 + $0x190] sm:$0xff] %v806_v29  ;;  %v697_v36 = vadd.f32 %v696_v34, %v4036_v48  ;;  %v810_v37 = vadd.f32 %v809_v35, %v4039_v49  ;;  %v698_v38 = vpop.f32.mrb[27].mxu0  ;;  %v811_v39 = vpop.f32.mrb[27].mxu1 }
 0x176   : > { %873 = vst [vmem:[#allocation3 + $0x188] sm:$0xff] %v695_v32  ;;  %875 = vst [vmem:[#allocation3 + $0x198] sm:$0xff] %v808_v33  ;;  %v699_v40 = vadd.f32 %v698_v38, %v4042_v50  ;;  %v812_v41 = vadd.f32 %v811_v39, %v4045_v51 }
 0x177   : > { %876 = vst [vmem:[#allocation3 + $0x1a0] sm:$0xff] %v697_v36  ;;  %878 = vst [vmem:[#allocation3 + $0x1b0] sm:$0xff] %v810_v37 }
 0x178   : > { %877 = vst [vmem:[#allocation3 + $0x1a8] sm:$0xff] %v699_v40  ;;  %879 = vst [vmem:[#allocation3 + $0x1b8] sm:$0xff] %v812_v41 }
 0x17a   : > { %v702_v42 = vpop.f32.mrb[28].mxu0  ;;  %v815_v43 = vpop.f32.mrb[28].mxu1 }
 0x17b   : > { %v703_v44 = vadd.f32 %v702_v42, %v4036_v48  ;;  %v816_v45 = vadd.f32 %v815_v43, %v4039_v49  ;;  %v704_v46 = vpop.f32.mrb[29].mxu0  ;;  %v817_v47 = vpop.f32.mrb[29].mxu1 }
 0x17c   : > { %v705_v52 = vadd.f32 %v704_v46, %v4042_v50  ;;  %v818_v53 = vadd.f32 %v817_v47, %v4045_v51  ;;  %v706_v54 = vpop.f32.mrb[30].mxu0  ;;  %v819_v55 = vpop.f32.mrb[30].mxu1 }
 0x17d   : > { %880 = vst [vmem:[#allocation3 + $0x1c0] sm:$0xff] %v703_v44  ;;  %882 = vst [vmem:[#allocation3 + $0x1d0] sm:$0xff] %v816_v45  ;;  %v707_v56 = vadd.f32 %v706_v54, %v4036_v48  ;;  %v820_v57 = vadd.f32 %v819_v55, %v4039_v49  ;;  %v708_v58 = vpop.f32.mrb[31].mxu0  ;;  %v821_v59 = vpop.f32.mrb[31].mxu1 }
 0x17e   : > { %881 = vst [vmem:[#allocation3 + $0x1c8] sm:$0xff] %v705_v52  ;;  %883 = vst [vmem:[#allocation3 + $0x1d8] sm:$0xff] %v818_v53  ;;  %v709_v60 = vadd.f32 %v708_v58, %v4042_v50  ;;  %v822_v61 = vadd.f32 %v821_v59, %v4045_v51 }
 0x17f   : > { %884 = vst [vmem:[#allocation3 + $0x1e0] sm:$0xff] %v707_v56  ;;  %886 = vst [vmem:[#allocation3 + $0x1f0] sm:$0xff] %v820_v57 }
 0x180   : > { %885 = vst [vmem:[#allocation3 + $0x1e8] sm:$0xff] %v709_v60  ;;  %887 = vst [vmem:[#allocation3 + $0x1f8] sm:$0xff] %v822_v61 }
 0x181 PF: > { %p3046_p3 = scmp.le.s32.totalorder %s3810_s22, 0 }
 0x182   : > { %v3270_v48 = vld [vmem:[%s3933_s30 + $0x4] ss:$16 sps:$4 sm:$0xff] (!%p3046_p3)   ;;  %v3272_v49 = vld [vmem:[%s3933_s30 + $0xc] ss:$16 sps:$4 sm:$0xff] (!%p3046_p3)   ;;  %v3759_v50 = vmov (!%p3046_p3), 0   ;;  %v933_v36 = vlaneseq (!%p3046_p3) }
 0x183   : > { %891 = sbr.rel (%p3046_p3) target bundleno = 694 (0x2b6), region = 52  ;;  %1145 = vmatprep.mubr.bf16.mxu0 (!%p3046_p3), %v3759_v50  ;;  %1258 = vmatprep.mubr.bf16.mxu1 (!%p3046_p3), %v3759_v50  ;;  %v3274_v51 = vld [vmem:[%s3933_s30] ss:$16 sps:$4 sm:$0xff] (!%p3046_p3)   ;;  %v3275_v62 = vld [vmem:[%s3933_s30 + $0x8] ss:$16 sps:$4 sm:$0xff] (!%p3046_p3)  }
 0x184   : > { %1113 = vmatprep.subr.bf16.mxu0 (!%p3046_p3), %v3270_v48  ;;  %1226 = vmatprep.subr.bf16.mxu1 (!%p3046_p3), %v3272_v49  ;;  %v3276_v63 = vld [vmem:[%s3933_s30 + $0x24] ss:$16 sps:$4 sm:$0xff] (!%p3046_p3)   ;;  %v3278_v1 = vld [vmem:[%s3933_s30 + $0x2c] ss:$16 sps:$4 sm:$0xff] (!%p3046_p3)   ;;  %v3280_v2 = vld [vmem:[%s3933_s30 + $0x20] ss:$16 sps:$4 sm:$0xff] (!%p3046_p3)  }
 0x185   : > { %1114 = vmatpush1.bf16.msra.mxu0 (!%p3046_p3), %v3274_v51  ;;  %1227 = vmatpush1.bf16.msra.mxu1 (!%p3046_p3), %v3275_v62  ;;  %v3281_v3 = vld [vmem:[%s3933_s30 + $0x28] ss:$16 sps:$4 sm:$0xff] (!%p3046_p3)   ;;  %v3282_v4 = vld [vmem:[%s3933_s30 + $0x44] ss:$16 sps:$4 sm:$0xff] (!%p3046_p3)   ;;  %v3284_v5 = vld [vmem:[%s3933_s30 + $0x4c] ss:$16 sps:$4 sm:$0xff] (!%p3046_p3)  }
 0x186   : > { %1115 = vmatprep.subr.bf16.mxu0 (!%p3046_p3), %v3276_v63  ;;  %1228 = vmatprep.subr.bf16.mxu1 (!%p3046_p3), %v3278_v1  ;;  %v3286_v6 = vld [vmem:[%s3933_s30 + $0x40] ss:$16 sps:$4 sm:$0xff] (!%p3046_p3)   ;;  %v3287_v7 = vld [vmem:[%s3933_s30 + $0x48] ss:$16 sps:$4 sm:$0xff] (!%p3046_p3)   ;;  %v3288_v8 = vld [vmem:[%s3933_s30 + $0x64] ss:$16 sps:$4 sm:$0xff] (!%p3046_p3)  }
 0x187   : > { %v3290_v9 = vld [vmem:[%s3933_s30 + $0x6c] ss:$16 sps:$4 sm:$0xff] (!%p3046_p3)   ;;  %v3292_v10 = vld [vmem:[%s3933_s30 + $0x60] ss:$16 sps:$4 sm:$0xff] (!%p3046_p3)   ;;  %v3293_v11 = vld [vmem:[%s3933_s30 + $0x68] ss:$16 sps:$4 sm:$0xff] (!%p3046_p3)  }
 0x188   : > { %v3294_v12 = vld [vmem:[%s3933_s30 + $0x84] ss:$16 sps:$4 sm:$0xff] (!%p3046_p3)   ;;  %v3296_v13 = vld [vmem:[%s3933_s30 + $0x8c] ss:$16 sps:$4 sm:$0xff] (!%p3046_p3)   ;;  %v3298_v14 = vld [vmem:[%s3933_s30 + $0x80] ss:$16 sps:$4 sm:$0xff] (!%p3046_p3)  }
 0x189   : > { %1116 = vmatpush1.bf16.msra.mxu0 (!%p3046_p3), %v3280_v2  ;;  %1229 = vmatpush1.bf16.msra.mxu1 (!%p3046_p3), %v3281_v3  ;;  %v3299_v15 = vld [vmem:[%s3933_s30 + $0x88] ss:$16 sps:$4 sm:$0xff] (!%p3046_p3)   ;;  %v3300_v16 = vld [vmem:[%s3933_s30 + $0xa4] ss:$16 sps:$4 sm:$0xff] (!%p3046_p3)   ;;  %v3302_v17 = vld [vmem:[%s3933_s30 + $0xac] ss:$16 sps:$4 sm:$0xff] (!%p3046_p3)  }
 0x18a   : > { %1117 = vmatprep.subr.bf16.mxu0 %v3282_v4  ;;  %1230 = vmatprep.subr.bf16.mxu1 %v3284_v5  ;;  %v3304_v18 = vld [vmem:[%s3933_s30 + $0xa0] ss:$16 sps:$4 sm:$0xff]   ;;  %v3305_v19 = vld [vmem:[%s3933_s30 + $0xa8] ss:$16 sps:$4 sm:$0xff]   ;;  %v3306_v20 = vld [vmem:[%s3933_s30 + $0xc4] ss:$16 sps:$4 sm:$0xff]  }
 0x18b   : > { %v3308_v21 = vld [vmem:[%s3933_s30 + $0xcc] ss:$16 sps:$4 sm:$0xff]   ;;  %v3310_v22 = vld [vmem:[%s3933_s30 + $0xc0] ss:$16 sps:$4 sm:$0xff]   ;;  %v3311_v23 = vld [vmem:[%s3933_s30 + $0xc8] ss:$16 sps:$4 sm:$0xff]  }
 0x18c   : > { %v3312_v24 = vld [vmem:[%s3933_s30 + $0xe4] ss:$16 sps:$4 sm:$0xff]   ;;  %v3314_v25 = vld [vmem:[%s3933_s30 + $0xec] ss:$16 sps:$4 sm:$0xff]   ;;  %v3316_v26 = vld [vmem:[%s3933_s30 + $0xe0] ss:$16 sps:$4 sm:$0xff]  }
 0x18d   : > { %1118 = vmatpush1.bf16.msra.mxu0 %v3286_v6  ;;  %1231 = vmatpush1.bf16.msra.mxu1 %v3287_v7  ;;  %v3317_v27 = vld [vmem:[%s3933_s30 + $0xe8] ss:$16 sps:$4 sm:$0xff]   ;;  %v892_v28 = vld [vmem:[#allocation2] sm:$0xff]  ;;  %v894_v30 = vld [vmem:[#allocation2 + $0x10] sm:$0xff]  ;;  %v934_v37 = vshrl.u32 %v933_v36, 7 }
 0x18e   : > { %1119 = vmatprep.subr.bf16.mxu0 %v3288_v8  ;;  %1232 = vmatprep.subr.bf16.mxu1 %v3290_v9  ;;  %v893_v29 = vld [vmem:[#allocation2 + $0x8] sm:$0xff]  ;;  %v895_v31 = vld [vmem:[#allocation2 + $0x18] sm:$0xff]  ;;  %v896_v32 = vld [vmem:[#allocation2 + $0x20] sm:$0xff] }
 0x18f   : > { %v897_v33 = vld [vmem:[#allocation2 + $0x28] sm:$0xff]  ;;  %v898_v34 = vld [vmem:[#allocation2 + $0x30] sm:$0xff]  ;;  %v899_v35 = vld [vmem:[#allocation2 + $0x38] sm:$0xff]  ;;  %v935_v38 = vsub.s32 0, %v934_v37  ;;  %v943_v39 = vsub.s32 2, %v934_v37  ;;  %v939_v40 = vsub.s32 1, %v934_v37 }
 0x190   : > { %v947_v41 = vsub.s32 3, %v934_v37 }
 0x191   : > { %1120 = vmatpush1.bf16.msra.mxu0 %v3292_v10  ;;  %1233 = vmatpush1.bf16.msra.mxu1 %v3293_v11  ;;  %v4161_v42 = vrot.slane %v3960_v0, %v935_v38  ;;  %v4164_v43 = vrot.slane %v3960_v0, %v943_v39  ;;  %v4167_v44 = vrot.slane %v3960_v0, %v939_v40 }
 0x192   : > { %1121 = vmatprep.subr.bf16.mxu0 %v3294_v12  ;;  %1234 = vmatprep.subr.bf16.mxu1 %v3296_v13  ;;  %v4170_v45 = vrot.slane %v3960_v0, %v947_v41 }
 0x195   : > { %1122 = vmatpush1.bf16.msra.mxu0 %v3298_v14  ;;  %1235 = vmatpush1.bf16.msra.mxu1 %v3299_v15 }
 0x196   : > { %1123 = vmatprep.subr.bf16.mxu0 %v3300_v16  ;;  %1236 = vmatprep.subr.bf16.mxu1 %v3302_v17 }
 0x199   : > { %1124 = vmatpush1.bf16.msra.mxu0 %v3304_v18  ;;  %1237 = vmatpush1.bf16.msra.mxu1 %v3305_v19 }
 0x19a   : > { %1125 = vmatprep.subr.bf16.mxu0 %v3306_v20  ;;  %1238 = vmatprep.subr.bf16.mxu1 %v3308_v21 }
 0x19d   : > { %1126 = vmatpush1.bf16.msra.mxu0 %v3310_v22  ;;  %1239 = vmatpush1.bf16.msra.mxu1 %v3311_v23 }
 0x19e   : > { %1127 = vmatprep.subr.bf16.mxu0 %v3312_v24  ;;  %1240 = vmatprep.subr.bf16.mxu1 %v3314_v25 }
 0x1a1   : > { %1128 = vmatpush1.bf16.msra.mxu0 %v3316_v26  ;;  %1241 = vmatpush1.bf16.msra.mxu1 %v3317_v27 }
 0x1a4   : > { %1146 = vmatmul.mubr.bf16.vlgmr.msra.gmra.mrb[0].mxu0 %v892_v28  ;;  %1259 = vmatmul.mubr.bf16.vlgmr.msra.gmra.mrb[0].mxu1 %v892_v28 }
 0x1a5   : > { %1155 = vmatprep.mubr.bf16.mxu0 %v3759_v50  ;;  %1268 = vmatprep.mubr.bf16.mxu1 %v3759_v50 }
 0x1ac   : > { %1156 = vmatmul.mubr.bf16.gmra.mrb[4].mxu0 %v893_v29  ;;  %1269 = vmatmul.mubr.bf16.gmra.mrb[4].mxu1 %v893_v29 }
 0x1ad   : > { %1165 = vmatprep.mubr.bf16.mxu0 %v3759_v50  ;;  %1278 = vmatprep.mubr.bf16.mxu1 %v3759_v50 }
 0x1b4   : > { %1166 = vmatmul.mubr.bf16.gmra.mrb[8].mxu0 %v894_v30  ;;  %1279 = vmatmul.mubr.bf16.gmra.mrb[8].mxu1 %v894_v30 }
 0x1b5   : > { %1175 = vmatprep.mubr.bf16.mxu0 %v3759_v50  ;;  %1288 = vmatprep.mubr.bf16.mxu1 %v3759_v50 }
 0x1bc   : > { %1176 = vmatmul.mubr.bf16.gmra.mrb[12].mxu0 %v895_v31  ;;  %1289 = vmatmul.mubr.bf16.gmra.mrb[12].mxu1 %v895_v31 }
 0x1bd   : > { %1185 = vmatprep.mubr.bf16.mxu0 %v3759_v50  ;;  %1298 = vmatprep.mubr.bf16.mxu1 %v3759_v50 }
 0x1c4   : > { %1186 = vmatmul.mubr.bf16.gmra.mrb[16].mxu0 %v896_v32  ;;  %1299 = vmatmul.mubr.bf16.gmra.mrb[16].mxu1 %v896_v32 }
 0x1c5   : > { %1195 = vmatprep.mubr.bf16.mxu0 %v3759_v50  ;;  %1308 = vmatprep.mubr.bf16.mxu1 %v3759_v50 }
 0x1cc   : > { %1196 = vmatmul.mubr.bf16.gmra.mrb[20].mxu0 %v897_v33  ;;  %1309 = vmatmul.mubr.bf16.gmra.mrb[20].mxu1 %v897_v33 }
 0x1cd   : > { %1205 = vmatprep.mubr.bf16.mxu0 %v3759_v50  ;;  %1318 = vmatprep.mubr.bf16.mxu1 %v3759_v50 }
 0x1d4   : > { %1206 = vmatmul.mubr.bf16.gmra.mrb[24].mxu0 %v898_v34  ;;  %1319 = vmatmul.mubr.bf16.gmra.mrb[24].mxu1 %v898_v34 }
 0x1d5   : > { %1215 = vmatprep.mubr.bf16.mxu0 %v3759_v50  ;;  %1328 = vmatprep.mubr.bf16.mxu1 %v3759_v50 }
 0x1dc   : > { %1216 = vmatmul.mubr.bf16.gmra.mrb[28].mxu0 %v899_v35  ;;  %1329 = vmatmul.mubr.bf16.gmra.mrb[28].mxu1 %v899_v35 }
 0x277   : > { %v1147_v46 = vpop.f32.mrb[0].mxu0  ;;  %v1260_v47 = vpop.f32.mrb[0].mxu1 }
 0x278   : > { %v1148_v52 = vadd.f32 %v1147_v46, %v4161_v42  ;;  %v1261_v53 = vadd.f32 %v1260_v47, %v4164_v43  ;;  %v1149_v54 = vpop.f32.mrb[1].mxu0  ;;  %v1262_v55 = vpop.f32.mrb[1].mxu1 }
 0x279   : > { %v1150_v56 = vadd.f32 %v1149_v54, %v4167_v44  ;;  %v1263_v57 = vadd.f32 %v1262_v55, %v4170_v45  ;;  %v1151_v58 = vpop.f32.mrb[2].mxu0  ;;  %v1264_v59 = vpop.f32.mrb[2].mxu1 }
 0x27a   : > { %1339 = vst [vmem:[#allocation3] sm:$0xff] %v1148_v52  ;;  %1341 = vst [vmem:[#allocation3 + $0x10] sm:$0xff] %v1261_v53  ;;  %v1152_v60 = vadd.f32 %v1151_v58, %v4161_v42  ;;  %v1265_v0 = vadd.f32 %v1264_v59, %v4164_v43  ;;  %v1153_v61 = vpop.f32.mrb[3].mxu0  ;;  %v1266_v48 = vpop.f32.mrb[3].mxu1 }
 0x27b   : > { %1340 = vst [vmem:[#allocation3 + $0x8] sm:$0xff] %v1150_v56  ;;  %1342 = vst [vmem:[#allocation3 + $0x18] sm:$0xff] %v1263_v57  ;;  %v1154_v49 = vadd.f32 %v1153_v61, %v4167_v44  ;;  %v1267_v50 = vadd.f32 %v1266_v48, %v4170_v45 }
 0x27c   : > { %1343 = vst [vmem:[#allocation3 + $0x20] sm:$0xff] %v1152_v60  ;;  %1345 = vst [vmem:[#allocation3 + $0x30] sm:$0xff] %v1265_v0 }
 0x27d   : > { %1344 = vst [vmem:[#allocation3 + $0x28] sm:$0xff] %v1154_v49  ;;  %1346 = vst [vmem:[#allocation3 + $0x38] sm:$0xff] %v1267_v50 }
 0x27f   : > { %v1157_v51 = vpop.f32.mrb[4].mxu0  ;;  %v1270_v62 = vpop.f32.mrb[4].mxu1 }
 0x280   : > { %v1158_v63 = vadd.f32 %v1157_v51, %v4161_v42  ;;  %v1271_v1 = vadd.f32 %v1270_v62, %v4164_v43  ;;  %v1159_v2 = vpop.f32.mrb[5].mxu0  ;;  %v1272_v3 = vpop.f32.mrb[5].mxu1 }
 0x281   : > { %v1160_v4 = vadd.f32 %v1159_v2, %v4167_v44  ;;  %v1273_v5 = vadd.f32 %v1272_v3, %v4170_v45  ;;  %v1161_v6 = vpop.f32.mrb[6].mxu0  ;;  %v1274_v7 = vpop.f32.mrb[6].mxu1 }
 0x282   : > { %1347 = vst [vmem:[#allocation3 + $0x40] sm:$0xff] %v1158_v63  ;;  %1349 = vst [vmem:[#allocation3 + $0x50] sm:$0xff] %v1271_v1  ;;  %v1162_v8 = vadd.f32 %v1161_v6, %v4161_v42  ;;  %v1275_v9 = vadd.f32 %v1274_v7, %v4164_v43  ;;  %v1163_v10 = vpop.f32.mrb[7].mxu0  ;;  %v1276_v11 = vpop.f32.mrb[7].mxu1 }
 0x283   : > { %1348 = vst [vmem:[#allocation3 + $0x48] sm:$0xff] %v1160_v4  ;;  %1350 = vst [vmem:[#allocation3 + $0x58] sm:$0xff] %v1273_v5  ;;  %v1164_v12 = vadd.f32 %v1163_v10, %v4167_v44  ;;  %v1277_v13 = vadd.f32 %v1276_v11, %v4170_v45 }
 0x284   : > { %1351 = vst [vmem:[#allocation3 + $0x60] sm:$0xff] %v1162_v8  ;;  %1353 = vst [vmem:[#allocation3 + $0x70] sm:$0xff] %v1275_v9 }
 0x285   : > { %1352 = vst [vmem:[#allocation3 + $0x68] sm:$0xff] %v1164_v12  ;;  %1354 = vst [vmem:[#allocation3 + $0x78] sm:$0xff] %v1277_v13 }
 0x287   : > { %v1167_v14 = vpop.f32.mrb[8].mxu0  ;;  %v1280_v15 = vpop.f32.mrb[8].mxu1 }
 0x288   : > { %v1168_v16 = vadd.f32 %v1167_v14, %v4161_v42  ;;  %v1281_v17 = vadd.f32 %v1280_v15, %v4164_v43  ;;  %v1169_v18 = vpop.f32.mrb[9].mxu0  ;;  %v1282_v19 = vpop.f32.mrb[9].mxu1 }
 0x289   : > { %v1170_v20 = vadd.f32 %v1169_v18, %v4167_v44  ;;  %v1283_v21 = vadd.f32 %v1282_v19, %v4170_v45  ;;  %v1171_v22 = vpop.f32.mrb[10].mxu0  ;;  %v1284_v23 = vpop.f32.mrb[10].mxu1 }
 0x28a   : > { %1355 = vst [vmem:[#allocation3 + $0x80] sm:$0xff] %v1168_v16  ;;  %1357 = vst [vmem:[#allocation3 + $0x90] sm:$0xff] %v1281_v17  ;;  %v1172_v24 = vadd.f32 %v1171_v22, %v4161_v42  ;;  %v1285_v25 = vadd.f32 %v1284_v23, %v4164_v43  ;;  %v1173_v26 = vpop.f32.mrb[11].mxu0  ;;  %v1286_v27 = vpop.f32.mrb[11].mxu1 }
 0x28b   : > { %1356 = vst [vmem:[#allocation3 + $0x88] sm:$0xff] %v1170_v20  ;;  %1358 = vst [vmem:[#allocation3 + $0x98] sm:$0xff] %v1283_v21  ;;  %v1174_v28 = vadd.f32 %v1173_v26, %v4167_v44  ;;  %v1287_v29 = vadd.f32 %v1286_v27, %v4170_v45 }
 0x28c   : > { %1359 = vst [vmem:[#allocation3 + $0xa0] sm:$0xff] %v1172_v24  ;;  %1361 = vst [vmem:[#allocation3 + $0xb0] sm:$0xff] %v1285_v25 }
 0x28d   : > { %1360 = vst [vmem:[#allocation3 + $0xa8] sm:$0xff] %v1174_v28  ;;  %1362 = vst [vmem:[#allocation3 + $0xb8] sm:$0xff] %v1287_v29 }
 0x28f   : > { %v1177_v30 = vpop.f32.mrb[12].mxu0  ;;  %v1290_v31 = vpop.f32.mrb[12].mxu1 }
 0x290   : > { %v1178_v32 = vadd.f32 %v1177_v30, %v4161_v42  ;;  %v1291_v33 = vadd.f32 %v1290_v31, %v4164_v43  ;;  %v1179_v34 = vpop.f32.mrb[13].mxu0  ;;  %v1292_v35 = vpop.f32.mrb[13].mxu1 }
 0x291   : > { %v1180_v36 = vadd.f32 %v1179_v34, %v4167_v44  ;;  %v1293_v37 = vadd.f32 %v1292_v35, %v4170_v45  ;;  %v1181_v38 = vpop.f32.mrb[14].mxu0  ;;  %v1294_v39 = vpop.f32.mrb[14].mxu1 }
 0x292   : > { %1363 = vst [vmem:[#allocation3 + $0xc0] sm:$0xff] %v1178_v32  ;;  %1365 = vst [vmem:[#allocation3 + $0xd0] sm:$0xff] %v1291_v33  ;;  %v1182_v40 = vadd.f32 %v1181_v38, %v4161_v42  ;;  %v1295_v41 = vadd.f32 %v1294_v39, %v4164_v43  ;;  %v1183_v46 = vpop.f32.mrb[15].mxu0  ;;  %v1296_v47 = vpop.f32.mrb[15].mxu1 }
 0x293   : > { %1364 = vst [vmem:[#allocation3 + $0xc8] sm:$0xff] %v1180_v36  ;;  %1366 = vst [vmem:[#allocation3 + $0xd8] sm:$0xff] %v1293_v37  ;;  %v1184_v52 = vadd.f32 %v1183_v46, %v4167_v44  ;;  %v1297_v53 = vadd.f32 %v1296_v47, %v4170_v45 }
 0x294   : > { %1367 = vst [vmem:[#allocation3 + $0xe0] sm:$0xff] %v1182_v40  ;;  %1369 = vst [vmem:[#allocation3 + $0xf0] sm:$0xff] %v1295_v41 }
 0x295   : > { %1368 = vst [vmem:[#allocation3 + $0xe8] sm:$0xff] %v1184_v52  ;;  %1370 = vst [vmem:[#allocation3 + $0xf8] sm:$0xff] %v1297_v53 }
 0x297   : > { %v1187_v54 = vpop.f32.mrb[16].mxu0  ;;  %v1300_v55 = vpop.f32.mrb[16].mxu1 }
 0x298   : > { %v1188_v56 = vadd.f32 %v1187_v54, %v4161_v42  ;;  %v1301_v57 = vadd.f32 %v1300_v55, %v4164_v43  ;;  %v1189_v58 = vpop.f32.mrb[17].mxu0  ;;  %v1302_v59 = vpop.f32.mrb[17].mxu1 }
 0x299   : > { %v1190_v60 = vadd.f32 %v1189_v58, %v4167_v44  ;;  %v1303_v0 = vadd.f32 %v1302_v59, %v4170_v45  ;;  %v1191_v61 = vpop.f32.mrb[18].mxu0  ;;  %v1304_v48 = vpop.f32.mrb[18].mxu1 }
 0x29a   : > { %1371 = vst [vmem:[#allocation3 + $0x100] sm:$0xff] %v1188_v56  ;;  %1373 = vst [vmem:[#allocation3 + $0x110] sm:$0xff] %v1301_v57  ;;  %v1192_v49 = vadd.f32 %v1191_v61, %v4161_v42  ;;  %v1305_v50 = vadd.f32 %v1304_v48, %v4164_v43  ;;  %v1193_v51 = vpop.f32.mrb[19].mxu0  ;;  %v1306_v62 = vpop.f32.mrb[19].mxu1 }
 0x29b   : > { %1372 = vst [vmem:[#allocation3 + $0x108] sm:$0xff] %v1190_v60  ;;  %1374 = vst [vmem:[#allocation3 + $0x118] sm:$0xff] %v1303_v0  ;;  %v1194_v63 = vadd.f32 %v1193_v51, %v4167_v44  ;;  %v1307_v1 = vadd.f32 %v1306_v62, %v4170_v45 }
 0x29c   : > { %1375 = vst [vmem:[#allocation3 + $0x120] sm:$0xff] %v1192_v49  ;;  %1377 = vst [vmem:[#allocation3 + $0x130] sm:$0xff] %v1305_v50 }
 0x29d   : > { %1376 = vst [vmem:[#allocation3 + $0x128] sm:$0xff] %v1194_v63  ;;  %1378 = vst [vmem:[#allocation3 + $0x138] sm:$0xff] %v1307_v1 }
 0x29f   : > { %v1197_v2 = vpop.f32.mrb[20].mxu0  ;;  %v1310_v3 = vpop.f32.mrb[20].mxu1 }
 0x2a0   : > { %v1198_v4 = vadd.f32 %v1197_v2, %v4161_v42  ;;  %v1311_v5 = vadd.f32 %v1310_v3, %v4164_v43  ;;  %v1199_v6 = vpop.f32.mrb[21].mxu0  ;;  %v1312_v7 = vpop.f32.mrb[21].mxu1 }
 0x2a1   : > { %v1200_v8 = vadd.f32 %v1199_v6, %v4167_v44  ;;  %v1313_v9 = vadd.f32 %v1312_v7, %v4170_v45  ;;  %v1201_v10 = vpop.f32.mrb[22].mxu0  ;;  %v1314_v11 = vpop.f32.mrb[22].mxu1 }
 0x2a2   : > { %1379 = vst [vmem:[#allocation3 + $0x140] sm:$0xff] %v1198_v4  ;;  %1381 = vst [vmem:[#allocation3 + $0x150] sm:$0xff] %v1311_v5  ;;  %v1202_v12 = vadd.f32 %v1201_v10, %v4161_v42  ;;  %v1315_v13 = vadd.f32 %v1314_v11, %v4164_v43  ;;  %v1203_v14 = vpop.f32.mrb[23].mxu0  ;;  %v1316_v15 = vpop.f32.mrb[23].mxu1 }
 0x2a3   : > { %1380 = vst [vmem:[#allocation3 + $0x148] sm:$0xff] %v1200_v8  ;;  %1382 = vst [vmem:[#allocation3 + $0x158] sm:$0xff] %v1313_v9  ;;  %v1204_v16 = vadd.f32 %v1203_v14, %v4167_v44  ;;  %v1317_v17 = vadd.f32 %v1316_v15, %v4170_v45 }
 0x2a4   : > { %1383 = vst [vmem:[#allocation3 + $0x160] sm:$0xff] %v1202_v12  ;;  %1385 = vst [vmem:[#allocation3 + $0x170] sm:$0xff] %v1315_v13 }
 0x2a5   : > { %1384 = vst [vmem:[#allocation3 + $0x168] sm:$0xff] %v1204_v16  ;;  %1386 = vst [vmem:[#allocation3 + $0x178] sm:$0xff] %v1317_v17 }
 0x2a7   : > { %v1207_v18 = vpop.f32.mrb[24].mxu0  ;;  %v1320_v19 = vpop.f32.mrb[24].mxu1 }
 0x2a8   : > { %v1208_v20 = vadd.f32 %v1207_v18, %v4161_v42  ;;  %v1321_v21 = vadd.f32 %v1320_v19, %v4164_v43  ;;  %v1209_v22 = vpop.f32.mrb[25].mxu0  ;;  %v1322_v23 = vpop.f32.mrb[25].mxu1 }
 0x2a9   : > { %v1210_v24 = vadd.f32 %v1209_v22, %v4167_v44  ;;  %v1323_v25 = vadd.f32 %v1322_v23, %v4170_v45  ;;  %v1211_v26 = vpop.f32.mrb[26].mxu0  ;;  %v1324_v27 = vpop.f32.mrb[26].mxu1 }
 0x2aa   : > { %1387 = vst [vmem:[#allocation3 + $0x180] sm:$0xff] %v1208_v20  ;;  %1389 = vst [vmem:[#allocation3 + $0x190] sm:$0xff] %v1321_v21  ;;  %v1212_v28 = vadd.f32 %v1211_v26, %v4161_v42  ;;  %v1325_v29 = vadd.f32 %v1324_v27, %v4164_v43  ;;  %v1213_v30 = vpop.f32.mrb[27].mxu0  ;;  %v1326_v31 = vpop.f32.mrb[27].mxu1 }
 0x2ab   : > { %1388 = vst [vmem:[#allocation3 + $0x188] sm:$0xff] %v1210_v24  ;;  %1390 = vst [vmem:[#allocation3 + $0x198] sm:$0xff] %v1323_v25  ;;  %v1214_v32 = vadd.f32 %v1213_v30, %v4167_v44  ;;  %v1327_v33 = vadd.f32 %v1326_v31, %v4170_v45 }
 0x2ac   : > { %1391 = vst [vmem:[#allocation3 + $0x1a0] sm:$0xff] %v1212_v28  ;;  %1393 = vst [vmem:[#allocation3 + $0x1b0] sm:$0xff] %v1325_v29 }
 0x2ad   : > { %1392 = vst [vmem:[#allocation3 + $0x1a8] sm:$0xff] %v1214_v32  ;;  %1394 = vst [vmem:[#allocation3 + $0x1b8] sm:$0xff] %v1327_v33 }
 0x2af   : > { %v1217_v34 = vpop.f32.mrb[28].mxu0  ;;  %v1330_v35 = vpop.f32.mrb[28].mxu1 }
 0x2b0   : > { %v1218_v36 = vadd.f32 %v1217_v34, %v4161_v42  ;;  %v1331_v37 = vadd.f32 %v1330_v35, %v4164_v43  ;;  %v1219_v38 = vpop.f32.mrb[29].mxu0  ;;  %v1332_v39 = vpop.f32.mrb[29].mxu1 }
 0x2b1   : > { %v1220_v40 = vadd.f32 %v1219_v38, %v4167_v44  ;;  %v1333_v41 = vadd.f32 %v1332_v39, %v4170_v45  ;;  %v1221_v46 = vpop.f32.mrb[30].mxu0  ;;  %v1334_v47 = vpop.f32.mrb[30].mxu1 }
 0x2b2   : > { %1395 = vst [vmem:[#allocation3 + $0x1c0] sm:$0xff] %v1218_v36  ;;  %1397 = vst [vmem:[#allocation3 + $0x1d0] sm:$0xff] %v1331_v37  ;;  %v1222_v52 = vadd.f32 %v1221_v46, %v4161_v42  ;;  %v1335_v53 = vadd.f32 %v1334_v47, %v4164_v43  ;;  %v1223_v54 = vpop.f32.mrb[31].mxu0  ;;  %v1336_v55 = vpop.f32.mrb[31].mxu1 }
 0x2b3   : > { %1396 = vst [vmem:[#allocation3 + $0x1c8] sm:$0xff] %v1220_v40  ;;  %1398 = vst [vmem:[#allocation3 + $0x1d8] sm:$0xff] %v1333_v41  ;;  %v1224_v56 = vadd.f32 %v1223_v54, %v4167_v44  ;;  %v1337_v57 = vadd.f32 %v1336_v55, %v4170_v45 }
 0x2b4   : > { %1399 = vst [vmem:[#allocation3 + $0x1e0] sm:$0xff] %v1222_v52  ;;  %1401 = vst [vmem:[#allocation3 + $0x1f0] sm:$0xff] %v1335_v53 }
 0x2b5   : > { %1400 = vst [vmem:[#allocation3 + $0x1e8] sm:$0xff] %v1224_v56  ;;  %1402 = vst [vmem:[#allocation3 + $0x1f8] sm:$0xff] %v1337_v57 }
 0x2b6 PF: > { %v4237_v42 = vld [vmem:[%s3939_s11 + $0x4] ss:$16 sps:$4 sm:$0xff]   ;;  %v4240_v43 = vld [vmem:[%s3939_s11] ss:$16 sps:$4 sm:$0xff]   ;;  %v3760_v44 = vmov 0   ;;  %v1439_v20 = vld [vmem:[#allocation3 + $0x8] sm:$0xff] }
 0x2b7   : > { %1638 = vmatprep.mubr.bf16.mxu0 %v3760_v44  ;;  %1681 = vmatprep.mubr.bf16.mxu1 %v3760_v44  ;;  %v4246_v45 = vld [vmem:[%s3939_s11 + $0x24] ss:$16 sps:$4 sm:$0xff]   ;;  %v4250_v58 = vld [vmem:[%s3939_s11 + $0x20] ss:$16 sps:$4 sm:$0xff]   ;;  %v4257_v60 = vld [vmem:[%s3939_s11 + $0xc] ss:$16 sps:$4 sm:$0xff]  }
 0x2b8   : > { %1606 = vmatprep.subr.bf16.mxu0 %v4237_v42  ;;  %v4254_v59 = vld [vmem:[%s3939_s11 + $0x44] ss:$16 sps:$4 sm:$0xff]   ;;  %v4260_v0 = vld [vmem:[%s3939_s11 + $0x8] ss:$16 sps:$4 sm:$0xff]   ;;  %v4264_v61 = vld [vmem:[%s3939_s11 + $0x40] ss:$16 sps:$4 sm:$0xff]   ;;  %1649 = vmatprep.subr.bf16.mxu1 %v4257_v60 }
 0x2b9   : > { %1607 = vmatpush1.bf16.msra.mxu0 %v4240_v43  ;;  %v4269_v48 = vld [vmem:[%s3939_s11 + $0x64] ss:$16 sps:$4 sm:$0xff]   ;;  %1650 = vmatpush1.bf16.msra.mxu1 %v4260_v0  ;;  %v4273_v49 = vld [vmem:[%s3939_s11 + $0x2c] ss:$16 sps:$4 sm:$0xff]   ;;  %v4276_v50 = vld [vmem:[%s3939_s11 + $0x28] ss:$16 sps:$4 sm:$0xff]  }
 0x2ba   : > { %1608 = vmatprep.subr.bf16.mxu0 %v4246_v45  ;;  %1651 = vmatprep.subr.bf16.mxu1 %v4273_v49  ;;  %v4281_v51 = vld [vmem:[%s3939_s11 + $0x60] ss:$16 sps:$4 sm:$0xff]   ;;  %v4284_v62 = vld [vmem:[%s3939_s11 + $0x84] ss:$16 sps:$4 sm:$0xff]   ;;  %v4287_v63 = vld [vmem:[%s3939_s11 + $0x4c] ss:$16 sps:$4 sm:$0xff]  }
 0x2bb   : > { %v4292_v1 = vld [vmem:[%s3939_s11 + $0x48] ss:$16 sps:$4 sm:$0xff]   ;;  %v4296_v2 = vld [vmem:[%s3939_s11 + $0x6c] ss:$16 sps:$4 sm:$0xff]   ;;  %v4300_v3 = vld [vmem:[%s3939_s11 + $0x80] ss:$16 sps:$4 sm:$0xff]  }
 0x2bc   : > { %v4304_v4 = vld [vmem:[%s3939_s11 + $0xa4] ss:$16 sps:$4 sm:$0xff]   ;;  %v4308_v5 = vld [vmem:[%s3939_s11 + $0x68] ss:$16 sps:$4 sm:$0xff]   ;;  %v4312_v6 = vld [vmem:[%s3939_s11 + $0x8c] ss:$16 sps:$4 sm:$0xff]  }
 0x2bd   : > { %1609 = vmatpush1.bf16.msra.mxu0 %v4250_v58  ;;  %1652 = vmatpush1.bf16.msra.mxu1 %v4276_v50  ;;  %v4316_v7 = vld [vmem:[%s3939_s11 + $0xa0] ss:$16 sps:$4 sm:$0xff]   ;;  %v4319_v8 = vld [vmem:[%s3939_s11 + $0xc4] ss:$16 sps:$4 sm:$0xff]   ;;  %v4324_v9 = vld [vmem:[%s3939_s11 + $0x88] ss:$16 sps:$4 sm:$0xff]  }
 0x2be   : > { %1610 = vmatprep.subr.bf16.mxu0 %v4254_v59  ;;  %1653 = vmatprep.subr.bf16.mxu1 %v4287_v63  ;;  %v4328_v10 = vld [vmem:[%s3939_s11 + $0xac] ss:$16 sps:$4 sm:$0xff]   ;;  %v4332_v11 = vld [vmem:[%s3939_s11 + $0xc0] ss:$16 sps:$4 sm:$0xff]   ;;  %v4336_v12 = vld [vmem:[%s3939_s11 + $0xe4] ss:$16 sps:$4 sm:$0xff]  }
 0x2bf   : > { %v4340_v13 = vld [vmem:[%s3939_s11 + $0xa8] ss:$16 sps:$4 sm:$0xff]   ;;  %v4344_v14 = vld [vmem:[%s3939_s11 + $0xcc] ss:$16 sps:$4 sm:$0xff]   ;;  %v4348_v15 = vld [vmem:[%s3939_s11 + $0xe0] ss:$16 sps:$4 sm:$0xff]  }
 0x2c0   : > { %v4353_v16 = vld [vmem:[%s3939_s11 + $0xc8] ss:$16 sps:$4 sm:$0xff]   ;;  %v4357_v17 = vld [vmem:[%s3939_s11 + $0xec] ss:$16 sps:$4 sm:$0xff]   ;;  %v1438_v19 = vld [vmem:[#allocation3] sm:$0xff] }
 0x2c1   : > { %1611 = vmatpush1.bf16.msra.mxu0 %v4264_v61  ;;  %1654 = vmatpush1.bf16.msra.mxu1 %v4292_v1  ;;  %v4362_v18 = vld [vmem:[%s3939_s11 + $0xe8] ss:$16 sps:$4 sm:$0xff]   ;;  %v1442_v22 = vld [vmem:[#allocation3 + $0x20] sm:$0xff]  ;;  %v1440_v33 = vld [vmem:[#allocation3 + $0x10] sm:$0xff] }
 0x2c2   : > { %1612 = vmatprep.subr.bf16.mxu0 %v4269_v48  ;;  %1655 = vmatprep.subr.bf16.mxu1 %v4296_v2  ;;  %v1443_v25 = vld [vmem:[#allocation3 + $0x28] sm:$0xff]  ;;  %v1444_v38 = vld [vmem:[#allocation3 + $0x30] sm:$0xff]  ;;  %v1441_v40 = vld [vmem:[#allocation3 + $0x18] sm:$0xff] }
 0x2c3   : > { %v1445_v52 = vld [vmem:[#allocation3 + $0x38] sm:$0xff] }
 0x2c5   : > { %1613 = vmatpush1.bf16.msra.mxu0 %v4281_v51  ;;  %1656 = vmatpush1.bf16.msra.mxu1 %v4308_v5 }
 0x2c6   : > { %1614 = vmatprep.subr.bf16.mxu0 %v4284_v62  ;;  %1657 = vmatprep.subr.bf16.mxu1 %v4312_v6 }
 0x2c9   : > { %1615 = vmatpush1.bf16.msra.mxu0 %v4300_v3  ;;  %1658 = vmatpush1.bf16.msra.mxu1 %v4324_v9 }
 0x2ca   : > { %1616 = vmatprep.subr.bf16.mxu0 %v4304_v4  ;;  %1659 = vmatprep.subr.bf16.mxu1 %v4328_v10 }
 0x2cd   : > { %1617 = vmatpush1.bf16.msra.mxu0 %v4316_v7  ;;  %1660 = vmatpush1.bf16.msra.mxu1 %v4340_v13 }
 0x2ce   : > { %1618 = vmatprep.subr.bf16.mxu0 %v4319_v8  ;;  %1661 = vmatprep.subr.bf16.mxu1 %v4344_v14 }
 0x2d1   : > { %1619 = vmatpush1.bf16.msra.mxu0 %v4332_v11  ;;  %1662 = vmatpush1.bf16.msra.mxu1 %v4353_v16 }
 0x2d2   : > { %1620 = vmatprep.subr.bf16.mxu0 %v4336_v12  ;;  %1663 = vmatprep.subr.bf16.mxu1 %v4357_v17 }
 0x2d5   : > { %1621 = vmatpush1.bf16.msra.mxu0 %v4348_v15  ;;  %1664 = vmatpush1.bf16.msra.mxu1 %v4362_v18 }
 0x2d6   : > { %1761 = vmatprep.subr.bf16.mxu0 %v4237_v42  ;;  %1804 = vmatprep.subr.bf16.mxu1 %v4257_v60 }
 0x2d8   : > { %1639 = vmatmul.mubr.bf16.vlgmr.msra.gmra.mrb[0].mxu0 %v3760_v44  ;;  %1682 = vmatmul.mubr.bf16.vlgmr.msra.gmra.mrb[0].mxu1 %v3760_v44 }
 0x2d9   : > { %1762 = vmatpush1.bf16.msra.mxu0 %v4240_v43  ;;  %1793 = vmatprep.mubr.bf16.mxu0 %v3760_v44 }
 0x2da   : > { %1763 = vmatprep.subr.bf16.mxu0 %v4246_v45  ;;  %1805 = vmatpush1.bf16.msra.mxu1 %v4260_v0 }
 0x2db   : > { %1806 = vmatprep.subr.bf16.mxu1 %v4273_v49  ;;  %1836 = vmatprep.mubr.bf16.mxu1 %v3760_v44 }
 0x2dd   : > { %1764 = vmatpush1.bf16.msra.mxu0 %v4250_v58 }
 0x2de   : > { %1765 = vmatprep.subr.bf16.mxu0 %v4254_v59  ;;  %1807 = vmatpush1.bf16.msra.mxu1 %v4276_v50 }
 0x2df   : > { %1808 = vmatprep.subr.bf16.mxu1 %v4287_v63 }
 0x2e1   : > { %1766 = vmatpush1.bf16.msra.mxu0 %v4264_v61 }
 0x2e2   : > { %1767 = vmatprep.subr.bf16.mxu0 %v4269_v48  ;;  %1809 = vmatpush1.bf16.msra.mxu1 %v4292_v1 }
 0x2e3   : > { %1810 = vmatprep.subr.bf16.mxu1 %v4296_v2 }
 0x2e5   : > { %1768 = vmatpush1.bf16.msra.mxu0 %v4281_v51 }
 0x2e6   : > { %1769 = vmatprep.subr.bf16.mxu0 %v4284_v62  ;;  %1811 = vmatpush1.bf16.msra.mxu1 %v4308_v5 }
 0x2e7   : > { %1812 = vmatprep.subr.bf16.mxu1 %v4312_v6 }
 0x2e9   : > { %1770 = vmatpush1.bf16.msra.mxu0 %v4300_v3 }
 0x2ea   : > { %1771 = vmatprep.subr.bf16.mxu0 %v4304_v4  ;;  %1813 = vmatpush1.bf16.msra.mxu1 %v4324_v9 }
 0x2eb   : > { %1814 = vmatprep.subr.bf16.mxu1 %v4328_v10 }
 0x2ed   : > { %1772 = vmatpush1.bf16.msra.mxu0 %v4316_v7 }
 0x2ee   : > { %1773 = vmatprep.subr.bf16.mxu0 %v4319_v8  ;;  %1815 = vmatpush1.bf16.msra.mxu1 %v4340_v13 }
 0x2ef   : > { %1816 = vmatprep.subr.bf16.mxu1 %v4344_v14 }
 0x2f1   : > { %1774 = vmatpush1.bf16.msra.mxu0 %v4332_v11 }
 0x2f2   : > { %1775 = vmatprep.subr.bf16.mxu0 %v4336_v12  ;;  %1817 = vmatpush1.bf16.msra.mxu1 %v4353_v16 }
 0x2f3   : > { %1818 = vmatprep.subr.bf16.mxu1 %v4357_v17 }
 0x2f5   : > { %1776 = vmatpush1.bf16.msra.mxu0 %v4348_v15 }
 0x2f6   : > { %1917 = vmatprep.subr.bf16.mxu0 %v4237_v42  ;;  %1819 = vmatpush1.bf16.msra.mxu1 %v4362_v18 }
 0x2f7   : > { %1960 = vmatprep.subr.bf16.mxu1 %v4257_v60 }
 0x3ab   : > { %v1640_v21 = vpop.f32.mrb[0].mxu0  ;;  %v1683_v35 = vpop.f32.mrb[0].mxu1 }
 0x3ac   : > { %v1692_v23 = vadd.f32 %v1640_v21, %v1438_v19  ;;  %v1642_v24 = vpop.f32.mrb[1].mxu0  ;;  %v1685_v37 = vpop.f32.mrb[1].mxu1  ;;  %v1694_v39 = vadd.f32 %v1683_v35, %v1440_v33 }
 0x3ad   : > { %v1693_v26 = vadd.f32 %v1642_v24, %v1439_v20  ;;  %v1644_v27 = vpop.f32.mrb[2].mxu0  ;;  %v1687_v41 = vpop.f32.mrb[2].mxu1  ;;  %v1695_v53 = vadd.f32 %v1685_v37, %v1441_v40 }
 0x3ae   : > { %v3111_v28 = vmul.f32 -1.442695, %v1692_v23  ;;  %v1696_v29 = vadd.f32 %v1644_v27, %v1442_v22  ;;  %v1646_v30 = vpop.f32.mrb[3].mxu0  ;;  %v1689_v46 = vpop.f32.mrb[3].mxu1  ;;  %v1698_v47 = vadd.f32 %v1687_v41, %v1444_v38  ;;  %v3113_v54 = vmul.f32 -1.442695, %v1694_v39 }
 0x3af   : > { %v3112_v31 = vmul.f32 -1.442695, %v1693_v26  ;;  %v1697_v32 = vadd.f32 %v1646_v30, %v1443_v25  ;;  %v1699_v55 = vadd.f32 %v1689_v46, %v1445_v52 }
 0x3b0   : > { %3366 = vpow2.f32 %v3111_v28  ;;  %v3114_v34 = vmul.f32 -1.442695, %v1696_v29  ;;  %v3116_v56 = vmul.f32 -1.442695, %v1698_v47 }
 0x3b1   : > { %3368 = vpow2.f32 %v3112_v31  ;;  %v3115_v36 = vmul.f32 -1.442695, %v1697_v32 }
 0x3b2   : > { %3370 = vpow2.f32 %v3114_v34 }
 0x3b3   : > { %3372 = vpow2.f32 %v3115_v36 }
 0x3b4   : > { %3374 = vtanh.f32 %v1695_v53 }
 0x3b5   : > { %3376 = vpow2.f32 %v3113_v54 }
 0x3b6   : > { %3378 = vtanh.f32 %v1699_v55 }
 0x3b7   : > { %3380 = vpow2.f32 %v3116_v56 }
 0x3ba   : > { %v3367_v57 = vpop.eup %3366 }
 0x3bb   : > { %v3369_v19 = vpop.eup %3368  ;;  %v1718_v20 = vadd.f32 1.0, %v3367_v57  ;;  %v1753_v57 = vld [vmem:[#allocation3 + $0x40] sm:$0xff] }
 0x3bc   : > { %v3371_v21 = vpop.eup %3370  ;;  %v1719_v22 = vadd.f32 1.0, %v3369_v19  ;;  %v1754_v19 = vld [vmem:[#allocation3 + $0x48] sm:$0xff] }
 0x3bd   : > { %v3373_v23 = vpop.eup %3372  ;;  %3382 = vrcp.f32 %v1718_v20  ;;  %v1721_v24 = vadd.f32 1.0, %v3371_v21 }
 0x3be   : > { %3384 = vrcp.f32 %v1719_v22  ;;  %v1722_v25 = vadd.f32 1.0, %v3373_v23  ;;  %v3375_v26 = vpop.eup %3374  ;;  %v1757_v22 = vld [vmem:[#allocation3 + $0x60] sm:$0xff] }
 0x3bf   : > { %3386 = vrcp.f32 %v1721_v24  ;;  %v3377_v27 = vpop.eup %3376 }
 0x3c0   : > { %3388 = vrcp.f32 %v1722_v25  ;;  %v3379_v28 = vpop.eup %3378  ;;  %v1720_v32 = vadd.f32 1.0, %v3377_v27 }
 0x3c1   : > { %v3381_v29 = vpop.eup %3380 }
 0x3c2   : > { %v1723_v37 = vadd.f32 1.0, %v3381_v29  ;;  %3390 = vrcp.f32 %v1720_v32 }
 0x3c7   : > { %v3383_v30 = vpop.eup %3382 }
 0x3c8   : > { %v3385_v31 = vpop.eup %3384  ;;  %v1740_v33 = vmul.f32 %v3383_v30, %v3375_v26  ;;  %v1758_v26 = vld [vmem:[#allocation3 + $0x68] sm:$0xff] }
 0x3c9   : > { %v3387_v34 = vpop.eup %3386  ;;  %v1738_v35 = vmul.f32 0.0, %v3385_v31 }
 0x3ca   : > { %v3389_v36 = vpop.eup %3388  ;;  %v1741_v38 = vmul.f32 %v3387_v34, %v3379_v28 }
 0x3cb   : > { %v1739_v39 = vmul.f32 0.0, %v3389_v36  ;;  %v4404_v40 = vadd.f32 %v1740_v33, %v1738_v35  ;;  %v1755_v36 = vld [vmem:[#allocation3 + $0x50] sm:$0xff] }
 0x3cc   : > { %v3391_v46 = vpop.eup %3390 }
 0x3cd   : > { %3392 = vtanh.f32 %v4404_v40  ;;  %v4407_v41 = vadd.f32 %v1741_v38, %v1739_v39  ;;  %v1759_v38 = vld [vmem:[#allocation3 + $0x70] sm:$0xff] }
 0x3ce   : > { %3394 = vrcp.f32 %v1723_v37 }
 0x3cf   : > { %3396 = vtanh.f32 %v4407_v41 }
 0x3d7   : > { %v3393_v47 = vpop.eup %3392 }
 0x3d8   : > { %v3395_v52 = vpop.eup %3394  ;;  %v1746_v54 = vmul.f32 %v3393_v47, %v3391_v46  ;;  %v1756_v47 = vld [vmem:[#allocation3 + $0x58] sm:$0xff] }
 0x3d9   : > { %v3397_v53 = vpop.eup %3396 }
 0x3da   : > { %v1747_v55 = vmul.f32 %v3397_v53, %v3395_v52 }
 0x3dc   : > { %v1748_v56 = vpack.c.bf16 %v1747_v55, %v1746_v54  ;;  %v1760_v55 = vld [vmem:[#allocation3 + $0x78] sm:$0xff] }
 0x3de   : > { %1749 = vst [vmem:[#allocation2] sm:$0xff] %v1748_v56  ;;  %1794 = vmatmul.mubr.bf16.vlgmr.msra.gmra.mrb[4].mxu0 %v1748_v56  ;;  %1837 = vmatmul.mubr.bf16.vlgmr.msra.gmra.mrb[4].mxu1 %v1748_v56 }
 0x3df   : > { %1918 = vmatpush1.bf16.msra.mxu0 %v4240_v43  ;;  %1961 = vmatpush1.bf16.msra.mxu1 %v4260_v0 }
 0x3e0   : > { %1919 = vmatprep.subr.bf16.mxu0 %v4246_v45  ;;  %1962 = vmatprep.subr.bf16.mxu1 %v4273_v49 }
 0x3e1   : > { %1949 = vmatprep.mubr.bf16.mxu0 %v3760_v44  ;;  %1992 = vmatprep.mubr.bf16.mxu1 %v3760_v44 }
 0x3e3   : > { %1920 = vmatpush1.bf16.msra.mxu0 %v4250_v58  ;;  %1963 = vmatpush1.bf16.msra.mxu1 %v4276_v50 }
 0x3e4   : > { %1921 = vmatprep.subr.bf16.mxu0 %v4254_v59  ;;  %1964 = vmatprep.subr.bf16.mxu1 %v4287_v63 }
 0x3e7   : > { %1922 = vmatpush1.bf16.msra.mxu0 %v4264_v61  ;;  %1965 = vmatpush1.bf16.msra.mxu1 %v4292_v1 }
 0x3e8   : > { %1923 = vmatprep.subr.bf16.mxu0 %v4269_v48  ;;  %1966 = vmatprep.subr.bf16.mxu1 %v4296_v2 }
 0x3eb   : > { %1924 = vmatpush1.bf16.msra.mxu0 %v4281_v51  ;;  %1967 = vmatpush1.bf16.msra.mxu1 %v4308_v5 }
 0x3ec   : > { %1925 = vmatprep.subr.bf16.mxu0 %v4284_v62  ;;  %1968 = vmatprep.subr.bf16.mxu1 %v4312_v6 }
 0x3ef   : > { %1926 = vmatpush1.bf16.msra.mxu0 %v4300_v3  ;;  %1969 = vmatpush1.bf16.msra.mxu1 %v4324_v9 }
 0x3f0   : > { %1927 = vmatprep.subr.bf16.mxu0 %v4304_v4  ;;  %1970 = vmatprep.subr.bf16.mxu1 %v4328_v10 }
 0x3f3   : > { %1928 = vmatpush1.bf16.msra.mxu0 %v4316_v7  ;;  %1971 = vmatpush1.bf16.msra.mxu1 %v4340_v13 }
 0x3f4   : > { %1929 = vmatprep.subr.bf16.mxu0 %v4319_v8  ;;  %1972 = vmatprep.subr.bf16.mxu1 %v4344_v14 }
 0x3f7   : > { %1930 = vmatpush1.bf16.msra.mxu0 %v4332_v11  ;;  %1973 = vmatpush1.bf16.msra.mxu1 %v4353_v16 }
 0x3f8   : > { %1931 = vmatprep.subr.bf16.mxu0 %v4336_v12  ;;  %1974 = vmatprep.subr.bf16.mxu1 %v4357_v17 }
 0x3fb   : > { %1932 = vmatpush1.bf16.msra.mxu0 %v4348_v15  ;;  %1975 = vmatpush1.bf16.msra.mxu1 %v4362_v18 }
 0x3fc   : > { %2073 = vmatprep.subr.bf16.mxu0 %v4237_v42  ;;  %2116 = vmatprep.subr.bf16.mxu1 %v4257_v60 }
 0x4b1   : > { %v1795_v20 = vpop.f32.mrb[4].mxu0  ;;  %v1838_v21 = vpop.f32.mrb[4].mxu1 }
 0x4b2   : > { %v1847_v23 = vadd.f32 %v1795_v20, %v1753_v57  ;;  %v1797_v24 = vpop.f32.mrb[5].mxu0  ;;  %v1840_v25 = vpop.f32.mrb[5].mxu1  ;;  %v1849_v46 = vadd.f32 %v1838_v21, %v1755_v36 }
 0x4b3   : > { %v1848_v27 = vadd.f32 %v1797_v24, %v1754_v19  ;;  %v1799_v28 = vpop.f32.mrb[6].mxu0  ;;  %v1842_v29 = vpop.f32.mrb[6].mxu1  ;;  %v1850_v53 = vadd.f32 %v1840_v25, %v1756_v47 }
 0x4b4   : > { %v3117_v30 = vmul.f32 -1.442695, %v1847_v23  ;;  %v1851_v31 = vadd.f32 %v1799_v28, %v1757_v22  ;;  %v1801_v32 = vpop.f32.mrb[7].mxu0  ;;  %v1844_v33 = vpop.f32.mrb[7].mxu1  ;;  %v1853_v52 = vadd.f32 %v1842_v29, %v1759_v38  ;;  %v3119_v54 = vmul.f32 -1.442695, %v1849_v46 }
 0x4b5   : > { %v3118_v34 = vmul.f32 -1.442695, %v1848_v27  ;;  %v1852_v35 = vadd.f32 %v1801_v32, %v1758_v26  ;;  %v1854_v19 = vadd.f32 %v1844_v33, %v1760_v55 }
 0x4b6   : > { %3398 = vpow2.f32 %v3117_v30  ;;  %v3120_v37 = vmul.f32 -1.442695, %v1851_v31  ;;  %v3122_v56 = vmul.f32 -1.442695, %v1853_v52 }
 0x4b7   : > { %v3121_v39 = vmul.f32 -1.442695, %v1852_v35  ;;  %3400 = vpow2.f32 %v3118_v34 }
 0x4b8   : > { %3402 = vpow2.f32 %v3120_v37 }
 0x4b9   : > { %3404 = vpow2.f32 %v3121_v39 }
 0x4ba   : > { %3406 = vtanh.f32 %v1850_v53 }
 0x4bb   : > { %3408 = vpow2.f32 %v3119_v54 }
 0x4bc   : > { %3410 = vpow2.f32 %v3122_v56 }
 0x4c0   : > { %v3399_v57 = vpop.eup %3398 }
 0x4c1   : > { %v1873_v20 = vadd.f32 1.0, %v3399_v57  ;;  %v3401_v22 = vpop.eup %3400 }
 0x4c2   : > { %v3403_v23 = vpop.eup %3402  ;;  %v1874_v24 = vadd.f32 1.0, %v3401_v22 }
 0x4c3   : > { %3412 = vrcp.f32 %v1873_v20  ;;  %v1876_v26 = vadd.f32 1.0, %v3403_v23  ;;  %v3405_v21 = vpop.eup %3404  ;;  %v1910_v20 = vld [vmem:[#allocation3 + $0x88] sm:$0xff] }
 0x4c4   : > { %3414 = vtanh.f32 %v1854_v19  ;;  %v1877_v27 = vadd.f32 1.0, %v3405_v21  ;;  %v3407_v25 = vpop.eup %3406 }
 0x4c5   : > { %3416 = vrcp.f32 %v1874_v24  ;;  %v3409_v28 = vpop.eup %3408  ;;  %v1913_v24 = vld [vmem:[#allocation3 + $0xa0] sm:$0xff] }
 0x4c6   : > { %3418 = vrcp.f32 %v1876_v26  ;;  %v3411_v29 = vpop.eup %3410  ;;  %v1875_v35 = vadd.f32 1.0, %v3409_v28 }
 0x4c7   : > { %3420 = vrcp.f32 %v1877_v27  ;;  %v1878_v46 = vadd.f32 1.0, %v3411_v29 }
 0x4c8   : > { %3422 = vrcp.f32 %v1875_v35 }
 0x4cd   : > { %v3413_v30 = vpop.eup %3412 }
 0x4ce   : > { %v3415_v31 = vpop.eup %3414  ;;  %v1895_v32 = vmul.f32 %v3413_v30, %v3407_v25  ;;  %v1914_v25 = vld [vmem:[#allocation3 + $0xa8] sm:$0xff] }
 0x4cf   : > { %v3417_v33 = vpop.eup %3416 }
 0x4d0   : > { %v3419_v34 = vpop.eup %3418  ;;  %v1893_v36 = vmul.f32 %v3417_v33, %v4404_v40 }
 0x4d1   : > { %v1896_v37 = vmul.f32 %v3419_v34, %v3415_v31  ;;  %v3421_v38 = vpop.eup %3420 }
 0x4d2   : > { %v4445_v39 = vadd.f32 %v1895_v32, %v1893_v36  ;;  %v1894_v47 = vmul.f32 %v3421_v38, %v4407_v41  ;;  %v3423_v53 = vpop.eup %3422  ;;  %v1909_v41 = vld [vmem:[#allocation3 + $0x80] sm:$0xff] }
 0x4d4   : > { %3424 = vtanh.f32 %v4445_v39  ;;  %v4449_v52 = vadd.f32 %v1896_v37, %v1894_v47  ;;  %v1911_v37 = vld [vmem:[#allocation3 + $0x90] sm:$0xff] }
 0x4d5   : > { %3426 = vrcp.f32 %v1878_v46  ;;  %v1915_v46 = vld [vmem:[#allocation3 + $0xb0] sm:$0xff] }
 0x4d6   : > { %3428 = vtanh.f32 %v4449_v52 }
 0x4de   : > { %v3425_v54 = vpop.eup %3424 }
 0x4df   : > { %v3427_v55 = vpop.eup %3426  ;;  %v1901_v40 = vmul.f32 %v3425_v54, %v3423_v53  ;;  %v1912_v54 = vld [vmem:[#allocation3 + $0x98] sm:$0xff] }
 0x4e0   : > { %v3429_v56 = vpop.eup %3428 }
 0x4e1   : > { %v1902_v57 = vmul.f32 %v3429_v56, %v3427_v55 }
 0x4e3   : > { %v1903_v19 = vpack.c.bf16 %v1902_v57, %v1901_v40  ;;  %v1916_v57 = vld [vmem:[#allocation3 + $0xb8] sm:$0xff] }
 0x4e5   : > { %1905 = vst [vmem:[#allocation2 + $0x8] sm:$0xff] %v1903_v19  ;;  %1950 = vmatmul.mubr.bf16.vlgmr.msra.gmra.mrb[8].mxu0 %v1903_v19  ;;  %1993 = vmatmul.mubr.bf16.vlgmr.msra.gmra.mrb[8].mxu1 %v1903_v19 }
 0x4e6   : > { %2074 = vmatpush1.bf16.msra.mxu0 %v4240_v43  ;;  %2117 = vmatpush1.bf16.msra.mxu1 %v4260_v0 }
 0x4e7   : > { %2075 = vmatprep.subr.bf16.mxu0 %v4246_v45  ;;  %2118 = vmatprep.subr.bf16.mxu1 %v4273_v49 }
 0x4e8   : > { %2105 = vmatprep.mubr.bf16.mxu0 %v3760_v44  ;;  %2148 = vmatprep.mubr.bf16.mxu1 %v3760_v44 }
 0x4ea   : > { %2076 = vmatpush1.bf16.msra.mxu0 %v4250_v58  ;;  %2119 = vmatpush1.bf16.msra.mxu1 %v4276_v50 }
 0x4eb   : > { %2077 = vmatprep.subr.bf16.mxu0 %v4254_v59  ;;  %2120 = vmatprep.subr.bf16.mxu1 %v4287_v63 }
 0x4ee   : > { %2078 = vmatpush1.bf16.msra.mxu0 %v4264_v61  ;;  %2121 = vmatpush1.bf16.msra.mxu1 %v4292_v1 }
 0x4ef   : > { %2079 = vmatprep.subr.bf16.mxu0 %v4269_v48  ;;  %2122 = vmatprep.subr.bf16.mxu1 %v4296_v2 }
 0x4f2   : > { %2080 = vmatpush1.bf16.msra.mxu0 %v4281_v51  ;;  %2123 = vmatpush1.bf16.msra.mxu1 %v4308_v5 }
 0x4f3   : > { %2081 = vmatprep.subr.bf16.mxu0 %v4284_v62  ;;  %2124 = vmatprep.subr.bf16.mxu1 %v4312_v6 }
 0x4f6   : > { %2082 = vmatpush1.bf16.msra.mxu0 %v4300_v3  ;;  %2125 = vmatpush1.bf16.msra.mxu1 %v4324_v9 }
 0x4f7   : > { %2083 = vmatprep.subr.bf16.mxu0 %v4304_v4  ;;  %2126 = vmatprep.subr.bf16.mxu1 %v4328_v10 }
 0x4fa   : > { %2084 = vmatpush1.bf16.msra.mxu0 %v4316_v7  ;;  %2127 = vmatpush1.bf16.msra.mxu1 %v4340_v13 }
 0x4fb   : > { %2085 = vmatprep.subr.bf16.mxu0 %v4319_v8  ;;  %2128 = vmatprep.subr.bf16.mxu1 %v4344_v14 }
 0x4fe   : > { %2086 = vmatpush1.bf16.msra.mxu0 %v4332_v11  ;;  %2129 = vmatpush1.bf16.msra.mxu1 %v4353_v16 }
 0x4ff   : > { %2087 = vmatprep.subr.bf16.mxu0 %v4336_v12  ;;  %2130 = vmatprep.subr.bf16.mxu1 %v4357_v17 }
 0x502   : > { %2088 = vmatpush1.bf16.msra.mxu0 %v4348_v15  ;;  %2131 = vmatpush1.bf16.msra.mxu1 %v4362_v18 }
 0x503   : > { %2229 = vmatprep.subr.bf16.mxu0 %v4237_v42  ;;  %2272 = vmatprep.subr.bf16.mxu1 %v4257_v60 }
 0x5b8   : > { %v1951_v22 = vpop.f32.mrb[8].mxu0  ;;  %v1994_v23 = vpop.f32.mrb[8].mxu1 }
 0x5b9   : > { %v2003_v26 = vadd.f32 %v1951_v22, %v1909_v41  ;;  %v1953_v21 = vpop.f32.mrb[9].mxu0  ;;  %v1996_v27 = vpop.f32.mrb[9].mxu1  ;;  %v2005_v53 = vadd.f32 %v1994_v23, %v1911_v37 }
 0x5ba   : > { %v2004_v28 = vadd.f32 %v1953_v21, %v1910_v20  ;;  %v1955_v29 = vpop.f32.mrb[10].mxu0  ;;  %v1998_v30 = vpop.f32.mrb[10].mxu1  ;;  %v2006_v56 = vadd.f32 %v1996_v27, %v1912_v54 }
 0x5bb   : > { %v3123_v31 = vmul.f32 -1.442695, %v2003_v26  ;;  %v2007_v32 = vadd.f32 %v1955_v29, %v1913_v24  ;;  %v1957_v33 = vpop.f32.mrb[11].mxu0  ;;  %v2000_v34 = vpop.f32.mrb[11].mxu1  ;;  %v2009_v55 = vadd.f32 %v1998_v30, %v1915_v46  ;;  %v3125_v40 = vmul.f32 -1.442695, %v2005_v53 }
 0x5bc   : > { %v3124_v35 = vmul.f32 -1.442695, %v2004_v28  ;;  %v2008_v36 = vadd.f32 %v1957_v33, %v1914_v25  ;;  %v2010_v20 = vadd.f32 %v2000_v34, %v1916_v57 }
 0x5bd   : > { %3430 = vpow2.f32 %v3123_v31  ;;  %v3126_v38 = vmul.f32 -1.442695, %v2007_v32  ;;  %v3128_v19 = vmul.f32 -1.442695, %v2009_v55 }
 0x5be   : > { %v3127_v47 = vmul.f32 -1.442695, %v2008_v36  ;;  %3432 = vpow2.f32 %v3124_v35 }
 0x5bf   : > { %3434 = vpow2.f32 %v3126_v38 }
 0x5c0   : > { %3436 = vpow2.f32 %v3127_v47 }
 0x5c1   : > { %3438 = vtanh.f32 %v2006_v56 }
 0x5c2   : > { %3440 = vpow2.f32 %v3125_v40 }
 0x5c3   : > { %3442 = vpow2.f32 %v3128_v19 }
 0x5c7   : > { %v3431_v41 = vpop.eup %3430 }
 0x5c8   : > { %v2029_v22 = vadd.f32 1.0, %v3431_v41  ;;  %v3433_v24 = vpop.eup %3432 }
 0x5c9   : > { %v3435_v26 = vpop.eup %3434  ;;  %v2030_v21 = vadd.f32 1.0, %v3433_v24 }
 0x5ca   : > { %3444 = vrcp.f32 %v2029_v22  ;;  %v2032_v25 = vadd.f32 1.0, %v3435_v26  ;;  %v3437_v23 = vpop.eup %3436  ;;  %v2068_v22 = vld [vmem:[#allocation3 + $0xd8] sm:$0xff] }
 0x5cb   : > { %3446 = vtanh.f32 %v2010_v20  ;;  %v2033_v28 = vadd.f32 1.0, %v3437_v23  ;;  %v3439_v27 = vpop.eup %3438 }
 0x5cc   : > { %3448 = vrcp.f32 %v2030_v21  ;;  %v3441_v29 = vpop.eup %3440 }
 0x5cd   : > { %3450 = vrcp.f32 %v2032_v25  ;;  %v3443_v30 = vpop.eup %3442  ;;  %v2031_v36 = vadd.f32 1.0, %v3441_v29  ;;  %v2072_v25 = vld [vmem:[#allocation3 + $0xf8] sm:$0xff] }
 0x5ce   : > { %3452 = vrcp.f32 %v2033_v28  ;;  %v2034_v53 = vadd.f32 1.0, %v3443_v30 }
 0x5cf   : > { %3454 = vrcp.f32 %v2031_v36 }
 0x5d4   : > { %v3445_v31 = vpop.eup %3444 }
 0x5d5   : > { %v3447_v32 = vpop.eup %3446  ;;  %v2051_v33 = vmul.f32 %v3445_v31, %v3439_v27 }
 0x5d6   : > { %v3449_v34 = vpop.eup %3448 }
 0x5d7   : > { %v3451_v35 = vpop.eup %3450  ;;  %v2049_v37 = vmul.f32 %v3449_v34, %v4445_v39 }
 0x5d8   : > { %v2052_v38 = vmul.f32 %v3451_v35, %v3447_v32  ;;  %v3453_v46 = vpop.eup %3452 }
 0x5d9   : > { %v4487_v47 = vadd.f32 %v2051_v33, %v2049_v37  ;;  %v2050_v54 = vmul.f32 %v3453_v46, %v4449_v52  ;;  %v3455_v56 = vpop.eup %3454 }
 0x5db   : > { %3456 = vtanh.f32 %v4487_v47  ;;  %v4491_v55 = vadd.f32 %v2052_v38, %v2050_v54 }
 0x5dc   : > { %3458 = vrcp.f32 %v2034_v53 }
 0x5dd   : > { %3460 = vtanh.f32 %v4491_v55 }
 0x5e5   : > { %v3457_v40 = vpop.eup %3456 }
 0x5e6   : > { %v3459_v57 = vpop.eup %3458  ;;  %v2057_v39 = vmul.f32 %v3457_v40, %v3455_v56 }
 0x5e7   : > { %v3461_v19 = vpop.eup %3460 }
 0x5e8   : > { %v2058_v41 = vmul.f32 %v3461_v19, %v3459_v57 }
 0x5ea   : > { %v2059_v20 = vpack.c.bf16 %v2058_v41, %v2057_v39 }
 0x5ec   : > { %2061 = vst [vmem:[#allocation2 + $0x10] sm:$0xff] %v2059_v20  ;;  %2106 = vmatmul.mubr.bf16.vlgmr.msra.gmra.mrb[12].mxu0 %v2059_v20  ;;  %2149 = vmatmul.mubr.bf16.vlgmr.msra.gmra.mrb[12].mxu1 %v2059_v20 }
 0x5ed   : > { %2230 = vmatpush1.bf16.msra.mxu0 %v4240_v43  ;;  %2273 = vmatpush1.bf16.msra.mxu1 %v4260_v0  ;;  %v2065_v43 = vld [vmem:[#allocation3 + $0xc0] sm:$0xff] }
 0x5ee   : > { %2231 = vmatprep.subr.bf16.mxu0 %v4246_v45  ;;  %2274 = vmatprep.subr.bf16.mxu1 %v4273_v49  ;;  %v2066_v45 = vld [vmem:[#allocation3 + $0xc8] sm:$0xff]  ;;  %v2069_v0 = vld [vmem:[#allocation3 + $0xe0] sm:$0xff] }
 0x5ef   : > { %2261 = vmatprep.mubr.bf16.mxu0 %v3760_v44  ;;  %2304 = vmatprep.mubr.bf16.mxu1 %v3760_v44 }
 0x5f1   : > { %2232 = vmatpush1.bf16.msra.mxu0 %v4250_v58  ;;  %2275 = vmatpush1.bf16.msra.mxu1 %v4276_v50  ;;  %v2070_v50 = vld [vmem:[#allocation3 + $0xe8] sm:$0xff] }
 0x5f2   : > { %2233 = vmatprep.subr.bf16.mxu0 %v4254_v59  ;;  %2276 = vmatprep.subr.bf16.mxu1 %v4287_v63 }
 0x5f5   : > { %2234 = vmatpush1.bf16.msra.mxu0 %v4264_v61  ;;  %2277 = vmatpush1.bf16.msra.mxu1 %v4292_v1 }
 0x5f6   : > { %2235 = vmatprep.subr.bf16.mxu0 %v4269_v48  ;;  %2278 = vmatprep.subr.bf16.mxu1 %v4296_v2 }
 0x5f9   : > { %2236 = vmatpush1.bf16.msra.mxu0 %v4281_v51  ;;  %2279 = vmatpush1.bf16.msra.mxu1 %v4308_v5 }
 0x5fa   : > { %2237 = vmatprep.subr.bf16.mxu0 %v4284_v62  ;;  %2280 = vmatprep.subr.bf16.mxu1 %v4312_v6 }
 0x5fd   : > { %2238 = vmatpush1.bf16.msra.mxu0 %v4300_v3  ;;  %2281 = vmatpush1.bf16.msra.mxu1 %v4324_v9 }
 0x5fe   : > { %2239 = vmatprep.subr.bf16.mxu0 %v4304_v4  ;;  %2282 = vmatprep.subr.bf16.mxu1 %v4328_v10 }
 0x601   : > { %2240 = vmatpush1.bf16.msra.mxu0 %v4316_v7  ;;  %2283 = vmatpush1.bf16.msra.mxu1 %v4340_v13  ;;  %v2071_v7 = vld [vmem:[#allocation3 + $0xf0] sm:$0xff] }
 0x602   : > { %2241 = vmatprep.subr.bf16.mxu0 %v4319_v8  ;;  %2284 = vmatprep.subr.bf16.mxu1 %v4344_v14 }
 0x605   : > { %2242 = vmatpush1.bf16.msra.mxu0 %v4332_v11  ;;  %2285 = vmatpush1.bf16.msra.mxu1 %v4353_v16 }
 0x606   : > { %2243 = vmatprep.subr.bf16.mxu0 %v4336_v12  ;;  %2286 = vmatprep.subr.bf16.mxu1 %v4357_v17 }
 0x609   : > { %2244 = vmatpush1.bf16.msra.mxu0 %v4348_v15  ;;  %2287 = vmatpush1.bf16.msra.mxu1 %v4362_v18 }
 0x60a   : > { %2385 = vmatprep.subr.bf16.mxu0 %v4237_v42  ;;  %2428 = vmatprep.subr.bf16.mxu1 %v4257_v60  ;;  %v2067_v60 = vld [vmem:[#allocation3 + $0xd0] sm:$0xff] }
 0x6bf   : > { %v2107_v58 = vpop.f32.mrb[12].mxu0  ;;  %v2150_v59 = vpop.f32.mrb[12].mxu1 }
 0x6c0   : > { %v2159_v61 = vadd.f32 %v2107_v58, %v2065_v43  ;;  %v2109_v48 = vpop.f32.mrb[13].mxu0  ;;  %v2152_v49 = vpop.f32.mrb[13].mxu1  ;;  %v2161_v52 = vadd.f32 %v2150_v59, %v2067_v60  ;;  %v4579_v60 = vld [vmem:[%s3939_s11 + $0x64] ss:$16 sps:$4 sm:$0xff]  }
 0x6c1   : > { %v2160_v51 = vadd.f32 %v2109_v48, %v2066_v45  ;;  %v2111_v62 = vpop.f32.mrb[14].mxu0  ;;  %v2154_v63 = vpop.f32.mrb[14].mxu1  ;;  %v2162_v26 = vadd.f32 %v2152_v49, %v2068_v22  ;;  %v4599_v22 = vld [vmem:[%s3939_s11 + $0x8c] ss:$16 sps:$4 sm:$0xff]  }
 0x6c2   : > { %v3129_v1 = vmul.f32 -1.442695, %v2159_v61  ;;  %v2163_v2 = vadd.f32 %v2111_v62, %v2069_v0  ;;  %v2113_v3 = vpop.f32.mrb[15].mxu0  ;;  %v2156_v4 = vpop.f32.mrb[15].mxu1  ;;  %v2165_v24 = vadd.f32 %v2154_v63, %v2071_v7  ;;  %v3131_v21 = vmul.f32 -1.442695, %v2161_v52 }
 0x6c3   : > { %v3130_v5 = vmul.f32 -1.442695, %v2160_v51  ;;  %v2164_v42 = vadd.f32 %v2113_v3, %v2070_v50  ;;  %v2166_v27 = vadd.f32 %v2156_v4, %v2072_v25  ;;  %v4537_v50 = vld [vmem:[%s3939_s11] ss:$16 sps:$4 sm:$0xff]   ;;  %v4541_v51 = vld [vmem:[%s3939_s11 + $0x8] ss:$16 sps:$4 sm:$0xff]  }
 0x6c4   : > { %3462 = vpow2.f32 %v3129_v1  ;;  %v3132_v6 = vmul.f32 -1.442695, %v2163_v2  ;;  %v3134_v23 = vmul.f32 -1.442695, %v2165_v24  ;;  %v4545_v62 = vld [vmem:[%s3939_s11 + $0x24] ss:$16 sps:$4 sm:$0xff]  }
 0x6c5   : > { %v3133_v8 = vmul.f32 -1.442695, %v2164_v42  ;;  %3464 = vpow2.f32 %v3130_v5  ;;  %v4549_v63 = vld [vmem:[%s3939_s11 + $0x2c] ss:$16 sps:$4 sm:$0xff]   ;;  %v4555_v1 = vld [vmem:[%s3939_s11 + $0x20] ss:$16 sps:$4 sm:$0xff]  }
 0x6c6   : > { %3466 = vpow2.f32 %v3132_v6  ;;  %v4559_v2 = vld [vmem:[%s3939_s11 + $0x28] ss:$16 sps:$4 sm:$0xff]   ;;  %v4563_v3 = vld [vmem:[%s3939_s11 + $0x44] ss:$16 sps:$4 sm:$0xff]   ;;  %v4567_v4 = vld [vmem:[%s3939_s11 + $0x4c] ss:$16 sps:$4 sm:$0xff]  }
 0x6c7   : > { %3468 = vpow2.f32 %v3133_v8  ;;  %v4571_v5 = vld [vmem:[%s3939_s11 + $0x40] ss:$16 sps:$4 sm:$0xff]   ;;  %v4575_v42 = vld [vmem:[%s3939_s11 + $0x48] ss:$16 sps:$4 sm:$0xff]   ;;  %v4583_v6 = vld [vmem:[%s3939_s11 + $0x6c] ss:$16 sps:$4 sm:$0xff]  }
 0x6c8   : > { %3470 = vtanh.f32 %v2162_v26  ;;  %v4587_v7 = vld [vmem:[%s3939_s11 + $0x60] ss:$16 sps:$4 sm:$0xff]   ;;  %v4591_v8 = vld [vmem:[%s3939_s11 + $0x68] ss:$16 sps:$4 sm:$0xff]   ;;  %v4595_v52 = vld [vmem:[%s3939_s11 + $0x84] ss:$16 sps:$4 sm:$0xff]  }
 0x6c9   : > { %3472 = vpow2.f32 %v3131_v21  ;;  %v4603_v24 = vld [vmem:[%s3939_s11 + $0x80] ss:$16 sps:$4 sm:$0xff]   ;;  %v4608_v26 = vld [vmem:[%s3939_s11 + $0xa4] ss:$16 sps:$4 sm:$0xff]  }
 0x6ca   : > { %3474 = vpow2.f32 %v3134_v23  ;;  %v4613_v21 = vld [vmem:[%s3939_s11 + $0xa0] ss:$16 sps:$4 sm:$0xff]   ;;  %v4618_v25 = vld [vmem:[%s3939_s11 + $0xc4] ss:$16 sps:$4 sm:$0xff]  }
 0x6cb   : > { %v2225_v23 = vld [vmem:[#allocation3 + $0x120] sm:$0xff] }
 0x6ce   : > { %v3463_v28 = vpop.eup %3462 }
 0x6cf   : > { %v2185_v29 = vadd.f32 1.0, %v3463_v28  ;;  %v3465_v30 = vpop.eup %3464 }
 0x6d0   : > { %v3467_v31 = vpop.eup %3466  ;;  %v2186_v32 = vadd.f32 1.0, %v3465_v30 }
 0x6d1   : > { %3476 = vrcp.f32 %v2185_v29  ;;  %v2188_v33 = vadd.f32 1.0, %v3467_v31  ;;  %v3469_v34 = vpop.eup %3468 }
 0x6d2   : > { %3478 = vtanh.f32 %v2166_v27  ;;  %v2189_v35 = vadd.f32 1.0, %v3469_v34  ;;  %v3471_v36 = vpop.eup %3470  ;;  %v2226_v27 = vld [vmem:[#allocation3 + $0x128] sm:$0xff] }
 0x6d3   : > { %3480 = vrcp.f32 %v2186_v32  ;;  %v3473_v37 = vpop.eup %3472 }
 0x6d4   : > { %3482 = vrcp.f32 %v2188_v33  ;;  %v3475_v38 = vpop.eup %3474  ;;  %v2187_v57 = vadd.f32 1.0, %v3473_v37 }
 0x6d5   : > { %3484 = vrcp.f32 %v2189_v35  ;;  %v2190_v43 = vadd.f32 1.0, %v3475_v38  ;;  %v2227_v38 = vld [vmem:[#allocation3 + $0x130] sm:$0xff] }
 0x6d6   : > { %3486 = vrcp.f32 %v2187_v57 }
 0x6db   : > { %v3477_v46 = vpop.eup %3476 }
 0x6dc   : > { %v3479_v53 = vpop.eup %3478  ;;  %v2207_v54 = vmul.f32 %v3477_v46, %v3471_v36  ;;  %v2223_v36 = vld [vmem:[#allocation3 + $0x110] sm:$0xff] }
 0x6dd   : > { %v3481_v56 = vpop.eup %3480 }
 0x6de   : > { %v3483_v40 = vpop.eup %3482  ;;  %v2205_v19 = vmul.f32 %v3481_v56, %v4487_v47 }
 0x6df   : > { %v2208_v39 = vmul.f32 %v3483_v40, %v3479_v53  ;;  %v3485_v41 = vpop.eup %3484 }
 0x6e0   : > { %v4529_v20 = vadd.f32 %v2207_v54, %v2205_v19  ;;  %v2206_v45 = vmul.f32 %v3485_v41, %v4491_v55  ;;  %v3487_v59 = vpop.eup %3486  ;;  %v2224_v54 = vld [vmem:[#allocation3 + $0x118] sm:$0xff] }
 0x6e1   : > { %v2228_v19 = vld [vmem:[#allocation3 + $0x138] sm:$0xff] }
 0x6e2   : > { %3488 = vtanh.f32 %v4529_v20  ;;  %v4533_v58 = vadd.f32 %v2208_v39, %v2206_v45 }
 0x6e3   : > { %3490 = vrcp.f32 %v2190_v43 }
 0x6e4   : > { %3492 = vtanh.f32 %v4533_v58 }
 0x6ec   : > { %v3489_v47 = vpop.eup %3488 }
 0x6ed   : > { %v3491_v0 = vpop.eup %3490  ;;  %v2213_v48 = vmul.f32 %v3489_v47, %v3487_v59 }
 0x6ee   : > { %v3493_v61 = vpop.eup %3492 }
 0x6ef   : > { %v2214_v49 = vmul.f32 %v3493_v61, %v3491_v0 }
 0x6f1   : > { %v2215_v55 = vpack.c.bf16 %v2214_v49, %v2213_v48 }
 0x6f3   : > { %2217 = vst [vmem:[#allocation2 + $0x18] sm:$0xff] %v2215_v55  ;;  %2262 = vmatmul.mubr.bf16.vlgmr.msra.gmra.mrb[16].mxu0 %v2215_v55  ;;  %2305 = vmatmul.mubr.bf16.vlgmr.msra.gmra.mrb[16].mxu1 %v2215_v55 }
 0x6f4   : > { %2386 = vmatpush1.bf16.msra.mxu0 %v4537_v50  ;;  %2429 = vmatpush1.bf16.msra.mxu1 %v4541_v51 }
 0x6f5   : > { %2387 = vmatprep.subr.bf16.mxu0 %v4545_v62  ;;  %2430 = vmatprep.subr.bf16.mxu1 %v4549_v63 }
 0x6f6   : > { %2417 = vmatprep.mubr.bf16.mxu0 %v3760_v44  ;;  %2460 = vmatprep.mubr.bf16.mxu1 %v3760_v44 }
 0x6f8   : > { %2388 = vmatpush1.bf16.msra.mxu0 %v4555_v1  ;;  %2431 = vmatpush1.bf16.msra.mxu1 %v4559_v2 }
 0x6f9   : > { %2389 = vmatprep.subr.bf16.mxu0 %v4563_v3  ;;  %2432 = vmatprep.subr.bf16.mxu1 %v4567_v4 }
 0x6fc   : > { %2390 = vmatpush1.bf16.msra.mxu0 %v4571_v5  ;;  %2433 = vmatpush1.bf16.msra.mxu1 %v4575_v42 }
 0x6fd   : > { %2391 = vmatprep.subr.bf16.mxu0 %v4579_v60  ;;  %2434 = vmatprep.subr.bf16.mxu1 %v4583_v6 }
 0x700   : > { %2392 = vmatpush1.bf16.msra.mxu0 %v4587_v7  ;;  %2435 = vmatpush1.bf16.msra.mxu1 %v4591_v8 }
 0x701   : > { %2393 = vmatprep.subr.bf16.mxu0 %v4595_v52  ;;  %2436 = vmatprep.subr.bf16.mxu1 %v4599_v22 }
 0x704   : > { %2394 = vmatpush1.bf16.msra.mxu0 %v4603_v24  ;;  %2437 = vmatpush1.bf16.msra.mxu1 %v4324_v9  ;;  %v4629_v9 = vld [vmem:[%s3939_s11 + $0x4] ss:$16 sps:$4 sm:$0xff]  }
 0x705   : > { %2395 = vmatprep.subr.bf16.mxu0 %v4608_v26  ;;  %2438 = vmatprep.subr.bf16.mxu1 %v4328_v10  ;;  %v4633_v10 = vld [vmem:[%s3939_s11 + $0xc] ss:$16 sps:$4 sm:$0xff]  }
 0x708   : > { %2396 = vmatpush1.bf16.msra.mxu0 %v4613_v21  ;;  %2439 = vmatpush1.bf16.msra.mxu1 %v4340_v13  ;;  %v2221_v13 = vld [vmem:[#allocation3 + $0x100] sm:$0xff] }
 0x709   : > { %2397 = vmatprep.subr.bf16.mxu0 %v4618_v25  ;;  %2440 = vmatprep.subr.bf16.mxu1 %v4344_v14 }
 0x70c   : > { %2398 = vmatpush1.bf16.msra.mxu0 %v4332_v11  ;;  %2441 = vmatpush1.bf16.msra.mxu1 %v4353_v16  ;;  %v2222_v11 = vld [vmem:[#allocation3 + $0x108] sm:$0xff] }
 0x70d   : > { %2399 = vmatprep.subr.bf16.mxu0 %v4336_v12  ;;  %2442 = vmatprep.subr.bf16.mxu1 %v4357_v17 }
 0x710   : > { %2400 = vmatpush1.bf16.msra.mxu0 %v4348_v15  ;;  %2443 = vmatpush1.bf16.msra.mxu1 %v4362_v18 }
 0x711   : > { %2541 = vmatprep.subr.bf16.mxu0 %v4629_v9  ;;  %2584 = vmatprep.subr.bf16.mxu1 %v4633_v10 }
 0x7c6   : > { %v2263_v14 = vpop.f32.mrb[16].mxu0  ;;  %v2306_v16 = vpop.f32.mrb[16].mxu1 }
 0x7c7   : > { %v2315_v12 = vadd.f32 %v2263_v14, %v2221_v13  ;;  %v2265_v28 = vpop.f32.mrb[17].mxu0  ;;  %v2308_v17 = vpop.f32.mrb[17].mxu1  ;;  %v2317_v53 = vadd.f32 %v2306_v16, %v2223_v36 }
 0x7c8   : > { %v2316_v15 = vadd.f32 %v2265_v28, %v2222_v11  ;;  %v2267_v29 = vpop.f32.mrb[18].mxu0  ;;  %v2310_v18 = vpop.f32.mrb[18].mxu1  ;;  %v2318_v40 = vadd.f32 %v2308_v17, %v2224_v54  ;;  %v4679_v54 = vld [vmem:[%s3939_s11 + $0xcc] ss:$16 sps:$4 sm:$0xff]  }
 0x7c9   : > { %v3135_v30 = vmul.f32 -1.442695, %v2315_v12  ;;  %v2319_v31 = vadd.f32 %v2267_v29, %v2225_v23  ;;  %v2269_v32 = vpop.f32.mrb[19].mxu0  ;;  %v2312_v33 = vpop.f32.mrb[19].mxu1  ;;  %v2321_v56 = vadd.f32 %v2310_v18, %v2227_v38  ;;  %v3137_v57 = vmul.f32 -1.442695, %v2317_v53 }
 0x7ca   : > { %v3136_v34 = vmul.f32 -1.442695, %v2316_v15  ;;  %v2320_v35 = vadd.f32 %v2269_v32, %v2226_v27  ;;  %v2322_v43 = vadd.f32 %v2312_v33, %v2228_v19  ;;  %v4674_v53 = vld [vmem:[%s3939_s11 + $0xa8] ss:$16 sps:$4 sm:$0xff]   ;;  %v4695_v19 = vld [vmem:[%s3939_s11 + $0xec] ss:$16 sps:$4 sm:$0xff]  }
 0x7cb   : > { %3494 = vpow2.f32 %v3135_v30  ;;  %v3138_v37 = vmul.f32 -1.442695, %v2319_v31  ;;  %v3140_v39 = vmul.f32 -1.442695, %v2321_v56  ;;  %v4683_v56 = vld [vmem:[%s3939_s11 + $0xc0] ss:$16 sps:$4 sm:$0xff]  }
 0x7cc   : > { %v3139_v46 = vmul.f32 -1.442695, %v2320_v35  ;;  %3496 = vpow2.f32 %v3136_v34 }
 0x7cd   : > { %3498 = vpow2.f32 %v3138_v37 }
 0x7ce   : > { %3500 = vpow2.f32 %v3139_v46  ;;  %v4669_v46 = vld [vmem:[%s3939_s11 + $0xac] ss:$16 sps:$4 sm:$0xff]  }
 0x7cf   : > { %3502 = vtanh.f32 %v2318_v40  ;;  %v4687_v40 = vld [vmem:[%s3939_s11 + $0xc8] ss:$16 sps:$4 sm:$0xff]  }
 0x7d0   : > { %3504 = vpow2.f32 %v3137_v57  ;;  %v4691_v57 = vld [vmem:[%s3939_s11 + $0xe4] ss:$16 sps:$4 sm:$0xff]  }
 0x7d1   : > { %3506 = vpow2.f32 %v3140_v39  ;;  %v4699_v39 = vld [vmem:[%s3939_s11 + $0xe0] ss:$16 sps:$4 sm:$0xff]  }
 0x7d5   : > { %v3495_v41 = vpop.eup %3494 }
 0x7d6   : > { %v2341_v45 = vadd.f32 1.0, %v3495_v41  ;;  %v3497_v59 = vpop.eup %3496  ;;  %v4703_v41 = vld [vmem:[%s3939_s11 + $0xe8] ss:$16 sps:$4 sm:$0xff]  }
 0x7d7   : > { %v3499_v47 = vpop.eup %3498  ;;  %v2342_v0 = vadd.f32 1.0, %v3497_v59 }
 0x7d8   : > { %3508 = vrcp.f32 %v2341_v45  ;;  %v2344_v61 = vadd.f32 1.0, %v3499_v47  ;;  %v3501_v48 = vpop.eup %3500  ;;  %v2378_v45 = vld [vmem:[#allocation3 + $0x148] sm:$0xff] }
 0x7d9   : > { %3510 = vtanh.f32 %v2322_v43  ;;  %v2345_v49 = vadd.f32 1.0, %v3501_v48  ;;  %v3503_v55 = vpop.eup %3502  ;;  %v2377_v43 = vld [vmem:[#allocation3 + $0x140] sm:$0xff] }
 0x7da   : > { %3512 = vrcp.f32 %v2342_v0  ;;  %v3505_v13 = vpop.eup %3504  ;;  %v2381_v0 = vld [vmem:[#allocation3 + $0x160] sm:$0xff] }
 0x7db   : > { %3514 = vrcp.f32 %v2344_v61  ;;  %v3507_v11 = vpop.eup %3506  ;;  %v2343_v17 = vadd.f32 1.0, %v3505_v13 }
 0x7dc   : > { %3516 = vrcp.f32 %v2345_v49  ;;  %v2346_v30 = vadd.f32 1.0, %v3507_v11 }
 0x7dd   : > { %3518 = vrcp.f32 %v2343_v17 }
 0x7e2   : > { %v3509_v14 = vpop.eup %3508 }
 0x7e3   : > { %v3511_v16 = vpop.eup %3510  ;;  %v2363_v23 = vmul.f32 %v3509_v14, %v3503_v55  ;;  %v2382_v55 = vld [vmem:[#allocation3 + $0x168] sm:$0xff] }
 0x7e4   : > { %v3513_v12 = vpop.eup %3512 }
 0x7e5   : > { %v3515_v28 = vpop.eup %3514  ;;  %v2361_v27 = vmul.f32 %v3513_v12, %v4529_v20 }
 0x7e6   : > { %v2364_v15 = vmul.f32 %v3515_v28, %v3511_v16  ;;  %v3517_v29 = vpop.eup %3516 }
 0x7e7   : > { %v4637_v18 = vadd.f32 %v2363_v23, %v2361_v27  ;;  %v2362_v31 = vmul.f32 %v3517_v29, %v4533_v58  ;;  %v3519_v33 = vpop.eup %3518  ;;  %v4664_v58 = vld [vmem:[%s3939_s11 + $0x88] ss:$16 sps:$4 sm:$0xff]  }
 0x7e9   : > { %3520 = vtanh.f32 %v4637_v18  ;;  %v4641_v32 = vadd.f32 %v2364_v15, %v2362_v31  ;;  %v2383_v15 = vld [vmem:[#allocation3 + $0x170] sm:$0xff]  ;;  %v2380_v31 = vld [vmem:[#allocation3 + $0x158] sm:$0xff] }
 0x7ea   : > { %3522 = vrcp.f32 %v2346_v30 }
 0x7eb   : > { %3524 = vtanh.f32 %v4641_v32 }
 0x7f3   : > { %v3521_v34 = vpop.eup %3520 }
 0x7f4   : > { %v3523_v35 = vpop.eup %3522  ;;  %v2369_v20 = vmul.f32 %v3521_v34, %v3519_v33 }
 0x7f5   : > { %v3525_v36 = vpop.eup %3524 }
 0x7f6   : > { %v2370_v37 = vmul.f32 %v3525_v36, %v3523_v35  ;;  %v2384_v36 = vld [vmem:[#allocation3 + $0x178] sm:$0xff] }
 0x7f8   : > { %v2371_v38 = vpack.c.bf16 %v2370_v37, %v2369_v20 }
 0x7fa   : > { %2373 = vst [vmem:[#allocation2 + $0x20] sm:$0xff] %v2371_v38  ;;  %2418 = vmatmul.mubr.bf16.vlgmr.msra.gmra.mrb[20].mxu0 %v2371_v38  ;;  %2461 = vmatmul.mubr.bf16.vlgmr.msra.gmra.mrb[20].mxu1 %v2371_v38 }
 0x7fb   : > { %2542 = vmatpush1.bf16.msra.mxu0 %v4537_v50  ;;  %2585 = vmatpush1.bf16.msra.mxu1 %v4541_v51 }
 0x7fc   : > { %2543 = vmatprep.subr.bf16.mxu0 %v4545_v62  ;;  %2586 = vmatprep.subr.bf16.mxu1 %v4549_v63 }
 0x7fd   : > { %2573 = vmatprep.mubr.bf16.mxu0 %v3760_v44  ;;  %2616 = vmatprep.mubr.bf16.mxu1 %v3760_v44 }
 0x7ff   : > { %2544 = vmatpush1.bf16.msra.mxu0 %v4555_v1  ;;  %2587 = vmatpush1.bf16.msra.mxu1 %v4559_v2 }
 0x800   : > { %2545 = vmatprep.subr.bf16.mxu0 %v4563_v3  ;;  %2588 = vmatprep.subr.bf16.mxu1 %v4567_v4 }
 0x803   : > { %2546 = vmatpush1.bf16.msra.mxu0 %v4571_v5  ;;  %2589 = vmatpush1.bf16.msra.mxu1 %v4575_v42 }
 0x804   : > { %2547 = vmatprep.subr.bf16.mxu0 %v4579_v60  ;;  %2590 = vmatprep.subr.bf16.mxu1 %v4583_v6 }
 0x807   : > { %2548 = vmatpush1.bf16.msra.mxu0 %v4587_v7  ;;  %2591 = vmatpush1.bf16.msra.mxu1 %v4591_v8 }
 0x808   : > { %2549 = vmatprep.subr.bf16.mxu0 %v4595_v52  ;;  %2592 = vmatprep.subr.bf16.mxu1 %v4599_v22 }
 0x80b   : > { %2550 = vmatpush1.bf16.msra.mxu0 %v4603_v24  ;;  %2593 = vmatpush1.bf16.msra.mxu1 %v4664_v58 }
 0x80c   : > { %2551 = vmatprep.subr.bf16.mxu0 %v4608_v26  ;;  %2594 = vmatprep.subr.bf16.mxu1 %v4669_v46 }
 0x80f   : > { %2552 = vmatpush1.bf16.msra.mxu0 %v4613_v21  ;;  %2595 = vmatpush1.bf16.msra.mxu1 %v4674_v53 }
 0x810   : > { %2553 = vmatprep.subr.bf16.mxu0 %v4618_v25  ;;  %2596 = vmatprep.subr.bf16.mxu1 %v4679_v54 }
 0x813   : > { %2554 = vmatpush1.bf16.msra.mxu0 %v4683_v56  ;;  %2597 = vmatpush1.bf16.msra.mxu1 %v4687_v40 }
 0x814   : > { %2555 = vmatprep.subr.bf16.mxu0 %v4691_v57  ;;  %2598 = vmatprep.subr.bf16.mxu1 %v4695_v19 }
 0x817   : > { %2556 = vmatpush1.bf16.msra.mxu0 %v4699_v39  ;;  %2599 = vmatpush1.bf16.msra.mxu1 %v4703_v41 }
 0x818   : > { %2697 = vmatprep.subr.bf16.mxu0 %v4629_v9  ;;  %2740 = vmatprep.subr.bf16.mxu1 %v4633_v10  ;;  %v2379_v10 = vld [vmem:[#allocation3 + $0x150] sm:$0xff] }
 0x8cd   : > { %v2419_v59 = vpop.f32.mrb[20].mxu0  ;;  %v2462_v47 = vpop.f32.mrb[20].mxu1 }
 0x8ce   : > { %v2471_v61 = vadd.f32 %v2419_v59, %v2377_v43  ;;  %v2421_v48 = vpop.f32.mrb[21].mxu0  ;;  %v2464_v49 = vpop.f32.mrb[21].mxu1  ;;  %v2473_v30 = vadd.f32 %v2462_v47, %v2379_v10 }
 0x8cf   : > { %v2472_v13 = vadd.f32 %v2421_v48, %v2378_v45  ;;  %v2423_v11 = vpop.f32.mrb[22].mxu0  ;;  %v2466_v14 = vpop.f32.mrb[22].mxu1  ;;  %v2474_v34 = vadd.f32 %v2464_v49, %v2380_v31 }
 0x8d0   : > { %v3141_v16 = vmul.f32 -1.442695, %v2471_v61  ;;  %v2475_v23 = vadd.f32 %v2423_v11, %v2381_v0  ;;  %v2425_v12 = vpop.f32.mrb[23].mxu0  ;;  %v2468_v28 = vpop.f32.mrb[23].mxu1  ;;  %v2477_v33 = vadd.f32 %v2466_v14, %v2383_v15  ;;  %v3143_v35 = vmul.f32 -1.442695, %v2473_v30 }
 0x8d1   : > { %v3142_v17 = vmul.f32 -1.442695, %v2472_v13  ;;  %v2476_v9 = vadd.f32 %v2425_v12, %v2382_v55  ;;  %v2478_v38 = vadd.f32 %v2468_v28, %v2384_v36 }
 0x8d2   : > { %3526 = vpow2.f32 %v3141_v16  ;;  %v3144_v27 = vmul.f32 -1.442695, %v2475_v23  ;;  %v3146_v20 = vmul.f32 -1.442695, %v2477_v33 }
 0x8d3   : > { %v3145_v29 = vmul.f32 -1.442695, %v2476_v9  ;;  %3528 = vpow2.f32 %v3142_v17 }
 0x8d4   : > { %3530 = vpow2.f32 %v3144_v27 }
 0x8d5   : > { %3532 = vpow2.f32 %v3145_v29 }
 0x8d6   : > { %3534 = vtanh.f32 %v2474_v34 }
 0x8d7   : > { %3536 = vpow2.f32 %v3143_v35 }
 0x8d8   : > { %3538 = vpow2.f32 %v3146_v20 }
 0x8dc   : > { %v3527_v37 = vpop.eup %3526 }
 0x8dd   : > { %v2497_v43 = vadd.f32 1.0, %v3527_v37  ;;  %v3529_v45 = vpop.eup %3528 }
 0x8de   : > { %v3531_v59 = vpop.eup %3530  ;;  %v2498_v0 = vadd.f32 1.0, %v3529_v45 }
 0x8df   : > { %3540 = vrcp.f32 %v2497_v43  ;;  %v2500_v61 = vadd.f32 1.0, %v3531_v59  ;;  %v3533_v47 = vpop.eup %3532 }
 0x8e0   : > { %3542 = vtanh.f32 %v2478_v38  ;;  %v2501_v48 = vadd.f32 1.0, %v3533_v47  ;;  %v3535_v49 = vpop.eup %3534 }
 0x8e1   : > { %3544 = vrcp.f32 %v2498_v0  ;;  %v3537_v55 = vpop.eup %3536 }
 0x8e2   : > { %3546 = vrcp.f32 %v2500_v61  ;;  %v3539_v13 = vpop.eup %3538  ;;  %v2499_v28 = vadd.f32 1.0, %v3537_v55 }
 0x8e3   : > { %3548 = vrcp.f32 %v2501_v48  ;;  %v2502_v15 = vadd.f32 1.0, %v3539_v13 }
 0x8e4   : > { %3550 = vrcp.f32 %v2499_v28 }
 0x8e9   : > { %v3541_v11 = vpop.eup %3540 }
 0x8ea   : > { %v3543_v14 = vpop.eup %3542  ;;  %v2519_v16 = vmul.f32 %v3541_v11, %v3535_v49 }
 0x8eb   : > { %v3545_v23 = vpop.eup %3544 }
 0x8ec   : > { %v3547_v12 = vpop.eup %3546  ;;  %v2517_v17 = vmul.f32 %v3545_v23, %v4637_v18 }
 0x8ed   : > { %v2520_v9 = vmul.f32 %v3547_v12, %v3543_v14  ;;  %v3549_v10 = vpop.eup %3548 }
 0x8ee   : > { %v4709_v27 = vadd.f32 %v2519_v16, %v2517_v17  ;;  %v2518_v29 = vmul.f32 %v3549_v10, %v4641_v32  ;;  %v3551_v31 = vpop.eup %3550 }
 0x8f0   : > { %3552 = vtanh.f32 %v4709_v27  ;;  %v4713_v30 = vadd.f32 %v2520_v9, %v2518_v29 }
 0x8f1   : > { %3554 = vrcp.f32 %v2502_v15 }
 0x8f2   : > { %3556 = vtanh.f32 %v4713_v30 }
 0x8fa   : > { %v3553_v33 = vpop.eup %3552 }
 0x8fb   : > { %v3555_v34 = vpop.eup %3554  ;;  %v2525_v18 = vmul.f32 %v3553_v33, %v3551_v31 }
 0x8fc   : > { %v3557_v35 = vpop.eup %3556 }
 0x8fd   : > { %v2526_v36 = vmul.f32 %v3557_v35, %v3555_v34 }
 0x8ff   : > { %v2527_v20 = vpack.c.bf16 %v2526_v36, %v2525_v18  ;;  %v2689_v36 = vld [vmem:[#allocation3 + $0x1c0] sm:$0xff] }
 0x901   : > { %2529 = vst [vmem:[#allocation2 + $0x28] sm:$0xff] %v2527_v20  ;;  %2574 = vmatmul.mubr.bf16.vlgmr.msra.gmra.mrb[24].mxu0 %v2527_v20  ;;  %2617 = vmatmul.mubr.bf16.vlgmr.msra.gmra.mrb[24].mxu1 %v2527_v20 }
 0x902   : > { %2698 = vmatpush1.bf16.msra.mxu0 %v4537_v50  ;;  %2741 = vmatpush1.bf16.msra.mxu1 %v4541_v51  ;;  %v2534_v50 = vld [vmem:[#allocation3 + $0x188] sm:$0xff] }
 0x903   : > { %2699 = vmatprep.subr.bf16.mxu0 %v4545_v62  ;;  %2742 = vmatprep.subr.bf16.mxu1 %v4549_v63  ;;  %v2537_v63 = vld [vmem:[#allocation3 + $0x1a0] sm:$0xff] }
 0x904   : > { %2729 = vmatprep.mubr.bf16.mxu0 %v3760_v44  ;;  %2772 = vmatprep.mubr.bf16.mxu1 %v3760_v44  ;;  %v2533_v44 = vld [vmem:[#allocation3 + $0x180] sm:$0xff] }
 0x906   : > { %2700 = vmatpush1.bf16.msra.mxu0 %v4555_v1  ;;  %2743 = vmatpush1.bf16.msra.mxu1 %v4559_v2 }
 0x907   : > { %2701 = vmatprep.subr.bf16.mxu0 %v4563_v3  ;;  %2744 = vmatprep.subr.bf16.mxu1 %v4567_v4  ;;  %v2538_v4 = vld [vmem:[#allocation3 + $0x1a8] sm:$0xff] }
 0x90a   : > { %2702 = vmatpush1.bf16.msra.mxu0 %v4571_v5  ;;  %2745 = vmatpush1.bf16.msra.mxu1 %v4575_v42 }
 0x90b   : > { %2703 = vmatprep.subr.bf16.mxu0 %v4579_v60  ;;  %2746 = vmatprep.subr.bf16.mxu1 %v4583_v6 }
 0x90e   : > { %2704 = vmatpush1.bf16.msra.mxu0 %v4587_v7  ;;  %2747 = vmatpush1.bf16.msra.mxu1 %v4591_v8 }
 0x90f   : > { %2705 = vmatprep.subr.bf16.mxu0 %v4595_v52  ;;  %2748 = vmatprep.subr.bf16.mxu1 %v4599_v22 }
 0x912   : > { %2706 = vmatpush1.bf16.msra.mxu0 %v4603_v24  ;;  %2749 = vmatpush1.bf16.msra.mxu1 %v4664_v58 }
 0x913   : > { %2707 = vmatprep.subr.bf16.mxu0 %v4608_v26  ;;  %2750 = vmatprep.subr.bf16.mxu1 %v4669_v46  ;;  %v2535_v26 = vld [vmem:[#allocation3 + $0x190] sm:$0xff]  ;;  %v2536_v46 = vld [vmem:[#allocation3 + $0x198] sm:$0xff] }
 0x916   : > { %2708 = vmatpush1.bf16.msra.mxu0 %v4613_v21  ;;  %2751 = vmatpush1.bf16.msra.mxu1 %v4674_v53 }
 0x917   : > { %2709 = vmatprep.subr.bf16.mxu0 %v4618_v25  ;;  %2752 = vmatprep.subr.bf16.mxu1 %v4679_v54  ;;  %v2539_v25 = vld [vmem:[#allocation3 + $0x1b0] sm:$0xff] }
 0x91a   : > { %2710 = vmatpush1.bf16.msra.mxu0 %v4683_v56  ;;  %2753 = vmatpush1.bf16.msra.mxu1 %v4687_v40  ;;  %v2540_v40 = vld [vmem:[#allocation3 + $0x1b8] sm:$0xff] }
 0x91b   : > { %2711 = vmatprep.subr.bf16.mxu0 %v4691_v57  ;;  %2754 = vmatprep.subr.bf16.mxu1 %v4695_v19 }
 0x91e   : > { %2712 = vmatpush1.bf16.msra.mxu0 %v4699_v39  ;;  %2755 = vmatpush1.bf16.msra.mxu1 %v4703_v41 }
 0x9d4   : > { %v2575_v51 = vpop.f32.mrb[24].mxu0  ;;  %v2618_v62 = vpop.f32.mrb[24].mxu1 }
 0x9d5   : > { %v2627_v1 = vadd.f32 %v2575_v51, %v2533_v44  ;;  %v2577_v2 = vpop.f32.mrb[25].mxu0  ;;  %v2620_v3 = vpop.f32.mrb[25].mxu1  ;;  %v2629_v58 = vadd.f32 %v2618_v62, %v2535_v26 }
 0x9d6   : > { %v2628_v5 = vadd.f32 %v2577_v2, %v2534_v50  ;;  %v2579_v42 = vpop.f32.mrb[26].mxu0  ;;  %v2622_v60 = vpop.f32.mrb[26].mxu1  ;;  %v2630_v54 = vadd.f32 %v2620_v3, %v2536_v46  ;;  %v2693_v50 = vld [vmem:[#allocation3 + $0x1e0] sm:$0xff] }
 0x9d7   : > { %v3147_v6 = vmul.f32 -1.442695, %v2627_v1  ;;  %v2631_v7 = vadd.f32 %v2579_v42, %v2537_v63  ;;  %v2581_v8 = vpop.f32.mrb[27].mxu0  ;;  %v2624_v52 = vpop.f32.mrb[27].mxu1  ;;  %v2633_v53 = vadd.f32 %v2622_v60, %v2539_v25  ;;  %v3149_v56 = vmul.f32 -1.442695, %v2629_v58 }
 0x9d8   : > { %v3148_v22 = vmul.f32 -1.442695, %v2628_v5  ;;  %v2632_v24 = vadd.f32 %v2581_v8, %v2538_v4  ;;  %v2634_v39 = vadd.f32 %v2624_v52, %v2540_v40  ;;  %v2694_v1 = vld [vmem:[#allocation3 + $0x1e8] sm:$0xff]  ;;  %v2691_v52 = vld [vmem:[#allocation3 + $0x1d0] sm:$0xff]  ;;  %v2692_v25 = vld [vmem:[#allocation3 + $0x1d8] sm:$0xff] }
 0x9d9   : > { %3558 = vpow2.f32 %v3147_v6  ;;  %v3150_v21 = vmul.f32 -1.442695, %v2631_v7  ;;  %v3152_v57 = vmul.f32 -1.442695, %v2633_v53  ;;  %v2696_v53 = vld [vmem:[#allocation3 + $0x1f8] sm:$0xff] }
 0x9da   : > { %v3151_v32 = vmul.f32 -1.442695, %v2632_v24  ;;  %3560 = vpow2.f32 %v3148_v22  ;;  %v2695_v24 = vld [vmem:[#allocation3 + $0x1f0] sm:$0xff] }
 0x9db   : > { %3562 = vpow2.f32 %v3150_v21 }
 0x9dc   : > { %3564 = vpow2.f32 %v3151_v32 }
 0x9dd   : > { %3566 = vtanh.f32 %v2630_v54 }
 0x9de   : > { %3568 = vpow2.f32 %v3149_v56 }
 0x9df   : > { %3570 = vpow2.f32 %v3152_v57 }
 0x9e3   : > { %v3559_v19 = vpop.eup %3558 }
 0x9e4   : > { %v2653_v41 = vadd.f32 1.0, %v3559_v19  ;;  %v3561_v37 = vpop.eup %3560 }
 0x9e5   : > { %v3563_v38 = vpop.eup %3562  ;;  %v2654_v43 = vadd.f32 1.0, %v3561_v37 }
 0x9e6   : > { %3572 = vrcp.f32 %v2653_v41  ;;  %v2656_v45 = vadd.f32 1.0, %v3563_v38  ;;  %v3565_v59 = vpop.eup %3564 }
 0x9e7   : > { %3574 = vtanh.f32 %v2634_v39  ;;  %v2657_v0 = vadd.f32 1.0, %v3565_v59  ;;  %v3567_v61 = vpop.eup %3566 }
 0x9e8   : > { %3576 = vrcp.f32 %v2654_v43  ;;  %v3569_v47 = vpop.eup %3568 }
 0x9e9   : > { %3578 = vrcp.f32 %v2656_v45  ;;  %v3571_v48 = vpop.eup %3570  ;;  %v2655_v16 = vadd.f32 1.0, %v3569_v47 }
 0x9ea   : > { %3580 = vrcp.f32 %v2657_v0  ;;  %v2658_v9 = vadd.f32 1.0, %v3571_v48 }
 0x9eb   : > { %3582 = vrcp.f32 %v2655_v16 }
 0x9f0   : > { %v3573_v49 = vpop.eup %3572 }
 0x9f1   : > { %v3575_v55 = vpop.eup %3574  ;;  %v2675_v13 = vmul.f32 %v3573_v49, %v3567_v61 }
 0x9f2   : > { %v3577_v11 = vpop.eup %3576 }
 0x9f3   : > { %v3579_v14 = vpop.eup %3578  ;;  %v2673_v23 = vmul.f32 %v3577_v11, %v4709_v27 }
 0x9f4   : > { %v2676_v12 = vmul.f32 %v3579_v14, %v3575_v55  ;;  %v3581_v28 = vpop.eup %3580 }
 0x9f5   : > { %v4749_v17 = vadd.f32 %v2675_v13, %v2673_v23  ;;  %v2674_v10 = vmul.f32 %v3581_v28, %v4713_v30  ;;  %v3583_v29 = vpop.eup %3582  ;;  %v2690_v30 = vld [vmem:[#allocation3 + $0x1c8] sm:$0xff] }
 0x9f7   : > { %3584 = vtanh.f32 %v4749_v17  ;;  %v4753_v15 = vadd.f32 %v2676_v12, %v2674_v10 }
 0x9f8   : > { %3586 = vrcp.f32 %v2658_v9 }
 0x9f9   : > { %3588 = vtanh.f32 %v4753_v15 }
 0xa01   : > { %v3585_v31 = vpop.eup %3584 }
 0xa02   : > { %v3587_v33 = vpop.eup %3586  ;;  %v2681_v27 = vmul.f32 %v3585_v31, %v3583_v29 }
 0xa03   : > { %v3589_v34 = vpop.eup %3588 }
 0xa04   : > { %v2682_v35 = vmul.f32 %v3589_v34, %v3587_v33 }
 0xa06   : > { %v2683_v18 = vpack.c.bf16 %v2682_v35, %v2681_v27 }
 0xa08   : > { %2685 = vst [vmem:[#allocation2 + $0x30] sm:$0xff] %v2683_v18  ;;  %2730 = vmatmul.mubr.bf16.vlgmr.msra.gmra.mrb[28].mxu0 %v2683_v18  ;;  %2773 = vmatmul.mubr.bf16.vlgmr.msra.gmra.mrb[28].mxu1 %v2683_v18 }
 0xadb   : > { %v2731_v20 = vpop.f32.mrb[28].mxu0  ;;  %v2774_v44 = vpop.f32.mrb[28].mxu1 }
 0xadc   : > { %v2783_v51 = vadd.f32 %v2731_v20, %v2689_v36  ;;  %v2733_v62 = vpop.f32.mrb[29].mxu0  ;;  %v2776_v63 = vpop.f32.mrb[29].mxu1  ;;  %v2785_v21 = vadd.f32 %v2774_v44, %v2691_v52 }
 0xadd   : > { %v2784_v2 = vadd.f32 %v2733_v62, %v2690_v30  ;;  %v2735_v3 = vpop.f32.mrb[30].mxu0  ;;  %v2778_v4 = vpop.f32.mrb[30].mxu1  ;;  %v2786_v58 = vadd.f32 %v2776_v63, %v2692_v25 }
 0xade   : > { %v3153_v5 = vmul.f32 -1.442695, %v2783_v51  ;;  %v2787_v42 = vadd.f32 %v2735_v3, %v2693_v50  ;;  %v2737_v60 = vpop.f32.mrb[31].mxu0  ;;  %v2780_v6 = vpop.f32.mrb[31].mxu1  ;;  %v2789_v32 = vadd.f32 %v2778_v4, %v2695_v24  ;;  %v3155_v46 = vmul.f32 -1.442695, %v2785_v21 }
 0xadf   : > { %v3154_v7 = vmul.f32 -1.442695, %v2784_v2  ;;  %v2788_v8 = vadd.f32 %v2737_v60, %v2694_v1  ;;  %v2790_v40 = vadd.f32 %v2780_v6, %v2696_v53 }
 0xae0   : > { %3590 = vpow2.f32 %v3153_v5  ;;  %v3156_v22 = vmul.f32 -1.442695, %v2787_v42  ;;  %v3158_v54 = vmul.f32 -1.442695, %v2789_v32 }
 0xae1   : > { %v3157_v26 = vmul.f32 -1.442695, %v2788_v8  ;;  %3592 = vpow2.f32 %v3154_v7 }
 0xae2   : > { %3594 = vpow2.f32 %v3156_v22 }
 0xae3   : > { %3596 = vpow2.f32 %v3157_v26 }
 0xae4   : > { %3598 = vtanh.f32 %v2786_v58 }
 0xae5   : > { %3600 = vpow2.f32 %v3155_v46 }
 0xae6   : > { %3602 = vpow2.f32 %v3158_v54 }
 0xaea   : > { %v3591_v56 = vpop.eup %3590 }
 0xaeb   : > { %v2809_v57 = vadd.f32 1.0, %v3591_v56  ;;  %v3593_v19 = vpop.eup %3592 }
 0xaec   : > { %v3595_v39 = vpop.eup %3594  ;;  %v2810_v41 = vadd.f32 1.0, %v3593_v19 }
 0xaed   : > { %3604 = vrcp.f32 %v2809_v57  ;;  %v2812_v37 = vadd.f32 1.0, %v3595_v39  ;;  %v3597_v38 = vpop.eup %3596 }
 0xaee   : > { %3606 = vtanh.f32 %v2790_v40  ;;  %v2813_v43 = vadd.f32 1.0, %v3597_v38  ;;  %v3599_v45 = vpop.eup %3598 }
 0xaef   : > { %3608 = vrcp.f32 %v2810_v41  ;;  %v3601_v59 = vpop.eup %3600 }
 0xaf0   : > { %3610 = vrcp.f32 %v2812_v37  ;;  %v3603_v0 = vpop.eup %3602  ;;  %v2811_v55 = vadd.f32 1.0, %v3601_v59 }
 0xaf1   : > { %3612 = vrcp.f32 %v2813_v43  ;;  %v2814_v12 = vadd.f32 1.0, %v3603_v0 }
 0xaf2   : > { %3614 = vrcp.f32 %v2811_v55 }
 0xaf7   : > { %v3605_v61 = vpop.eup %3604 }
 0xaf8   : > { %v3607_v47 = vpop.eup %3606  ;;  %v2831_v48 = vmul.f32 %v3605_v61, %v3599_v45 }
 0xaf9   : > { %v3609_v49 = vpop.eup %3608 }
 0xafa   : > { %v3611_v13 = vpop.eup %3610  ;;  %v2829_v11 = vmul.f32 %v3609_v49, %v4749_v17 }
 0xafb   : > { %v2832_v14 = vmul.f32 %v3611_v13, %v3607_v47  ;;  %v3613_v16 = vpop.eup %3612 }
 0xafc   : > { %v2833_v23 = vadd.f32 %v2831_v48, %v2829_v11  ;;  %v2830_v28 = vmul.f32 %v3613_v16, %v4753_v15  ;;  %v3615_v10 = vpop.eup %3614 }
 0xafe   : > { %3616 = vtanh.f32 %v2833_v23  ;;  %2844 = vst [vmem:[%s3958_s27] sm:$0xff] %v2833_v23  ;;  %v2834_v9 = vadd.f32 %v2832_v14, %v2830_v28 }
 0xaff   : > { %3618 = vrcp.f32 %v2814_v12 }
 0xb00   : > { %3620 = vtanh.f32 %v2834_v9  ;;  %2845 = vst [vmem:[%s3958_s27 + $0x8] sm:$0xff] %v2834_v9 }
 0xb08   : > { %v3617_v29 = vpop.eup %3616 }
 0xb09   : > { %v2837_v31 = vmul.f32 %v3617_v29, %v3615_v10  ;;  %v3619_v33 = vpop.eup %3618 }
 0xb0a   : > { %v3621_v17 = vpop.eup %3620 }
 0xb0b   : > { %2842 = vst [vmem:[%s3953_s6] sm:$0xff] %v2837_v31  ;;  %v2838_v34 = vmul.f32 %v3621_v17, %v3619_v33 }
 0xb0d   : > { %v2839_v27 = vpack.c.bf16 %v2838_v34, %v2837_v31  ;;  %2843 = vst [vmem:[%s3953_s6 + $0x8] sm:$0xff] %v2838_v34 }
 0xb0f   : > { %2841 = vst [vmem:[#allocation2 + $0x38] sm:$0xff] %v2839_v27 }
 0xb10 PF: > { %p19_p6 = scmp.ge.s32.totalorder %s3813_s23, 4   ;;  %s4787_s18 = smov %s3744_s19 }
 0xb11   : > { %s4788_s19 = smov %s3748_s20  ;;  %s4789_s20 = smov %s3823_s26 }
 0xb12   : > { %s4790_s21 = smov %s3813_s23  ;;  %21 = sbr.rel (!%p19_p6) target bundleno = 5 (0x5), region = 127 }
 0xb19   :  { %2883 = vsyncpa [#allocation5], 1 }
 0xb1a   :  { %2885 = vsyncpa [#allocation5 + $0x1], 1 }
 0xb1b   :  { %2886 = vsyncpa [#allocation7], 1 }
 0xb1c   :  { %2888 = vsyncpa [#allocation7 + $0x1], 1 }

</bundles_post_ra>
